<compile_context>
chip_gen: v7x
topology: tpu7x:2x2x1
jax: 0.10.0
libtpu: 0.0.40
codegen_flags: <defaults>
</compile_context>

<pallas_src>
import functools

import numpy as np
import jax
import jax.numpy as jnp
from jax.experimental import pallas as pl
from jax.experimental.pallas import tpu as pltpu

LANES = 128


# ------------------------- static helper matrices ---------------------------

def _conv_out(size, k, stride, pad):
    return (size + 2 * pad - k) // stride + 1


def _sel_taps(ih, iw, oh, ow, k, stride, pad):
    """Per-sample 0/1 row-selection matrices implementing im2col-style gathers.

    Feature maps are stored as 2-D [rows=(h, w), lanes=channels].  For tap
    t = dh*k + dw:  (T[t] @ X)[(y, x), :] == Xfeat[stride*y+dh-pad, stride*x+dw-pad, :]
    with an all-zero row wherever the tap lands in the zero-padding region,
    so zero padding comes for free."""
    T = np.zeros((k * k, oh * ow, ih * iw), np.float32)
    for dh in range(k):
        for dw in range(k):
            t = dh * k + dw
            for y in range(oh):
                yy = stride * y + dh - pad
                if not (0 <= yy < ih):
                    continue
                for x in range(ow):
                    xx = stride * x + dw - pad
                    if not (0 <= xx < iw):
                        continue
                    T[t, y * ow + x, yy * iw + xx] = 1.0
    return T


def _softmax_rowsel(h, w):
    """R[j] broadcasts, for every row (y, x), the row (j, x) of its H-group."""
    R = np.zeros((h, h * w, h * w), np.float32)
    for j in range(h):
        for y in range(h):
            for x in range(w):
                R[j, y * w + x, j * w + x] = 1.0
    return R


def build_consts(h, w):
    """Per-sample shape-dependent 0/1 selection matrices (exact in bf16)."""
    h1, w1 = _conv_out(h, 3, 2, 1), _conv_out(w, 3, 2, 1)      # conv1
    h2, w2 = _conv_out(h1, 3, 2, 1), _conv_out(w1, 3, 2, 1)    # conv2
    hp, wp = _conv_out(h2, 3, 1, 0), _conv_out(w2, 3, 1, 0)    # maxpool
    h3, w3 = _conv_out(hp, 3, 1, 1), _conv_out(wp, 3, 1, 1)    # conv3
    h4, w4 = _conv_out(h3, 1, 1, 1), _conv_out(w3, 1, 1, 1)    # conv4 (1x1, p1)
    h5, w5 = _conv_out(h4, 1, 1, 1), _conv_out(w4, 1, 1, 1)    # conv5 (1x1, p1)
    bf = jnp.bfloat16
    r = _softmax_rowsel(h5, w5)
    return {
        "t2": jnp.asarray(_sel_taps(h1, w1, h2, w2, 3, 2, 1), bf),  # (9, 16, 64)
        "mp": jnp.asarray(_sel_taps(h2, w2, hp, wp, 3, 1, 0), bf),  # (9, 4, 16)
        "t3": jnp.asarray(_sel_taps(hp, wp, h3, w3, 3, 1, 1), bf),  # (9, 4, 4)
        "t4": jnp.asarray(_sel_taps(h3, w3, h4, w4, 1, 1, 1)[0], bf),  # (16, 4)
        "t5": jnp.asarray(_sel_taps(h4, w4, h5, w5, 1, 1, 1)[0], bf),  # (36, 16)
        "rmax": jnp.asarray(r, bf),                                   # (6, 36, 36)
        "rsum": jnp.asarray(r.sum(axis=0), bf),                       # (36, 36)
    }


# ------------------------------ parameters ----------------------------------

def init_params(key):
    def conv_init(k, oc, ic, ksz):
        kw_, kb_ = jax.random.split(k)
        fan_in = ic * ksz * ksz
        bound = 1.0 / np.sqrt(fan_in)
        w = jax.random.uniform(kw_, (oc, ic, ksz, ksz), jnp.float32, -bound, bound)
        b = jax.random.uniform(kb_, (oc,), jnp.float32, -bound, bound)
        return w, b

    k1, k2, k3, k4, k5 = jax.random.split(key, 5)
    p = {}
    p["w1"], p["b1"] = conv_init(k1, 96, 1, 3)
    p["w2"], p["b2"] = conv_init(k2, 64, 96, 3)
    p["w3"], p["b3"] = conv_init(k3, 32, 64, 3)
    p["w4"], p["b4"] = conv_init(k4, 32, 32, 1)
    p["w5"], p["b5"] = conv_init(k5, 2, 32, 1)
    return p


def prepare_params(p):
    """Hoist all weight reshapes / padding / bf16 casts out of the forward.

    3x3 convs become one wide [128, 9*128] bf16 matrix (per-tap [IC, OC]
    blocks, IC padded to 128 rows, OC padded to 128 lanes so in-kernel lane
    slices stay vreg-aligned); 1x1 convs become a [128, 128] bf16 matrix.
    Pad rows/columns are exactly zero so padded lanes carry exact zeros."""
    bf = jnp.bfloat16

    def pad_lanes(a):
        return jnp.pad(a, ((0, 0), (0, LANES - a.shape[1])))

    def taps(w):                                   # (OC, IC, K, K) -> (K*K, IC, OC)
        oc, ic, k, _ = w.shape
        return jnp.transpose(w, (2, 3, 1, 0)).reshape(k * k, ic, oc)

    def wide(w):                                   # (OC, IC, 3, 3) -> (128, 9*128) bf16
        t = taps(w)
        kk, ic, oc = t.shape
        t = jnp.pad(t, ((0, 0), (0, LANES - ic), (0, LANES - oc)))
        return jnp.transpose(t, (1, 0, 2)).reshape(LANES, kk * LANES).astype(bf)

    def onebyone(w):                               # (OC, IC, 1, 1) -> (128, 128) bf16
        oc, ic = w.shape[0], w.shape[1]
        m = w.reshape(oc, ic).T
        return jnp.pad(m, ((0, LANES - ic), (0, LANES - oc))).astype(bf)

    def bias(b):
        return pad_lanes(b.reshape(1, -1)).astype(jnp.float32)

    w1m = pad_lanes(p["w1"].reshape(p["w1"].shape[0], -1).T).astype(bf)  # (9, 128)
    return {
        "w1": w1m, "b1": bias(p["b1"]),
        "w2": wide(p["w2"]), "b2": bias(p["b2"]),
        "w3": wide(p["w3"]), "b3": bias(p["b3"]),
        "w4": onebyone(p["w4"]), "b4": bias(p["b4"]),
        "w5": onebyone(p["w5"]), "b5": bias(p["b5"]),
    }


# ------------------------------ fused kernel --------------------------------

def _pairwise(xs, op):
    """Balanced (log-depth) reduction -> independent MXU/VPU chains."""
    xs = list(xs)
    while len(xs) > 1:
        nxt = [op(xs[i], xs[i + 1]) for i in range(0, len(xs) - 1, 2)]
        if len(xs) % 2:
            nxt.append(xs[-1])
        xs = nxt
    return xs[0]


def _d_fused_kernel(cols1_ref, w1_ref, b1_ref,
                    t2_ref, w2_ref, b2_ref,
                    mp_ref,
                    t3_ref, w3_ref, b3_ref,
                    t4_ref, w4_ref, b4_ref,
                    t5_ref, w5_ref, b5_ref,
                    rmax_ref, rsum_ref,
                    o_ref):
    f32, bf16 = jnp.float32, jnp.bfloat16
    # Both operands of every dot are bf16 -> deterministic single-pass bf16
    # MXU with explicit f32 accumulation on v5e/v6e/v7x.
    dot = functools.partial(jnp.dot, preferred_element_type=f32)

    def conv_wide(act, wcat_ref, tap_ref, b_ref):
        # One wide matmul over all 9 taps, then 9 INDEPENDENT row-gather
        # matmuls (lane slices are 128-aligned), tree-summed.
        # NOTE(v7x): a single accumulate chain would let Mosaic use the MRB
        # in-place accumulator; the balanced tree favours v5e/v6e's MRF.
        z = dot(act.astype(bf16), wcat_ref[...]).astype(bf16)     # (M, 9*128)
        parts = [dot(tap_ref[t], z[:, t * LANES:(t + 1) * LANES]) for t in range(9)]
        return _pairwise(parts, jnp.add) + b_ref[...]

    # conv1 (1->96, 3x3, s2, p1): one matmul on the pre-gathered patches.
    y1 = dot(cols1_ref[0].astype(bf16), w1_ref[...]) + b1_ref[...]   # (64, 128)

    # conv2 (96->64, 3x3, s2, p1)
    y2 = conv_wide(y1, w2_ref, t2_ref, b2_ref)                        # (16, 128)

    # maxpool 3x3, stride 1: 9 independent exact row-copy gathers, tree max.
    y2b = y2.astype(bf16)
    yp = _pairwise([dot(mp_ref[t], y2b) for t in range(9)], jnp.maximum)  # (4, 128)

    # conv3 (64->32, 3x3, s1, p1)
    y3 = conv_wide(yp, w3_ref, t3_ref, b3_ref)                        # (4, 128)

    # conv4 (32->32, 1x1, s1, p1): zero-pad ring rows via t4, then 1x1 weights.
    y3g = dot(t4_ref[...], y3.astype(bf16))                           # (16, 128)
    y4 = dot(y3g.astype(bf16), w4_ref[...]) + b4_ref[...]             # (16, 128)

    # conv5 (32->2, 1x1, s1, p1), OC padded to 128 lanes (pad lanes stay 0).
    y4g = dot(t5_ref[...], y4.astype(bf16))                           # (36, 128)
    y5 = dot(y4g.astype(bf16), w5_ref[...]) + b5_ref[...]             # (36, 128)

    # softmax over dim=2 (H axis); rows are (h, w), groups stride w.
    y5b = y5.astype(bf16)
    m = _pairwise([dot(rmax_ref[j], y5b) for j in range(rmax_ref.shape[0])],
                  jnp.maximum)                                        # group max
    e = jnp.exp(y5b.astype(f32) - m)
    eb = e.astype(bf16)            # identical values feed numerator & denominator
    s = dot(rsum_ref[...], eb)     # single-matmul group sum (R_sum = sum_j R[j])
    o_ref[0] = eb.astype(f32) / s  # lane-dense (36, 128) store; slice OC outside


# --------------------------------- model ------------------------------------

@jax.jit
def d_forward(x, prepared, consts):
    n, _, h, w = x.shape
    h1, w1 = _conv_out(h, 3, 2, 1), _conv_out(w, 3, 2, 1)

    # conv1 im2col on the 2 KB input (handful of tiny fused XLA slices);
    # everything downstream is one pallas_call with a per-sample grid.
    xp = jnp.pad(x[:, 0], ((0, 0), (1, 1), (1, 1)))
    cols = [xp[:, dh:dh + 2 * h1:2, dw:dw + 2 * w1:2]
            for dh in range(3) for dw in range(3)]
    cols1 = jnp.stack(cols, axis=-1).reshape(n, h1 * w1, 9)

    rows5 = consts["t5"].shape[0]        # h5 * w5 per sample
    h5 = consts["rmax"].shape[0]
    w5sp = rows5 // h5
    oc5 = 2

    const_args = (
        prepared["w1"], prepared["b1"],
        consts["t2"], prepared["w2"], prepared["b2"],
        consts["mp"],
        consts["t3"], prepared["w3"], prepared["b3"],
        consts["t4"], prepared["w4"], prepared["b4"],
        consts["t5"], prepared["w5"], prepared["b5"],
        consts["rmax"], consts["rsum"],
    )

    def resident(a):
        # Full-array block whose block index never changes -> DMA'd once,
        # VMEM-resident for every grid step.
        nd = a.ndim
        return pl.BlockSpec(a.shape, lambda b, _nd=nd: (0,) * _nd)

    out = pl.pallas_call(
        _d_fused_kernel,
        grid=(n,),
        out_shape=jax.ShapeDtypeStruct((n, rows5, LANES), jnp.float32),
        in_specs=[pl.BlockSpec((1, h1 * w1, 9), lambda b: (b, 0, 0))]
                + [resident(a) for a in const_args],
        out_specs=pl.BlockSpec((1, rows5, LANES), lambda b: (b, 0, 0)),
        compiler_params=pltpu.CompilerParams(
            dimension_semantics=("parallel",)),   # 2 TCs on v7x; loop elsewhere
    )(cols1, *const_args)

    # rows are (h, w) with channels on lanes -> slice OC and emit NCHW.
    out = out[:, :, :oc5]
    return jnp.transpose(out.reshape(n, h5, w5sp, oc5), (0, 3, 1, 2))


def d_reference(x, p):
    """Pure-JAX f32 reference (XLA convs) for a correctness cross-check."""
    prec = jax.lax.Precision.HIGHEST

    def conv(x, w, b, stride, pad):
        y = jax.lax.conv_general_dilated(
            x, w, (stride, stride), ((pad, pad), (pad, pad)),
            dimension_numbers=("NCHW", "OIHW", "NCHW"), precision=prec)
        return y + b.reshape(1, -1, 1, 1)

    x = conv(x, p["w1"], p["b1"], 2, 1)
    x = conv(x, p["w2"], p["b2"], 2, 1)
    x = jax.lax.reduce_window(x, -jnp.inf, jax.lax.max,
                              (1, 1, 3, 3), (1, 1, 1, 1), "VALID")
    x = conv(x, p["w3"], p["b3"], 1, 1)
    x = conv(x, p["w4"], p["b4"], 1, 1)
    x = conv(x, p["w5"], p["b5"], 1, 1)
    return jax.nn.softmax(x, axis=2)


if __name__ == "__main__":
    key = jax.random.PRNGKey(0)
    k_params, k_x = jax.random.split(key)
    params = init_params(k_params)
    prepared = prepare_params(params)

    # Input: batch=2, 1 channel (conv1 expects 1), 16x16 spatial, NCHW.
    x = jax.random.normal(k_x, (2, 1, 16, 16), jnp.float32)
    consts = build_consts(x.shape[2], x.shape[3])

    out = d_forward(x, prepared, consts)
    out = jax.block_until_ready(out)

    # Shape trace: (2,1,16,16) -> (2,96,8,8) -> (2,64,4,4) -> (2,64,2,2)
    #   -> (2,32,2,2) -> (2,32,4,4) -> (2,2,6,6) -> softmax(dim=2) -> (2,2,6,6)
    assert out.shape == (2, 2, 6, 6), out.shape
    # softmax over dim=2 sums to 1 (numerator/denominator share bf16 values).
    assert bool(jnp.allclose(jnp.sum(out, axis=2), 1.0, atol=1e-4))

    # Cross-check against the f32 XLA reference; kernel uses bf16 MXU operands
    # with f32 accumulation, so allow bf16-level deviation.
    ref = jax.block_until_ready(jax.jit(d_reference)(x, params))
    err = float(jnp.max(jnp.abs(out - ref)))
    assert err < 1e-2, err

    print("KERNEL_OK")
</pallas_src>

<mosaic_0001>
module attributes {stable_mosaic.version = 11 : i64} {
  func.func @_d_fused_kernel(%arg0: i32, %arg1: memref<1x64x9xf32, #tpu.memory_space<vmem>>, %arg2: memref<9x128xbf16, #tpu.memory_space<vmem>>, %arg3: memref<1x128xf32, #tpu.memory_space<vmem>>, %arg4: memref<9x16x64xbf16, #tpu.memory_space<vmem>>, %arg5: memref<128x1152xbf16, #tpu.memory_space<vmem>>, %arg6: memref<1x128xf32, #tpu.memory_space<vmem>>, %arg7: memref<9x4x16xbf16, #tpu.memory_space<vmem>>, %arg8: memref<9x4x4xbf16, #tpu.memory_space<vmem>>, %arg9: memref<128x1152xbf16, #tpu.memory_space<vmem>>, %arg10: memref<1x128xf32, #tpu.memory_space<vmem>>, %arg11: memref<16x4xbf16, #tpu.memory_space<vmem>>, %arg12: memref<128x128xbf16, #tpu.memory_space<vmem>>, %arg13: memref<1x128xf32, #tpu.memory_space<vmem>>, %arg14: memref<36x16xbf16, #tpu.memory_space<vmem>>, %arg15: memref<128x128xbf16, #tpu.memory_space<vmem>>, %arg16: memref<1x128xf32, #tpu.memory_space<vmem>>, %arg17: memref<6x36x36xbf16, #tpu.memory_space<vmem>>, %arg18: memref<36x36xbf16, #tpu.memory_space<vmem>>, %arg19: memref<1x36x128xf32, #tpu.memory_space<vmem>>) attributes {dimension_semantics = [#tpu.dimension_semantics<parallel>], iteration_bounds = array<i64: 2>, scalar_prefetch = 0 : i64, scratch_operands = 0 : i64, tpu.core_type = #tpu.core_type<tc>, window_params = [{transform_indices = @transform_0, window_bounds = array<i64: 1, 64, 9>}, {pipeline_mode = #tpu.pipeline_mode<synchronous>, transform_indices = @transform_1, window_bounds = array<i64: 9, 128>}, {pipeline_mode = #tpu.pipeline_mode<synchronous>, transform_indices = @transform_2, window_bounds = array<i64: 1, 128>}, {pipeline_mode = #tpu.pipeline_mode<synchronous>, transform_indices = @transform_3, window_bounds = array<i64: 9, 16, 64>}, {pipeline_mode = #tpu.pipeline_mode<synchronous>, transform_indices = @transform_4, window_bounds = array<i64: 128, 1152>}, {pipeline_mode = #tpu.pipeline_mode<synchronous>, transform_indices = @transform_5, window_bounds = array<i64: 1, 128>}, {pipeline_mode = #tpu.pipeline_mode<synchronous>, transform_indices = @transform_6, window_bounds = array<i64: 9, 4, 16>}, {pipeline_mode = #tpu.pipeline_mode<synchronous>, transform_indices = @transform_7, window_bounds = array<i64: 9, 4, 4>}, {pipeline_mode = #tpu.pipeline_mode<synchronous>, transform_indices = @transform_8, window_bounds = array<i64: 128, 1152>}, {pipeline_mode = #tpu.pipeline_mode<synchronous>, transform_indices = @transform_9, window_bounds = array<i64: 1, 128>}, {pipeline_mode = #tpu.pipeline_mode<synchronous>, transform_indices = @transform_10, window_bounds = array<i64: 16, 4>}, {pipeline_mode = #tpu.pipeline_mode<synchronous>, transform_indices = @transform_11, window_bounds = array<i64: 128, 128>}, {pipeline_mode = #tpu.pipeline_mode<synchronous>, transform_indices = @transform_12, window_bounds = array<i64: 1, 128>}, {pipeline_mode = #tpu.pipeline_mode<synchronous>, transform_indices = @transform_13, window_bounds = array<i64: 36, 16>}, {pipeline_mode = #tpu.pipeline_mode<synchronous>, transform_indices = @transform_14, window_bounds = array<i64: 128, 128>}, {pipeline_mode = #tpu.pipeline_mode<synchronous>, transform_indices = @transform_15, window_bounds = array<i64: 1, 128>}, {pipeline_mode = #tpu.pipeline_mode<synchronous>, transform_indices = @transform_16, window_bounds = array<i64: 6, 36, 36>}, {pipeline_mode = #tpu.pipeline_mode<synchronous>, transform_indices = @transform_17, window_bounds = array<i64: 36, 36>}, {transform_indices = @transform_18, window_bounds = array<i64: 1, 36, 128>}]} {
    %c0 = arith.constant 0 : index
    %c0_0 = arith.constant 0 : index
    %c0_1 = arith.constant 0 : index
    %0 = vector.load %arg1[%c0, %c0_0, %c0_1] : memref<1x64x9xf32, #tpu.memory_space<vmem>>, vector<1x64x9xf32>
    %1 = vector.shape_cast %0 : vector<1x64x9xf32> to vector<64x9xf32>
    %2 = arith.truncf %1 : vector<64x9xf32> to vector<64x9xbf16>
    %c0_2 = arith.constant 0 : index
    %c0_3 = arith.constant 0 : index
    %3 = vector.load %arg2[%c0_2, %c0_3] : memref<9x128xbf16, #tpu.memory_space<vmem>>, vector<9x128xbf16>
    %cst = arith.constant dense<0.000000e+00> : vector<64x128xf32>
    %4 = tpu.matmul %2, %3, %cst {dimension_numbers = #tpu.dot_dimension_numbers<[1], [0], [0], [1], [0, 0, 1, 1], [], []>} : vector<64x9xbf16>, vector<9x128xbf16>, vector<64x128xf32> -> vector<64x128xf32>
    %c0_4 = arith.constant 0 : index
    %c0_5 = arith.constant 0 : index
    %5 = vector.load %arg3[%c0_4, %c0_5] : memref<1x128xf32, #tpu.memory_space<vmem>>, vector<1x128xf32>
    %6 = vector.broadcast %5 : vector<1x128xf32> to vector<64x128xf32>
    %7 = arith.addf %4, %6 : vector<64x128xf32>
    %8 = arith.truncf %7 : vector<64x128xf32> to vector<64x128xbf16>
    %c0_6 = arith.constant 0 : index
    %c0_7 = arith.constant 0 : index
    %9 = vector.load %arg5[%c0_6, %c0_7] : memref<128x1152xbf16, #tpu.memory_space<vmem>>, vector<128x1152xbf16>
    %cst_8 = arith.constant dense<0.000000e+00> : vector<64x1152xf32>
    %10 = tpu.matmul %8, %9, %cst_8 {dimension_numbers = #tpu.dot_dimension_numbers<[1], [0], [0], [1], [0, 0, 1, 1], [], []>} : vector<64x128xbf16>, vector<128x1152xbf16>, vector<64x1152xf32> -> vector<64x1152xf32>
    %11 = arith.truncf %10 : vector<64x1152xf32> to vector<64x1152xbf16>
    %c0_9 = arith.constant 0 : index
    %c0_10 = arith.constant 0 : index
    %c0_11 = arith.constant 0 : index
    %12 = vector.load %arg4[%c0_9, %c0_10, %c0_11] : memref<9x16x64xbf16, #tpu.memory_space<vmem>>, vector<1x16x64xbf16>
    %13 = vector.shape_cast %12 : vector<1x16x64xbf16> to vector<16x64xbf16>
    %14 = vector.extract_strided_slice %11 {offsets = [0, 0], sizes = [64, 128], strides = [1, 1]} : vector<64x1152xbf16> to vector<64x128xbf16>
    %cst_12 = arith.constant dense<0.000000e+00> : vector<16x128xf32>
    %15 = tpu.matmul %13, %14, %cst_12 {dimension_numbers = #tpu.dot_dimension_numbers<[1], [0], [0], [1], [0, 0, 1, 1], [], []>} : vector<16x64xbf16>, vector<64x128xbf16>, vector<16x128xf32> -> vector<16x128xf32>
    %c1 = arith.constant 1 : index
    %c0_13 = arith.constant 0 : index
    %c0_14 = arith.constant 0 : index
    %16 = vector.load %arg4[%c1, %c0_13, %c0_14] : memref<9x16x64xbf16, #tpu.memory_space<vmem>>, vector<1x16x64xbf16>
    %17 = vector.shape_cast %16 : vector<1x16x64xbf16> to vector<16x64xbf16>
    %18 = vector.extract_strided_slice %11 {offsets = [0, 128], sizes = [64, 128], strides = [1, 1]} : vector<64x1152xbf16> to vector<64x128xbf16>
    %cst_15 = arith.constant dense<0.000000e+00> : vector<16x128xf32>
    %19 = tpu.matmul %17, %18, %cst_15 {dimension_numbers = #tpu.dot_dimension_numbers<[1], [0], [0], [1], [0, 0, 1, 1], [], []>} : vector<16x64xbf16>, vector<64x128xbf16>, vector<16x128xf32> -> vector<16x128xf32>
    %c2 = arith.constant 2 : index
    %c0_16 = arith.constant 0 : index
    %c0_17 = arith.constant 0 : index
    %20 = vector.load %arg4[%c2, %c0_16, %c0_17] : memref<9x16x64xbf16, #tpu.memory_space<vmem>>, vector<1x16x64xbf16>
    %21 = vector.shape_cast %20 : vector<1x16x64xbf16> to vector<16x64xbf16>
    %22 = vector.extract_strided_slice %11 {offsets = [0, 256], sizes = [64, 128], strides = [1, 1]} : vector<64x1152xbf16> to vector<64x128xbf16>
    %cst_18 = arith.constant dense<0.000000e+00> : vector<16x128xf32>
    %23 = tpu.matmul %21, %22, %cst_18 {dimension_numbers = #tpu.dot_dimension_numbers<[1], [0], [0], [1], [0, 0, 1, 1], [], []>} : vector<16x64xbf16>, vector<64x128xbf16>, vector<16x128xf32> -> vector<16x128xf32>
    %c3 = arith.constant 3 : index
    %c0_19 = arith.constant 0 : index
    %c0_20 = arith.constant 0 : index
    %24 = vector.load %arg4[%c3, %c0_19, %c0_20] : memref<9x16x64xbf16, #tpu.memory_space<vmem>>, vector<1x16x64xbf16>
    %25 = vector.shape_cast %24 : vector<1x16x64xbf16> to vector<16x64xbf16>
    %26 = vector.extract_strided_slice %11 {offsets = [0, 384], sizes = [64, 128], strides = [1, 1]} : vector<64x1152xbf16> to vector<64x128xbf16>
    %cst_21 = arith.constant dense<0.000000e+00> : vector<16x128xf32>
    %27 = tpu.matmul %25, %26, %cst_21 {dimension_numbers = #tpu.dot_dimension_numbers<[1], [0], [0], [1], [0, 0, 1, 1], [], []>} : vector<16x64xbf16>, vector<64x128xbf16>, vector<16x128xf32> -> vector<16x128xf32>
    %c4 = arith.constant 4 : index
    %c0_22 = arith.constant 0 : index
    %c0_23 = arith.constant 0 : index
    %28 = vector.load %arg4[%c4, %c0_22, %c0_23] : memref<9x16x64xbf16, #tpu.memory_space<vmem>>, vector<1x16x64xbf16>
    %29 = vector.shape_cast %28 : vector<1x16x64xbf16> to vector<16x64xbf16>
    %30 = vector.extract_strided_slice %11 {offsets = [0, 512], sizes = [64, 128], strides = [1, 1]} : vector<64x1152xbf16> to vector<64x128xbf16>
    %cst_24 = arith.constant dense<0.000000e+00> : vector<16x128xf32>
    %31 = tpu.matmul %29, %30, %cst_24 {dimension_numbers = #tpu.dot_dimension_numbers<[1], [0], [0], [1], [0, 0, 1, 1], [], []>} : vector<16x64xbf16>, vector<64x128xbf16>, vector<16x128xf32> -> vector<16x128xf32>
    %c5 = arith.constant 5 : index
    %c0_25 = arith.constant 0 : index
    %c0_26 = arith.constant 0 : index
    %32 = vector.load %arg4[%c5, %c0_25, %c0_26] : memref<9x16x64xbf16, #tpu.memory_space<vmem>>, vector<1x16x64xbf16>
    %33 = vector.shape_cast %32 : vector<1x16x64xbf16> to vector<16x64xbf16>
    %34 = vector.extract_strided_slice %11 {offsets = [0, 640], sizes = [64, 128], strides = [1, 1]} : vector<64x1152xbf16> to vector<64x128xbf16>
    %cst_27 = arith.constant dense<0.000000e+00> : vector<16x128xf32>
    %35 = tpu.matmul %33, %34, %cst_27 {dimension_numbers = #tpu.dot_dimension_numbers<[1], [0], [0], [1], [0, 0, 1, 1], [], []>} : vector<16x64xbf16>, vector<64x128xbf16>, vector<16x128xf32> -> vector<16x128xf32>
    %c6 = arith.constant 6 : index
    %c0_28 = arith.constant 0 : index
    %c0_29 = arith.constant 0 : index
    %36 = vector.load %arg4[%c6, %c0_28, %c0_29] : memref<9x16x64xbf16, #tpu.memory_space<vmem>>, vector<1x16x64xbf16>
    %37 = vector.shape_cast %36 : vector<1x16x64xbf16> to vector<16x64xbf16>
    %38 = vector.extract_strided_slice %11 {offsets = [0, 768], sizes = [64, 128], strides = [1, 1]} : vector<64x1152xbf16> to vector<64x128xbf16>
    %cst_30 = arith.constant dense<0.000000e+00> : vector<16x128xf32>
    %39 = tpu.matmul %37, %38, %cst_30 {dimension_numbers = #tpu.dot_dimension_numbers<[1], [0], [0], [1], [0, 0, 1, 1], [], []>} : vector<16x64xbf16>, vector<64x128xbf16>, vector<16x128xf32> -> vector<16x128xf32>
    %c7 = arith.constant 7 : index
    %c0_31 = arith.constant 0 : index
    %c0_32 = arith.constant 0 : index
    %40 = vector.load %arg4[%c7, %c0_31, %c0_32] : memref<9x16x64xbf16, #tpu.memory_space<vmem>>, vector<1x16x64xbf16>
    %41 = vector.shape_cast %40 : vector<1x16x64xbf16> to vector<16x64xbf16>
    %42 = vector.extract_strided_slice %11 {offsets = [0, 896], sizes = [64, 128], strides = [1, 1]} : vector<64x1152xbf16> to vector<64x128xbf16>
    %cst_33 = arith.constant dense<0.000000e+00> : vector<16x128xf32>
    %43 = tpu.matmul %41, %42, %cst_33 {dimension_numbers = #tpu.dot_dimension_numbers<[1], [0], [0], [1], [0, 0, 1, 1], [], []>} : vector<16x64xbf16>, vector<64x128xbf16>, vector<16x128xf32> -> vector<16x128xf32>
    %c8 = arith.constant 8 : index
    %c0_34 = arith.constant 0 : index
    %c0_35 = arith.constant 0 : index
    %44 = vector.load %arg4[%c8, %c0_34, %c0_35] : memref<9x16x64xbf16, #tpu.memory_space<vmem>>, vector<1x16x64xbf16>
    %45 = vector.shape_cast %44 : vector<1x16x64xbf16> to vector<16x64xbf16>
    %46 = vector.extract_strided_slice %11 {offsets = [0, 1024], sizes = [64, 128], strides = [1, 1]} : vector<64x1152xbf16> to vector<64x128xbf16>
    %cst_36 = arith.constant dense<0.000000e+00> : vector<16x128xf32>
    %47 = tpu.matmul %45, %46, %cst_36 {dimension_numbers = #tpu.dot_dimension_numbers<[1], [0], [0], [1], [0, 0, 1, 1], [], []>} : vector<16x64xbf16>, vector<64x128xbf16>, vector<16x128xf32> -> vector<16x128xf32>
    %48 = arith.addf %15, %19 : vector<16x128xf32>
    %49 = arith.addf %23, %27 : vector<16x128xf32>
    %50 = arith.addf %31, %35 : vector<16x128xf32>
    %51 = arith.addf %39, %43 : vector<16x128xf32>
    %52 = arith.addf %48, %49 : vector<16x128xf32>
    %53 = arith.addf %50, %51 : vector<16x128xf32>
    %54 = arith.addf %52, %53 : vector<16x128xf32>
    %55 = arith.addf %54, %47 : vector<16x128xf32>
    %c0_37 = arith.constant 0 : index
    %c0_38 = arith.constant 0 : index
    %56 = vector.load %arg6[%c0_37, %c0_38] : memref<1x128xf32, #tpu.memory_space<vmem>>, vector<1x128xf32>
    %57 = vector.broadcast %56 : vector<1x128xf32> to vector<16x128xf32>
    %58 = arith.addf %55, %57 : vector<16x128xf32>
    %59 = arith.truncf %58 : vector<16x128xf32> to vector<16x128xbf16>
    %c0_39 = arith.constant 0 : index
    %c0_40 = arith.constant 0 : index
    %c0_41 = arith.constant 0 : index
    %60 = vector.load %arg7[%c0_39, %c0_40, %c0_41] : memref<9x4x16xbf16, #tpu.memory_space<vmem>>, vector<1x4x16xbf16>
    %61 = vector.shape_cast %60 : vector<1x4x16xbf16> to vector<4x16xbf16>
    %cst_42 = arith.constant dense<0.000000e+00> : vector<4x128xf32>
    %62 = tpu.matmul %61, %59, %cst_42 {dimension_numbers = #tpu.dot_dimension_numbers<[1], [0], [0], [1], [0, 0, 1, 1], [], []>} : vector<4x16xbf16>, vector<16x128xbf16>, vector<4x128xf32> -> vector<4x128xf32>
    %c1_43 = arith.constant 1 : index
    %c0_44 = arith.constant 0 : index
    %c0_45 = arith.constant 0 : index
    %63 = vector.load %arg7[%c1_43, %c0_44, %c0_45] : memref<9x4x16xbf16, #tpu.memory_space<vmem>>, vector<1x4x16xbf16>
    %64 = vector.shape_cast %63 : vector<1x4x16xbf16> to vector<4x16xbf16>
    %cst_46 = arith.constant dense<0.000000e+00> : vector<4x128xf32>
    %65 = tpu.matmul %64, %59, %cst_46 {dimension_numbers = #tpu.dot_dimension_numbers<[1], [0], [0], [1], [0, 0, 1, 1], [], []>} : vector<4x16xbf16>, vector<16x128xbf16>, vector<4x128xf32> -> vector<4x128xf32>
    %c2_47 = arith.constant 2 : index
    %c0_48 = arith.constant 0 : index
    %c0_49 = arith.constant 0 : index
    %66 = vector.load %arg7[%c2_47, %c0_48, %c0_49] : memref<9x4x16xbf16, #tpu.memory_space<vmem>>, vector<1x4x16xbf16>
    %67 = vector.shape_cast %66 : vector<1x4x16xbf16> to vector<4x16xbf16>
    %cst_50 = arith.constant dense<0.000000e+00> : vector<4x128xf32>
    %68 = tpu.matmul %67, %59, %cst_50 {dimension_numbers = #tpu.dot_dimension_numbers<[1], [0], [0], [1], [0, 0, 1, 1], [], []>} : vector<4x16xbf16>, vector<16x128xbf16>, vector<4x128xf32> -> vector<4x128xf32>
    %c3_51 = arith.constant 3 : index
    %c0_52 = arith.constant 0 : index
    %c0_53 = arith.constant 0 : index
    %69 = vector.load %arg7[%c3_51, %c0_52, %c0_53] : memref<9x4x16xbf16, #tpu.memory_space<vmem>>, vector<1x4x16xbf16>
    %70 = vector.shape_cast %69 : vector<1x4x16xbf16> to vector<4x16xbf16>
    %cst_54 = arith.constant dense<0.000000e+00> : vector<4x128xf32>
    %71 = tpu.matmul %70, %59, %cst_54 {dimension_numbers = #tpu.dot_dimension_numbers<[1], [0], [0], [1], [0, 0, 1, 1], [], []>} : vector<4x16xbf16>, vector<16x128xbf16>, vector<4x128xf32> -> vector<4x128xf32>
    %c4_55 = arith.constant 4 : index
    %c0_56 = arith.constant 0 : index
    %c0_57 = arith.constant 0 : index
    %72 = vector.load %arg7[%c4_55, %c0_56, %c0_57] : memref<9x4x16xbf16, #tpu.memory_space<vmem>>, vector<1x4x16xbf16>
    %73 = vector.shape_cast %72 : vector<1x4x16xbf16> to vector<4x16xbf16>
    %cst_58 = arith.constant dense<0.000000e+00> : vector<4x128xf32>
    %74 = tpu.matmul %73, %59, %cst_58 {dimension_numbers = #tpu.dot_dimension_numbers<[1], [0], [0], [1], [0, 0, 1, 1], [], []>} : vector<4x16xbf16>, vector<16x128xbf16>, vector<4x128xf32> -> vector<4x128xf32>
    %c5_59 = arith.constant 5 : index
    %c0_60 = arith.constant 0 : index
    %c0_61 = arith.constant 0 : index
    %75 = vector.load %arg7[%c5_59, %c0_60, %c0_61] : memref<9x4x16xbf16, #tpu.memory_space<vmem>>, vector<1x4x16xbf16>
    %76 = vector.shape_cast %75 : vector<1x4x16xbf16> to vector<4x16xbf16>
    %cst_62 = arith.constant dense<0.000000e+00> : vector<4x128xf32>
    %77 = tpu.matmul %76, %59, %cst_62 {dimension_numbers = #tpu.dot_dimension_numbers<[1], [0], [0], [1], [0, 0, 1, 1], [], []>} : vector<4x16xbf16>, vector<16x128xbf16>, vector<4x128xf32> -> vector<4x128xf32>
    %c6_63 = arith.constant 6 : index
    %c0_64 = arith.constant 0 : index
    %c0_65 = arith.constant 0 : index
    %78 = vector.load %arg7[%c6_63, %c0_64, %c0_65] : memref<9x4x16xbf16, #tpu.memory_space<vmem>>, vector<1x4x16xbf16>
    %79 = vector.shape_cast %78 : vector<1x4x16xbf16> to vector<4x16xbf16>
    %cst_66 = arith.constant dense<0.000000e+00> : vector<4x128xf32>
    %80 = tpu.matmul %79, %59, %cst_66 {dimension_numbers = #tpu.dot_dimension_numbers<[1], [0], [0], [1], [0, 0, 1, 1], [], []>} : vector<4x16xbf16>, vector<16x128xbf16>, vector<4x128xf32> -> vector<4x128xf32>
    %c7_67 = arith.constant 7 : index
    %c0_68 = arith.constant 0 : index
    %c0_69 = arith.constant 0 : index
    %81 = vector.load %arg7[%c7_67, %c0_68, %c0_69] : memref<9x4x16xbf16, #tpu.memory_space<vmem>>, vector<1x4x16xbf16>
    %82 = vector.shape_cast %81 : vector<1x4x16xbf16> to vector<4x16xbf16>
    %cst_70 = arith.constant dense<0.000000e+00> : vector<4x128xf32>
    %83 = tpu.matmul %82, %59, %cst_70 {dimension_numbers = #tpu.dot_dimension_numbers<[1], [0], [0], [1], [0, 0, 1, 1], [], []>} : vector<4x16xbf16>, vector<16x128xbf16>, vector<4x128xf32> -> vector<4x128xf32>
    %c8_71 = arith.constant 8 : index
    %c0_72 = arith.constant 0 : index
    %c0_73 = arith.constant 0 : index
    %84 = vector.load %arg7[%c8_71, %c0_72, %c0_73] : memref<9x4x16xbf16, #tpu.memory_space<vmem>>, vector<1x4x16xbf16>
    %85 = vector.shape_cast %84 : vector<1x4x16xbf16> to vector<4x16xbf16>
    %cst_74 = arith.constant dense<0.000000e+00> : vector<4x128xf32>
    %86 = tpu.matmul %85, %59, %cst_74 {dimension_numbers = #tpu.dot_dimension_numbers<[1], [0], [0], [1], [0, 0, 1, 1], [], []>} : vector<4x16xbf16>, vector<16x128xbf16>, vector<4x128xf32> -> vector<4x128xf32>
    %87 = arith.maximumf %62, %65 : vector<4x128xf32>
    %88 = arith.maximumf %68, %71 : vector<4x128xf32>
    %89 = arith.maximumf %74, %77 : vector<4x128xf32>
    %90 = arith.maximumf %80, %83 : vector<4x128xf32>
    %91 = arith.maximumf %87, %88 : vector<4x128xf32>
    %92 = arith.maximumf %89, %90 : vector<4x128xf32>
    %93 = arith.maximumf %91, %92 : vector<4x128xf32>
    %94 = arith.maximumf %93, %86 : vector<4x128xf32>
    %95 = arith.truncf %94 : vector<4x128xf32> to vector<4x128xbf16>
    %c0_75 = arith.constant 0 : index
    %c0_76 = arith.constant 0 : index
    %96 = vector.load %arg9[%c0_75, %c0_76] : memref<128x1152xbf16, #tpu.memory_space<vmem>>, vector<128x1152xbf16>
    %cst_77 = arith.constant dense<0.000000e+00> : vector<4x1152xf32>
    %97 = tpu.matmul %95, %96, %cst_77 {dimension_numbers = #tpu.dot_dimension_numbers<[1], [0], [0], [1], [0, 0, 1, 1], [], []>} : vector<4x128xbf16>, vector<128x1152xbf16>, vector<4x1152xf32> -> vector<4x1152xf32>
    %98 = arith.truncf %97 : vector<4x1152xf32> to vector<4x1152xbf16>
    %c0_78 = arith.constant 0 : index
    %c0_79 = arith.constant 0 : index
    %c0_80 = arith.constant 0 : index
    %99 = vector.load %arg8[%c0_78, %c0_79, %c0_80] : memref<9x4x4xbf16, #tpu.memory_space<vmem>>, vector<1x4x4xbf16>
    %100 = vector.shape_cast %99 : vector<1x4x4xbf16> to vector<4x4xbf16>
    %101 = vector.extract_strided_slice %98 {offsets = [0, 0], sizes = [4, 128], strides = [1, 1]} : vector<4x1152xbf16> to vector<4x128xbf16>
    %cst_81 = arith.constant dense<0.000000e+00> : vector<4x128xf32>
    %102 = tpu.matmul %100, %101, %cst_81 {dimension_numbers = #tpu.dot_dimension_numbers<[1], [0], [0], [1], [0, 0, 1, 1], [], []>} : vector<4x4xbf16>, vector<4x128xbf16>, vector<4x128xf32> -> vector<4x128xf32>
    %c1_82 = arith.constant 1 : index
    %c0_83 = arith.constant 0 : index
    %c0_84 = arith.constant 0 : index
    %103 = vector.load %arg8[%c1_82, %c0_83, %c0_84] : memref<9x4x4xbf16, #tpu.memory_space<vmem>>, vector<1x4x4xbf16>
    %104 = vector.shape_cast %103 : vector<1x4x4xbf16> to vector<4x4xbf16>
    %105 = vector.extract_strided_slice %98 {offsets = [0, 128], sizes = [4, 128], strides = [1, 1]} : vector<4x1152xbf16> to vector<4x128xbf16>
    %cst_85 = arith.constant dense<0.000000e+00> : vector<4x128xf32>
    %106 = tpu.matmul %104, %105, %cst_85 {dimension_numbers = #tpu.dot_dimension_numbers<[1], [0], [0], [1], [0, 0, 1, 1], [], []>} : vector<4x4xbf16>, vector<4x128xbf16>, vector<4x128xf32> -> vector<4x128xf32>
    %c2_86 = arith.constant 2 : index
    %c0_87 = arith.constant 0 : index
    %c0_88 = arith.constant 0 : index
    %107 = vector.load %arg8[%c2_86, %c0_87, %c0_88] : memref<9x4x4xbf16, #tpu.memory_space<vmem>>, vector<1x4x4xbf16>
    %108 = vector.shape_cast %107 : vector<1x4x4xbf16> to vector<4x4xbf16>
    %109 = vector.extract_strided_slice %98 {offsets = [0, 256], sizes = [4, 128], strides = [1, 1]} : vector<4x1152xbf16> to vector<4x128xbf16>
    %cst_89 = arith.constant dense<0.000000e+00> : vector<4x128xf32>
    %110 = tpu.matmul %108, %109, %cst_89 {dimension_numbers = #tpu.dot_dimension_numbers<[1], [0], [0], [1], [0, 0, 1, 1], [], []>} : vector<4x4xbf16>, vector<4x128xbf16>, vector<4x128xf32> -> vector<4x128xf32>
    %c3_90 = arith.constant 3 : index
    %c0_91 = arith.constant 0 : index
    %c0_92 = arith.constant 0 : index
    %111 = vector.load %arg8[%c3_90, %c0_91, %c0_92] : memref<9x4x4xbf16, #tpu.memory_space<vmem>>, vector<1x4x4xbf16>
    %112 = vector.shape_cast %111 : vector<1x4x4xbf16> to vector<4x4xbf16>
    %113 = vector.extract_strided_slice %98 {offsets = [0, 384], sizes = [4, 128], strides = [1, 1]} : vector<4x1152xbf16> to vector<4x128xbf16>
    %cst_93 = arith.constant dense<0.000000e+00> : vector<4x128xf32>
    %114 = tpu.matmul %112, %113, %cst_93 {dimension_numbers = #tpu.dot_dimension_numbers<[1], [0], [0], [1], [0, 0, 1, 1], [], []>} : vector<4x4xbf16>, vector<4x128xbf16>, vector<4x128xf32> -> vector<4x128xf32>
    %c4_94 = arith.constant 4 : index
    %c0_95 = arith.constant 0 : index
    %c0_96 = arith.constant 0 : index
    %115 = vector.load %arg8[%c4_94, %c0_95, %c0_96] : memref<9x4x4xbf16, #tpu.memory_space<vmem>>, vector<1x4x4xbf16>
    %116 = vector.shape_cast %115 : vector<1x4x4xbf16> to vector<4x4xbf16>
    %117 = vector.extract_strided_slice %98 {offsets = [0, 512], sizes = [4, 128], strides = [1, 1]} : vector<4x1152xbf16> to vector<4x128xbf16>
    %cst_97 = arith.constant dense<0.000000e+00> : vector<4x128xf32>
    %118 = tpu.matmul %116, %117, %cst_97 {dimension_numbers = #tpu.dot_dimension_numbers<[1], [0], [0], [1], [0, 0, 1, 1], [], []>} : vector<4x4xbf16>, vector<4x128xbf16>, vector<4x128xf32> -> vector<4x128xf32>
    %c5_98 = arith.constant 5 : index
    %c0_99 = arith.constant 0 : index
    %c0_100 = arith.constant 0 : index
    %119 = vector.load %arg8[%c5_98, %c0_99, %c0_100] : memref<9x4x4xbf16, #tpu.memory_space<vmem>>, vector<1x4x4xbf16>
    %120 = vector.shape_cast %119 : vector<1x4x4xbf16> to vector<4x4xbf16>
    %121 = vector.extract_strided_slice %98 {offsets = [0, 640], sizes = [4, 128], strides = [1, 1]} : vector<4x1152xbf16> to vector<4x128xbf16>
    %cst_101 = arith.constant dense<0.000000e+00> : vector<4x128xf32>
    %122 = tpu.matmul %120, %121, %cst_101 {dimension_numbers = #tpu.dot_dimension_numbers<[1], [0], [0], [1], [0, 0, 1, 1], [], []>} : vector<4x4xbf16>, vector<4x128xbf16>, vector<4x128xf32> -> vector<4x128xf32>
    %c6_102 = arith.constant 6 : index
    %c0_103 = arith.constant 0 : index
    %c0_104 = arith.constant 0 : index
    %123 = vector.load %arg8[%c6_102, %c0_103, %c0_104] : memref<9x4x4xbf16, #tpu.memory_space<vmem>>, vector<1x4x4xbf16>
    %124 = vector.shape_cast %123 : vector<1x4x4xbf16> to vector<4x4xbf16>
    %125 = vector.extract_strided_slice %98 {offsets = [0, 768], sizes = [4, 128], strides = [1, 1]} : vector<4x1152xbf16> to vector<4x128xbf16>
    %cst_105 = arith.constant dense<0.000000e+00> : vector<4x128xf32>
    %126 = tpu.matmul %124, %125, %cst_105 {dimension_numbers = #tpu.dot_dimension_numbers<[1], [0], [0], [1], [0, 0, 1, 1], [], []>} : vector<4x4xbf16>, vector<4x128xbf16>, vector<4x128xf32> -> vector<4x128xf32>
    %c7_106 = arith.constant 7 : index
    %c0_107 = arith.constant 0 : index
    %c0_108 = arith.constant 0 : index
    %127 = vector.load %arg8[%c7_106, %c0_107, %c0_108] : memref<9x4x4xbf16, #tpu.memory_space<vmem>>, vector<1x4x4xbf16>
    %128 = vector.shape_cast %127 : vector<1x4x4xbf16> to vector<4x4xbf16>
    %129 = vector.extract_strided_slice %98 {offsets = [0, 896], sizes = [4, 128], strides = [1, 1]} : vector<4x1152xbf16> to vector<4x128xbf16>
    %cst_109 = arith.constant dense<0.000000e+00> : vector<4x128xf32>
    %130 = tpu.matmul %128, %129, %cst_109 {dimension_numbers = #tpu.dot_dimension_numbers<[1], [0], [0], [1], [0, 0, 1, 1], [], []>} : vector<4x4xbf16>, vector<4x128xbf16>, vector<4x128xf32> -> vector<4x128xf32>
    %c8_110 = arith.constant 8 : index
    %c0_111 = arith.constant 0 : index
    %c0_112 = arith.constant 0 : index
    %131 = vector.load %arg8[%c8_110, %c0_111, %c0_112] : memref<9x4x4xbf16, #tpu.memory_space<vmem>>, vector<1x4x4xbf16>
    %132 = vector.shape_cast %131 : vector<1x4x4xbf16> to vector<4x4xbf16>
    %133 = vector.extract_strided_slice %98 {offsets = [0, 1024], sizes = [4, 128], strides = [1, 1]} : vector<4x1152xbf16> to vector<4x128xbf16>
    %cst_113 = arith.constant dense<0.000000e+00> : vector<4x128xf32>
    %134 = tpu.matmul %132, %133, %cst_113 {dimension_numbers = #tpu.dot_dimension_numbers<[1], [0], [0], [1], [0, 0, 1, 1], [], []>} : vector<4x4xbf16>, vector<4x128xbf16>, vector<4x128xf32> -> vector<4x128xf32>
    %135 = arith.addf %102, %106 : vector<4x128xf32>
    %136 = arith.addf %110, %114 : vector<4x128xf32>
    %137 = arith.addf %118, %122 : vector<4x128xf32>
    %138 = arith.addf %126, %130 : vector<4x128xf32>
    %139 = arith.addf %135, %136 : vector<4x128xf32>
    %140 = arith.addf %137, %138 : vector<4x128xf32>
    %141 = arith.addf %139, %140 : vector<4x128xf32>
    %142 = arith.addf %141, %134 : vector<4x128xf32>
    %c0_114 = arith.constant 0 : index
    %c0_115 = arith.constant 0 : index
    %143 = vector.load %arg10[%c0_114, %c0_115] : memref<1x128xf32, #tpu.memory_space<vmem>>, vector<1x128xf32>
    %144 = vector.broadcast %143 : vector<1x128xf32> to vector<4x128xf32>
    %145 = arith.addf %142, %144 : vector<4x128xf32>
    %c0_116 = arith.constant 0 : index
    %c0_117 = arith.constant 0 : index
    %146 = vector.load %arg11[%c0_116, %c0_117] : memref<16x4xbf16, #tpu.memory_space<vmem>>, vector<16x4xbf16>
    %147 = arith.truncf %145 : vector<4x128xf32> to vector<4x128xbf16>
    %cst_118 = arith.constant dense<0.000000e+00> : vector<16x128xf32>
    %148 = tpu.matmul %146, %147, %cst_118 {dimension_numbers = #tpu.dot_dimension_numbers<[1], [0], [0], [1], [0, 0, 1, 1], [], []>} : vector<16x4xbf16>, vector<4x128xbf16>, vector<16x128xf32> -> vector<16x128xf32>
    %149 = arith.truncf %148 : vector<16x128xf32> to vector<16x128xbf16>
    %c0_119 = arith.constant 0 : index
    %c0_120 = arith.constant 0 : index
    %150 = vector.load %arg12[%c0_119, %c0_120] : memref<128x128xbf16, #tpu.memory_space<vmem>>, vector<128x128xbf16>
    %cst_121 = arith.constant dense<0.000000e+00> : vector<16x128xf32>
    %151 = tpu.matmul %149, %150, %cst_121 {dimension_numbers = #tpu.dot_dimension_numbers<[1], [0], [0], [1], [0, 0, 1, 1], [], []>} : vector<16x128xbf16>, vector<128x128xbf16>, vector<16x128xf32> -> vector<16x128xf32>
    %c0_122 = arith.constant 0 : index
    %c0_123 = arith.constant 0 : index
    %152 = vector.load %arg13[%c0_122, %c0_123] : memref<1x128xf32, #tpu.memory_space<vmem>>, vector<1x128xf32>
    %153 = vector.broadcast %152 : vector<1x128xf32> to vector<16x128xf32>
    %154 = arith.addf %151, %153 : vector<16x128xf32>
    %c0_124 = arith.constant 0 : index
    %c0_125 = arith.constant 0 : index
    %155 = vector.load %arg14[%c0_124, %c0_125] : memref<36x16xbf16, #tpu.memory_space<vmem>>, vector<36x16xbf16>
    %156 = arith.truncf %154 : vector<16x128xf32> to vector<16x128xbf16>
    %cst_126 = arith.constant dense<0.000000e+00> : vector<36x128xf32>
    %157 = tpu.matmul %155, %156, %cst_126 {dimension_numbers = #tpu.dot_dimension_numbers<[1], [0], [0], [1], [0, 0, 1, 1], [], []>} : vector<36x16xbf16>, vector<16x128xbf16>, vector<36x128xf32> -> vector<36x128xf32>
    %158 = arith.truncf %157 : vector<36x128xf32> to vector<36x128xbf16>
    %c0_127 = arith.constant 0 : index
    %c0_128 = arith.constant 0 : index
    %159 = vector.load %arg15[%c0_127, %c0_128] : memref<128x128xbf16, #tpu.memory_space<vmem>>, vector<128x128xbf16>
    %cst_129 = arith.constant dense<0.000000e+00> : vector<36x128xf32>
    %160 = tpu.matmul %158, %159, %cst_129 {dimension_numbers = #tpu.dot_dimension_numbers<[1], [0], [0], [1], [0, 0, 1, 1], [], []>} : vector<36x128xbf16>, vector<128x128xbf16>, vector<36x128xf32> -> vector<36x128xf32>
    %c0_130 = arith.constant 0 : index
    %c0_131 = arith.constant 0 : index
    %161 = vector.load %arg16[%c0_130, %c0_131] : memref<1x128xf32, #tpu.memory_space<vmem>>, vector<1x128xf32>
    %162 = vector.broadcast %161 : vector<1x128xf32> to vector<36x128xf32>
    %163 = arith.addf %160, %162 : vector<36x128xf32>
    %164 = arith.truncf %163 : vector<36x128xf32> to vector<36x128xbf16>
    %c0_132 = arith.constant 0 : index
    %c0_133 = arith.constant 0 : index
    %c0_134 = arith.constant 0 : index
    %165 = vector.load %arg17[%c0_132, %c0_133, %c0_134] : memref<6x36x36xbf16, #tpu.memory_space<vmem>>, vector<1x36x36xbf16>
    %166 = vector.shape_cast %165 : vector<1x36x36xbf16> to vector<36x36xbf16>
    %cst_135 = arith.constant dense<0.000000e+00> : vector<36x128xf32>
    %167 = tpu.matmul %166, %164, %cst_135 {dimension_numbers = #tpu.dot_dimension_numbers<[1], [0], [0], [1], [0, 0, 1, 1], [], []>} : vector<36x36xbf16>, vector<36x128xbf16>, vector<36x128xf32> -> vector<36x128xf32>
    %c1_136 = arith.constant 1 : index
    %c0_137 = arith.constant 0 : index
    %c0_138 = arith.constant 0 : index
    %168 = vector.load %arg17[%c1_136, %c0_137, %c0_138] : memref<6x36x36xbf16, #tpu.memory_space<vmem>>, vector<1x36x36xbf16>
    %169 = vector.shape_cast %168 : vector<1x36x36xbf16> to vector<36x36xbf16>
    %cst_139 = arith.constant dense<0.000000e+00> : vector<36x128xf32>
    %170 = tpu.matmul %169, %164, %cst_139 {dimension_numbers = #tpu.dot_dimension_numbers<[1], [0], [0], [1], [0, 0, 1, 1], [], []>} : vector<36x36xbf16>, vector<36x128xbf16>, vector<36x128xf32> -> vector<36x128xf32>
    %c2_140 = arith.constant 2 : index
    %c0_141 = arith.constant 0 : index
    %c0_142 = arith.constant 0 : index
    %171 = vector.load %arg17[%c2_140, %c0_141, %c0_142] : memref<6x36x36xbf16, #tpu.memory_space<vmem>>, vector<1x36x36xbf16>
    %172 = vector.shape_cast %171 : vector<1x36x36xbf16> to vector<36x36xbf16>
    %cst_143 = arith.constant dense<0.000000e+00> : vector<36x128xf32>
    %173 = tpu.matmul %172, %164, %cst_143 {dimension_numbers = #tpu.dot_dimension_numbers<[1], [0], [0], [1], [0, 0, 1, 1], [], []>} : vector<36x36xbf16>, vector<36x128xbf16>, vector<36x128xf32> -> vector<36x128xf32>
    %c3_144 = arith.constant 3 : index
    %c0_145 = arith.constant 0 : index
    %c0_146 = arith.constant 0 : index
    %174 = vector.load %arg17[%c3_144, %c0_145, %c0_146] : memref<6x36x36xbf16, #tpu.memory_space<vmem>>, vector<1x36x36xbf16>
    %175 = vector.shape_cast %174 : vector<1x36x36xbf16> to vector<36x36xbf16>
    %cst_147 = arith.constant dense<0.000000e+00> : vector<36x128xf32>
    %176 = tpu.matmul %175, %164, %cst_147 {dimension_numbers = #tpu.dot_dimension_numbers<[1], [0], [0], [1], [0, 0, 1, 1], [], []>} : vector<36x36xbf16>, vector<36x128xbf16>, vector<36x128xf32> -> vector<36x128xf32>
    %c4_148 = arith.constant 4 : index
    %c0_149 = arith.constant 0 : index
    %c0_150 = arith.constant 0 : index
    %177 = vector.load %arg17[%c4_148, %c0_149, %c0_150] : memref<6x36x36xbf16, #tpu.memory_space<vmem>>, vector<1x36x36xbf16>
    %178 = vector.shape_cast %177 : vector<1x36x36xbf16> to vector<36x36xbf16>
    %cst_151 = arith.constant dense<0.000000e+00> : vector<36x128xf32>
    %179 = tpu.matmul %178, %164, %cst_151 {dimension_numbers = #tpu.dot_dimension_numbers<[1], [0], [0], [1], [0, 0, 1, 1], [], []>} : vector<36x36xbf16>, vector<36x128xbf16>, vector<36x128xf32> -> vector<36x128xf32>
    %c5_152 = arith.constant 5 : index
    %c0_153 = arith.constant 0 : index
    %c0_154 = arith.constant 0 : index
    %180 = vector.load %arg17[%c5_152, %c0_153, %c0_154] : memref<6x36x36xbf16, #tpu.memory_space<vmem>>, vector<1x36x36xbf16>
    %181 = vector.shape_cast %180 : vector<1x36x36xbf16> to vector<36x36xbf16>
    %cst_155 = arith.constant dense<0.000000e+00> : vector<36x128xf32>
    %182 = tpu.matmul %181, %164, %cst_155 {dimension_numbers = #tpu.dot_dimension_numbers<[1], [0], [0], [1], [0, 0, 1, 1], [], []>} : vector<36x36xbf16>, vector<36x128xbf16>, vector<36x128xf32> -> vector<36x128xf32>
    %183 = arith.maximumf %167, %170 : vector<36x128xf32>
    %184 = arith.maximumf %173, %176 : vector<36x128xf32>
    %185 = arith.maximumf %179, %182 : vector<36x128xf32>
    %186 = arith.maximumf %183, %184 : vector<36x128xf32>
    %187 = arith.maximumf %186, %185 : vector<36x128xf32>
    %188 = arith.extf %164 : vector<36x128xbf16> to vector<36x128xf32>
    %189 = arith.subf %188, %187 : vector<36x128xf32>
    %190 = math.exp %189 : vector<36x128xf32>
    %191 = arith.truncf %190 : vector<36x128xf32> to vector<36x128xbf16>
    %c0_156 = arith.constant 0 : index
    %c0_157 = arith.constant 0 : index
    %192 = vector.load %arg18[%c0_156, %c0_157] : memref<36x36xbf16, #tpu.memory_space<vmem>>, vector<36x36xbf16>
    %cst_158 = arith.constant dense<0.000000e+00> : vector<36x128xf32>
    %193 = tpu.matmul %192, %191, %cst_158 {dimension_numbers = #tpu.dot_dimension_numbers<[1], [0], [0], [1], [0, 0, 1, 1], [], []>} : vector<36x36xbf16>, vector<36x128xbf16>, vector<36x128xf32> -> vector<36x128xf32>
    %194 = arith.extf %191 : vector<36x128xbf16> to vector<36x128xf32>
    %195 = arith.divf %194, %193 : vector<36x128xf32>
    %c0_159 = arith.constant 0 : index
    %c0_160 = arith.constant 0 : index
    %c0_161 = arith.constant 0 : index
    %196 = vector.load %arg19[%c0_159, %c0_160, %c0_161] : memref<1x36x128xf32, #tpu.memory_space<vmem>>, vector<1x36x128xf32>
    %197 = vector.shape_cast %196 : vector<1x36x128xf32> to vector<36x128xf32>
    %198 = vector.shape_cast %195 : vector<36x128xf32> to vector<1x36x128xf32>
    tpu.vector_store %arg19[%c0_159, %c0_160, %c0_161], %198 {strides = array<i32>} : memref<1x36x128xf32, #tpu.memory_space<vmem>>, vector<1x36x128xf32>,
    return
  }
  func.func @transform_0(%arg0: i32) -> (i32, i32, i32) {
    %c0_i32 = arith.constant 0 : i32
    %c0_i32_0 = arith.constant 0 : i32
    %c0_i32_1 = arith.constant 0 : i32
    return %arg0, %c0_i32, %c0_i32_0 : i32, i32, i32
  }
  func.func @transform_1(%arg0: i32) -> (i32, i32) {
    %c0_i32 = arith.constant 0 : i32
    %c0_i32_0 = arith.constant 0 : i32
    %c0_i32_1 = arith.constant 0 : i32
    return %c0_i32, %c0_i32_0 : i32, i32
  }
  func.func @transform_2(%arg0: i32) -> (i32, i32) {
    %c0_i32 = arith.constant 0 : i32
    %c0_i32_0 = arith.constant 0 : i32
    %c0_i32_1 = arith.constant 0 : i32
    return %c0_i32, %c0_i32_0 : i32, i32
  }
  func.func @transform_3(%arg0: i32) -> (i32, i32, i32) {
    %c0_i32 = arith.constant 0 : i32
    %c0_i32_0 = arith.constant 0 : i32
    %c0_i32_1 = arith.constant 0 : i32
    %c0_i32_2 = arith.constant 0 : i32
    return %c0_i32, %c0_i32_0, %c0_i32_1 : i32, i32, i32
  }
  func.func @transform_4(%arg0: i32) -> (i32, i32) {
    %c0_i32 = arith.constant 0 : i32
    %c0_i32_0 = arith.constant 0 : i32
    %c0_i32_1 = arith.constant 0 : i32
    return %c0_i32, %c0_i32_0 : i32, i32
  }
  func.func @transform_5(%arg0: i32) -> (i32, i32) {
    %c0_i32 = arith.constant 0 : i32
    %c0_i32_0 = arith.constant 0 : i32
    %c0_i32_1 = arith.constant 0 : i32
    return %c0_i32, %c0_i32_0 : i32, i32
  }
  func.func @transform_6(%arg0: i32) -> (i32, i32, i32) {
    %c0_i32 = arith.constant 0 : i32
    %c0_i32_0 = arith.constant 0 : i32
    %c0_i32_1 = arith.constant 0 : i32
    %c0_i32_2 = arith.constant 0 : i32
    return %c0_i32, %c0_i32_0, %c0_i32_1 : i32, i32, i32
  }
  func.func @transform_7(%arg0: i32) -> (i32, i32, i32) {
    %c0_i32 = arith.constant 0 : i32
    %c0_i32_0 = arith.constant 0 : i32
    %c0_i32_1 = arith.constant 0 : i32
    %c0_i32_2 = arith.constant 0 : i32
    return %c0_i32, %c0_i32_0, %c0_i32_1 : i32, i32, i32
  }
  func.func @transform_8(%arg0: i32) -> (i32, i32) {
    %c0_i32 = arith.constant 0 : i32
    %c0_i32_0 = arith.constant 0 : i32
    %c0_i32_1 = arith.constant 0 : i32
    return %c0_i32, %c0_i32_0 : i32, i32
  }
  func.func @transform_9(%arg0: i32) -> (i32, i32) {
    %c0_i32 = arith.constant 0 : i32
    %c0_i32_0 = arith.constant 0 : i32
    %c0_i32_1 = arith.constant 0 : i32
    return %c0_i32, %c0_i32_0 : i32, i32
  }
  func.func @transform_10(%arg0: i32) -> (i32, i32) {
    %c0_i32 = arith.constant 0 : i32
    %c0_i32_0 = arith.constant 0 : i32
    %c0_i32_1 = arith.constant 0 : i32
    return %c0_i32, %c0_i32_0 : i32, i32
  }
  func.func @transform_11(%arg0: i32) -> (i32, i32) {
    %c0_i32 = arith.constant 0 : i32
    %c0_i32_0 = arith.constant 0 : i32
    %c0_i32_1 = arith.constant 0 : i32
    return %c0_i32, %c0_i32_0 : i32, i32
  }
  func.func @transform_12(%arg0: i32) -> (i32, i32) {
    %c0_i32 = arith.constant 0 : i32
    %c0_i32_0 = arith.constant 0 : i32
    %c0_i32_1 = arith.constant 0 : i32
    return %c0_i32, %c0_i32_0 : i32, i32
  }
  func.func @transform_13(%arg0: i32) -> (i32, i32) {
    %c0_i32 = arith.constant 0 : i32
    %c0_i32_0 = arith.constant 0 : i32
    %c0_i32_1 = arith.constant 0 : i32
    return %c0_i32, %c0_i32_0 : i32, i32
  }
  func.func @transform_14(%arg0: i32) -> (i32, i32) {
    %c0_i32 = arith.constant 0 : i32
    %c0_i32_0 = arith.constant 0 : i32
    %c0_i32_1 = arith.constant 0 : i32
    return %c0_i32, %c0_i32_0 : i32, i32
  }
  func.func @transform_15(%arg0: i32) -> (i32, i32) {
    %c0_i32 = arith.constant 0 : i32
    %c0_i32_0 = arith.constant 0 : i32
    %c0_i32_1 = arith.constant 0 : i32
    return %c0_i32, %c0_i32_0 : i32, i32
  }
  func.func @transform_16(%arg0: i32) -> (i32, i32, i32) {
    %c0_i32 = arith.constant 0 : i32
    %c0_i32_0 = arith.constant 0 : i32
    %c0_i32_1 = arith.constant 0 : i32
    %c0_i32_2 = arith.constant 0 : i32
    return %c0_i32, %c0_i32_0, %c0_i32_1 : i32, i32, i32
  }
  func.func @transform_17(%arg0: i32) -> (i32, i32) {
    %c0_i32 = arith.constant 0 : i32
    %c0_i32_0 = arith.constant 0 : i32
    %c0_i32_1 = arith.constant 0 : i32
    return %c0_i32, %c0_i32_0 : i32, i32
  }
  func.func @transform_18(%arg0: i32) -> (i32, i32, i32) {
    %c0_i32 = arith.constant 0 : i32
    %c0_i32_0 = arith.constant 0 : i32
    %c0_i32_1 = arith.constant 0 : i32
    return %arg0, %c0_i32, %c0_i32_0 : i32, i32, i32
  }
}

</mosaic_0001>

<bundles_post_ra>
// kernel: d_forward.1
= control target key start
LH: loop header
LB: loop body
LE: loop exit
PB: predicated region body
PF: predicated region fallthrough
CT: control target
= control target key end

     0   :  { %s7746_s0 = inlined_call_operand.vmem [shape: f32[2,64,9], index: 0, kind: input, shape index: {}]   ;;  %s7747_s1 = inlined_call_operand.hbm [shape: bf16[9,128], index: 1, kind: input, shape index: {}]   ;;  %s7748_s2 = inlined_call_operand.hbm [shape: f32[1,128], index: 2, kind: input, shape index: {}]   ;;  %s7749_s3 = inlined_call_operand.vmem [shape: bf16[9,16,64], index: 3, kind: input, shape index: {}]   ;;  %s7750_s4 = inlined_call_operand.vmem [shape: bf16[128,1152], index: 4, kind: input, shape index: {}]   ;;  %s7751_s5 = inlined_call_operand.hbm [shape: f32[1,128], index: 5, kind: input, shape index: {}]   ;;  %s7752_s6 = inlined_call_operand.vmem [shape: bf16[9,4,16], index: 6, kind: input, shape index: {}]   ;;  %s7753_s7 = inlined_call_operand.vmem [shape: bf16[9,4,4], index: 7, kind: input, shape index: {}]   ;;  %s7754_s8 = inlined_call_operand.hbm [shape: bf16[128,1152], index: 8, kind: input, shape index: {}]   ;;  %s7755_s9 = inlined_call_operand.hbm [shape: f32[1,128], index: 9, kind: input, shape index: {}]   ;;  %s7756_s10 = inlined_call_operand.vmem [shape: bf16[16,4], index: 10, kind: input, shape index: {}]   ;;  %s7757_s11 = inlined_call_operand.hbm [shape: bf16[128,128], index: 11, kind: input, shape index: {}]   ;;  %s7758_s12 = inlined_call_operand.hbm [shape: f32[1,128], index: 12, kind: input, shape index: {}]   ;;  %s7759_s13 = inlined_call_operand.vmem [shape: bf16[36,16], index: 13, kind: input, shape index: {}]   ;;  %s7760_s14 = inlined_call_operand.hbm [shape: bf16[128,128], index: 14, kind: input, shape index: {}]   ;;  %s7761_s15 = inlined_call_operand.hbm [shape: f32[1,128], index: 15, kind: input, shape index: {}]   ;;  %s7762_s16 = inlined_call_operand.vmem [shape: bf16[6,36,36], index: 16, kind: input, shape index: {}]   ;;  %s7763_s17 = inlined_call_operand.vmem [shape: bf16[36,36], index: 17, kind: input, shape index: {}]   ;;  %s7764_s18 = inlined_call_operand.vmem [shape: f32[2,36,128], index: 18, kind: output, shape index: {}]  }
   0x1   :  { %7774 = sst [smem:[#allocation22_spill]] %s7746_s0 }
   0x2   :  { %7775 = sst [smem:[#allocation23_spill]] %s7747_s1 }
   0x3   :  { %7776 = sst [smem:[#allocation24_spill]] %s7748_s2 }
   0x4   :  { %7777 = sst [smem:[#allocation25_spill]] %s7754_s8 }
   0x5   :  { %7778 = sst [smem:[#allocation26_spill]] %s7759_s13 }
   0x6   :  { %7779 = sst [smem:[#allocation27_spill]] %s7762_s16 }
   0x7   :  { %7780 = sst [smem:[#allocation28_spill]] %s7763_s17 }
   0x8   :  { %7781 = sst [smem:[#allocation29_spill]] %s7764_s18 }
   0x9   :  { %23 = vsyncpa [#allocation3], 0 }
   0xa   :  { %24 = vsyncpa [#allocation5], 0 }
   0xb   :  { %25 = vsyncpa [#allocation8], 0 }
   0xc   :  { %26 = vsyncpa [#allocation11], 0 }
   0xd   :  { %27 = vsyncpa [#allocation14], 0  ;;  %s6609_s27 = smov 0  }
   0xe LB: > { %7782 = sst [smem:[#allocation21_spill]] %s6495_s27  ;;  %s6497_s28 = smov [#allocation4]   ;;  %s6495_s27 = sphi %s6609_s27, %s33_s27  }
   0xf   : > { %s473_s29 = sshll.u32 %s6497_s28, 4  ;;  %s6615_s30 = sadd.s32 4294967295, %s6495_s27   ;;  %s474_s29 = int_to_ptr.vmem [resolvable:$true] %s473_s29 }
  0x10   : > { %p4851_p0 = scmp.ge.s32.totalorder %s6495_s27, 1  ;;  %p447_p1 = scmp.lt.s32.totalorder %s6495_s27, 3 }
  0x11   : > { %p7768_p2 = scmp.eq.s32.totalorder %s6615_s30, 0  ;;  %s6498_s19 = smov [#allocation7]  }
  0x12   : > { %p6620_p3 = pnand %p4851_p0, %p447_p1  ;;  %s506_s1 = sshll.u32 %s6498_s19, 4  ;;  %s6626_s1 = int_to_ptr.vmem [resolvable:$true] %s506_s1 }
  0x13   : > { %s6499_s21 = smov [#allocation10]   ;;  %s7785_s24 = sld [smem:[#allocation24_spill]] }
  0x14   : > { %s7783_s0 = scalar_select %p6620_p3, 1, 0 }
  0x15   : > { %p5867_p4 = pneg %p6620_p3  ;;  %s6634_s22 = sshll.u32 %s6499_s21, 4  ;;  %s534_s22 = int_to_ptr.vmem [resolvable:$true] %s6634_s22 }
  0x17   : > { %p6630_p5 = pnand %p7768_p2, %p5867_p4 }
  0x19   : > { %s6217_s25 = scalar_lea.hbm %s7785_s24, 16  ;;  %p6644_p7 = pneg %p6630_p5 }
  0x1a   : > { %p6218_p6 = scmp.ne.s32.totalorder %s7785_s24, %s6217_s25  ;;  %p6224_p10 = scmp.lt.u32.totalorder %s6217_s25, %s7785_s24 }
  0x1c   : > { %p6220_p8 = pnand %p6644_p7, %p6218_p6 }
  0x1e   : > { %p6221_p9 = pneg %p6220_p8 }
  0x20   : > { %p6226_p11 = pnand %p6224_p10, %p6221_p9 }
  0x22   : > { %6229 = shalt.err (!%p6226_p11)
}
  0x23   : > { %s6230_s2 = scalar_lea.vmem %s474_s29, 16  ;;  %s6237_s23 = scalar_lea.vmem %s474_s29, 32 }
  0x24   : > { %p6231_p12 = scmp.ne.s32.totalorder %s474_s29, %s6230_s2  ;;  %p6238_p1 = scmp.lt.s32.totalorder %s474_s29, %s474_s29 }
  0x25   : > { %p6239_p4 = scmp.lt.s32.totalorder %s6237_s23, %s6230_s2 }
  0x26   : > { %p6233_p13 = pnand %p6231_p12, %p6644_p7 }
  0x27   : > { %p6240_p2 = por %p6239_p4, %p6238_p1 }
  0x28   : > { %p6234_p0 = pneg %p6233_p13 }
  0x2a   : > { %p6241_p3 = pnand %p6240_p2, %p6234_p0 }
  0x2c   : > { %6244 = shalt.err (!%p6241_p3)
}
  0x2d   : > { %5873 = dma.hbm_to_vmem [thread:$0]  (!%p6630_p5), %s7785_s24, 16, %s474_s29, [#allocation5]  }
  0x2e   : > { %s7787_s8 = sld [smem:[#allocation25_spill]] }
  0x34   : > { %s6245_s21 = scalar_lea.hbm %s7787_s8, 9216 }
  0x35   : > { %p6246_p6 = scmp.ne.s32.totalorder %s7787_s8, %s6245_s21  ;;  %p6252_p2 = scmp.lt.u32.totalorder %s6245_s21, %s7787_s8 }
  0x37   : > { %p6248_p8 = pnand %p6246_p6, %p6644_p7 }
  0x39   : > { %p6249_p9 = pneg %p6248_p8 }
  0x3b   : > { %p6254_p3 = pnand %p6252_p2, %p6249_p9 }
  0x3d   : > { %6257 = shalt.err (!%p6254_p3)
}
  0x3e   : > { %s6258_s29 = scalar_lea.vmem %s6626_s1, 9216  ;;  %p6266_p13 = scmp.lt.s32.totalorder %s6626_s1, %s6626_s1 }
  0x3f   : > { %p6259_p10 = scmp.ne.s32.totalorder %s6626_s1, %s6258_s29  ;;  %p6267_p0 = scmp.lt.s32.totalorder %s6258_s29, %s6258_s29 }
  0x41   : > { %p6261_p11 = pnand %p6259_p10, %p6644_p7  ;;  %p6268_p1 = por %p6267_p0, %p6266_p13 }
  0x43   : > { %p6262_p12 = pneg %p6261_p11 }
  0x45   : > { %p6269_p4 = pnand %p6268_p1, %p6262_p12 }
  0x47   : > { %6272 = shalt.err (!%p6269_p4)
}
  0x48   : > { %s6500_s17 = smov 576   ;;  %s6501_s18 = smov 36  }
  0x49   : > { %5879 = dma.hbm_to_vmem [thread:$0]  (!%p6630_p5), %s7787_s8, 9216, %s6626_s1, [#allocation8], %s6500_s17, %s6500_s17, %s6501_s18  }
  0x4a   : > { %s6502_s27 = smov [#allocation13]   ;;  %s6273_s23 = scalar_lea.hbm %s7757_s11, 1024 }
  0x4b   : > { %s560_s25 = sshll.u32 %s6502_s27, 4  ;;  %p6274_p6 = scmp.ne.s32.totalorder %s7757_s11, %s6273_s23  ;;  %s561_s25 = int_to_ptr.vmem [resolvable:$true] %s560_s25 }
  0x4c   : > { %p6280_p2 = scmp.lt.u32.totalorder %s6273_s23, %s7757_s11 }
  0x4d   : > { %p6276_p8 = pnand %p6274_p6, %p6644_p7 }
  0x4f   : > { %p6277_p9 = pneg %p6276_p8 }
  0x51   : > { %p6282_p3 = pnand %p6280_p2, %p6277_p9 }
  0x53   : > { %6285 = shalt.err (!%p6282_p3)
}
  0x54   : > { %s6286_s1 = scalar_lea.vmem %s534_s22, 1024  ;;  %p6294_p13 = scmp.lt.s32.totalorder %s534_s22, %s534_s22 }
  0x55   : > { %p6287_p10 = scmp.ne.s32.totalorder %s534_s22, %s6286_s1  ;;  %p6295_p0 = scmp.lt.s32.totalorder %s6286_s1, %s6286_s1 }
  0x57   : > { %p6289_p11 = pnand %p6287_p10, %p6644_p7  ;;  %p6296_p1 = por %p6295_p0, %p6294_p13 }
  0x59   : > { %p6290_p12 = pneg %p6289_p11 }
  0x5b   : > { %p6297_p4 = pnand %p6296_p1, %p6290_p12 }
  0x5d   : > { %6300 = shalt.err (!%p6297_p4)
}
  0x5e   : > { %s6503_s24 = smov 64   ;;  %s6504_s17 = smov 4  }
  0x5f   : > { %5885 = dma.hbm_to_vmem [thread:$0]  (!%p6630_p5), %s7757_s11, 1024, %s534_s22, [#allocation11], %s6503_s24, %s6503_s24, %s6504_s17  }
  0x60   : > { %s6301_s28 = scalar_lea.hbm %s7760_s14, 1024 }
  0x61   : > { %p6302_p6 = scmp.ne.s32.totalorder %s7760_s14, %s6301_s28  ;;  %p6308_p2 = scmp.lt.u32.totalorder %s6301_s28, %s7760_s14 }
  0x63   : > { %p6304_p8 = pnand %p6302_p6, %p6644_p7 }
  0x65   : > { %p6305_p9 = pneg %p6304_p8 }
  0x67   : > { %p6310_p3 = pnand %p6308_p2, %p6305_p9 }
  0x69   : > { %6313 = shalt.err (!%p6310_p3)
}
  0x6a   : > { %s6314_s29 = scalar_lea.vmem %s561_s25, 1024  ;;  %p6322_p13 = scmp.lt.s32.totalorder %s561_s25, %s561_s25 }
  0x6b   : > { %p6315_p10 = scmp.ne.s32.totalorder %s561_s25, %s6314_s29  ;;  %p6323_p0 = scmp.lt.s32.totalorder %s6314_s29, %s6314_s29 }
  0x6d   : > { %p6317_p11 = pnand %p6315_p10, %p6644_p7  ;;  %p6324_p1 = por %p6323_p0, %p6322_p13 }
  0x6f   : > { %p6318_p12 = pneg %p6317_p11 }
  0x71   : > { %p6325_p4 = pnand %p6324_p1, %p6318_p12 }
  0x73   : > { %6328 = shalt.err (!%p6325_p4)
}
  0x74   : > { %5891 = dma.hbm_to_vmem [thread:$0]  (!%p6630_p5), %s7760_s14, 1024, %s561_s25, [#allocation14], %s6503_s24, %s6503_s24, %s6504_s17  }
  0x75   : > { %s6505_s13 = smov [#allocation2]   ;;  %s6506_s18 = smov [#allocation6]  }
  0x76   : > { %s459_s16 = sshll.u32 %s6505_s13, 4  ;;  %s490_s26 = sshll.u32 %s6506_s18, 4  ;;  %s460_s16 = int_to_ptr.vmem [resolvable:$true] %s459_s16  ;;  %s491_s26 = int_to_ptr.vmem [resolvable:$true] %s490_s26 }
  0x77   : > { %s7788_s21 = sld [smem:[#allocation23_spill]] }
  0x7d   : > { %s6329_s2 = scalar_lea.hbm %s7788_s21, 128 }
  0x7e   : > { %p6330_p6 = scmp.ne.s32.totalorder %s7788_s21, %s6329_s2  ;;  %p6336_p2 = scmp.lt.u32.totalorder %s6329_s2, %s7788_s21 }
  0x80   : > { %p6332_p8 = pnand %p6330_p6, %p6644_p7 }
  0x82   : > { %p6333_p9 = pneg %p6332_p8 }
  0x84   : > { %p6338_p3 = pnand %p6336_p2, %p6333_p9 }
  0x86   : > { %6341 = shalt.err (!%p6338_p3)
}
  0x87   : > { %s6342_s25 = scalar_lea.vmem %s460_s16, 128  ;;  %p6350_p13 = scmp.lt.s32.totalorder %s460_s16, %s460_s16 }
  0x88   : > { %p6343_p10 = scmp.ne.s32.totalorder %s460_s16, %s6342_s25  ;;  %p6351_p0 = scmp.lt.s32.totalorder %s6342_s25, %s6342_s25 }
  0x8a   : > { %p6345_p11 = pnand %p6343_p10, %p6644_p7  ;;  %p6352_p1 = por %p6351_p0, %p6350_p13 }
  0x8c   : > { %p6346_p12 = pneg %p6345_p11 }
  0x8e   : > { %p6353_p4 = pnand %p6352_p1, %p6346_p12 }
  0x90   : > { %6356 = shalt.err (!%p6353_p4)
}
  0x91   : > { %5870 = dma.hbm_to_vmem [thread:$0]  (!%p6630_p5), %s7788_s21, 128, %s460_s16, [#allocation3], %s6503_s24, %s6503_s24, %s6504_s17  }
  0x92   : > { %s6357_s28 = scalar_lea.hbm %s7751_s5, 16 }
  0x93   : > { %p6358_p6 = scmp.ne.s32.totalorder %s7751_s5, %s6357_s28  ;;  %p6364_p2 = scmp.lt.u32.totalorder %s6357_s28, %s7751_s5 }
  0x95   : > { %p6360_p8 = pnand %p6358_p6, %p6644_p7 }
  0x97   : > { %p6361_p9 = pneg %p6360_p8 }
  0x99   : > { %p6366_p3 = pnand %p6364_p2, %p6361_p9 }
  0x9b   : > { %6369 = shalt.err (!%p6366_p3)
}
  0x9c   : > { %s6370_s22 = scalar_lea.vmem %s491_s26, 16  ;;  %s6377_s24 = scalar_lea.vmem %s491_s26, 32 }
  0x9d   : > { %p6371_p10 = scmp.ne.s32.totalorder %s491_s26, %s6370_s22  ;;  %p6378_p13 = scmp.lt.s32.totalorder %s491_s26, %s491_s26 }
  0x9e   : > { %p6379_p0 = scmp.lt.s32.totalorder %s6377_s24, %s6370_s22 }
  0x9f   : > { %p6373_p11 = pnand %p6371_p10, %p6644_p7 }
  0xa0   : > { %p6380_p1 = por %p6379_p0, %p6378_p13 }
  0xa1   : > { %p6374_p12 = pneg %p6373_p11 }
  0xa3   : > { %p6381_p4 = pnand %p6380_p1, %p6374_p12 }
  0xa5   : > { %6384 = shalt.err (!%p6381_p4)
}
  0xa6   : > { %5876 = dma.hbm_to_vmem [thread:$0]  (!%p6630_p5), %s7751_s5, 16, %s491_s26, [#allocation5]  }
  0xa7   : > { %s6507_s25 = smov [#allocation9]   ;;  %s6508_s1 = smov [#allocation12]  }
  0xa8   : > { %s520_s8 = sshll.u32 %s6507_s25, 4  ;;  %s547_s13 = sshll.u32 %s6508_s1, 4  ;;  %s521_s8 = int_to_ptr.vmem [resolvable:$true] %s520_s8  ;;  %s548_s13 = int_to_ptr.vmem [resolvable:$true] %s547_s13 }
  0xa9   : > { %s6385_s27 = scalar_lea.hbm %s7755_s9, 16 }
  0xaa   : > { %p6386_p6 = scmp.ne.s32.totalorder %s7755_s9, %s6385_s27  ;;  %p6392_p2 = scmp.lt.u32.totalorder %s6385_s27, %s7755_s9 }
  0xac   : > { %p6388_p8 = pnand %p6386_p6, %p6644_p7 }
  0xae   : > { %p6389_p9 = pneg %p6388_p8 }
  0xb0   : > { %p6394_p3 = pnand %p6392_p2, %p6389_p9 }
  0xb2   : > { %6397 = shalt.err (!%p6394_p3)
}
  0xb3   : > { %s6398_s26 = scalar_lea.vmem %s521_s8, 16  ;;  %s6405_s24 = scalar_lea.vmem %s521_s8, 32 }
  0xb4   : > { %p6399_p10 = scmp.ne.s32.totalorder %s521_s8, %s6398_s26  ;;  %p6406_p13 = scmp.lt.s32.totalorder %s521_s8, %s521_s8 }
  0xb5   : > { %p6407_p0 = scmp.lt.s32.totalorder %s6405_s24, %s6398_s26 }
  0xb6   : > { %p6401_p11 = pnand %p6399_p10, %p6644_p7 }
  0xb7   : > { %p6408_p1 = por %p6407_p0, %p6406_p13 }
  0xb8   : > { %p6402_p12 = pneg %p6401_p11 }
  0xba   : > { %p6409_p4 = pnand %p6408_p1, %p6402_p12 }
  0xbc   : > { %6412 = shalt.err (!%p6409_p4)
}
  0xbd   : > { %5882 = dma.hbm_to_vmem [thread:$0]  (!%p6630_p5), %s7755_s9, 16, %s521_s8, [#allocation8]  }
  0xbe   : > { %s6413_s18 = scalar_lea.hbm %s7758_s12, 16 }
  0xbf   : > { %p6414_p6 = scmp.ne.s32.totalorder %s7758_s12, %s6413_s18  ;;  %p6420_p2 = scmp.lt.u32.totalorder %s6413_s18, %s7758_s12 }
  0xc1   : > { %p6416_p8 = pnand %p6414_p6, %p6644_p7 }
  0xc3   : > { %p6417_p9 = pneg %p6416_p8 }
  0xc5   : > { %p6422_p3 = pnand %p6420_p2, %p6417_p9 }
  0xc7   : > { %6425 = shalt.err (!%p6422_p3)
}
  0xc8   : > { %s6426_s29 = scalar_lea.vmem %s548_s13, 16  ;;  %s6433_s8 = scalar_lea.vmem %s548_s13, 32 }
  0xc9   : > { %p6427_p10 = scmp.ne.s32.totalorder %s548_s13, %s6426_s29  ;;  %p6434_p13 = scmp.lt.s32.totalorder %s548_s13, %s548_s13 }
  0xca   : > { %p6435_p0 = scmp.lt.s32.totalorder %s6433_s8, %s6426_s29 }
  0xcb   : > { %p6429_p11 = pnand %p6427_p10, %p6644_p7 }
  0xcc   : > { %p6436_p1 = por %p6435_p0, %p6434_p13 }
  0xcd   : > { %p6430_p12 = pneg %p6429_p11 }
  0xcf   : > { %p6437_p4 = pnand %p6436_p1, %p6430_p12 }
  0xd1   : > { %6440 = shalt.err (!%p6437_p4)
}
  0xd2   : > { %5888 = dma.hbm_to_vmem [thread:$0]  (!%p6630_p5), %s7758_s12, 16, %s548_s13, [#allocation11]  }
  0xd3   : > { %s6509_s24 = smov [#allocation15]   ;;  %s6441_s1 = scalar_lea.hbm %s7761_s15, 16 }
  0xd4   : > { %s574_s17 = sshll.u32 %s6509_s24, 4  ;;  %p6442_p6 = scmp.ne.s32.totalorder %s7761_s15, %s6441_s1  ;;  %s575_s17 = int_to_ptr.vmem [resolvable:$true] %s574_s17 }
  0xd5   : > { %p6448_p2 = scmp.lt.u32.totalorder %s6441_s1, %s7761_s15 }
  0xd6   : > { %p6444_p8 = pnand %p6442_p6, %p6644_p7 }
  0xd8   : > { %p6445_p9 = pneg %p6444_p8 }
  0xda   : > { %p6450_p3 = pnand %p6448_p2, %p6445_p9 }
  0xdc   : > { %6453 = shalt.err (!%p6450_p3)
}
  0xdd   : > { %s6454_s13 = scalar_lea.vmem %s575_s17, 16  ;;  %s6461_s23 = scalar_lea.vmem %s575_s17, 32 }
  0xde   : > { %p6455_p10 = scmp.ne.s32.totalorder %s575_s17, %s6454_s13  ;;  %p6462_p13 = scmp.lt.s32.totalorder %s575_s17, %s575_s17 }
  0xdf   : > { %p6463_p0 = scmp.lt.s32.totalorder %s6461_s23, %s6454_s13 }
  0xe0   : > { %p6457_p11 = pnand %p6455_p10, %p6644_p7 }
  0xe1   : > { %p6464_p1 = por %p6463_p0, %p6462_p13 }
  0xe2   : > { %p6458_p12 = pneg %p6457_p11 }
  0xe4   : > { %p6465_p4 = pnand %p6464_p1, %p6458_p12 }
  0xe6   : > { %6468 = shalt.err (!%p6465_p4)
}
  0xe7   : > { %5894 = dma.hbm_to_vmem [thread:$0]  (!%p6630_p5), %s7761_s15, 16, %s575_s17, [#allocation14]  }
  0xe8   : > { %p7789_p6 = scmp.ne.s32.totalorder %s7783_s0, 0 }
  0xe9   : > { %p7790_p8 = scmp.eq.s32.totalorder (!%p7789_p6), %s6615_s30, 0 }
  0xea   : > { %601 = sbr.rel (%p7789_p6) target bundleno = 3273 (0xcc9), region = 92 }
  0xf1   : > { %6474 = dma.done.wait (%p7790_p8), [#allocation3], 128   ;;  %p7791_p7 = pmov %p7790_p8 }
  0xf3   : > { %6476 = vsyncadd (%p7791_p7), [#allocation3], 4294967168  ;;  %p7792_p9 = pmov %p7791_p7 }
  0xf4   : > { %p7793_p2 = pmov %p7791_p7 }
  0xf5   : > { %6478 = dma.done.wait (%p7792_p9), [#allocation5], 32  }
  0xf6   : > { %6480 = vsyncadd (%p7793_p2), [#allocation5], 4294967264  ;;  %p7794_p3 = pmov %p7793_p2 }
  0xf7   : > { %p7795_p5 = pmov %p7793_p2 }
  0xf8   : > { %6482 = dma.done.wait (%p7794_p3), [#allocation8], 9232  }
  0xf9   : > { %6484 = vsyncadd (%p7795_p5), [#allocation8], 4294958064  ;;  %p7796_p10 = pmov %p7793_p2 }
  0xfa   : > { %p7797_p11 = pmov %p7793_p2 }
  0xfb   : > { %6486 = dma.done.wait (%p7796_p10), [#allocation11], 1040  }
  0xfc   : > { %6488 = vsyncadd (%p7797_p11), [#allocation11], 4294966256  ;;  %p7798_p12 = pmov %p7793_p2 }
  0xfd   : > { %p7799_p13 = pmov %p7793_p2 }
  0xfe   : > { %6490 = dma.done.wait (%p7798_p12), [#allocation14], 1040  }
  0xff   : > { %6492 = vsyncadd (%p7799_p13), [#allocation14], 4294966256  ;;  %vm737_vm0 = vcmask 1043456   ;;  %p687_p0 = scmp.lt.s32.totalorder %s6615_s30, 1  ;;  %vm738_vm1 = vcmask 1044480   ;;  %v6510_v0 = vmov 65535  }
 0x100   : > { %v739_v1 = vsel %vm737_vm0, 4294967295, %v6510_v0  ;;  %s7800_s22 = sld [smem:[#allocation22_spill]]  ;;  %v5938_v3 = vld [vmem:[#allocation2] sm:$0x1f]   ;;  %vm724_vm2 = vcmask 72704   ;;  %v6511_v51 = vmov 0  }
 0x101   : > { %s7807_s30 = smov (!%p687_p0, %s6615_s30), 1  ;;  %v740_v2 = vsel %vm738_vm1, %v739_v1, 0  ;;  %v5939_v13 = vld [vmem:[%s7750_s4 + $0x4] ss:$36 sps:$4 sm:$0xff]   ;;  %v5943_v16 = vld [vmem:[%s7750_s4 + $0xc] ss:$36 sps:$4 sm:$0xff]   ;;  %1293 = vmatprep.mubr.bf16.mxu1 %v6511_v51 }
 0x102   : > { %s5190_s0 = sshll.u32 %s7807_s30, 6  ;;  %v742_v7 = vand.u32 %v5938_v3, %v740_v2  ;;  %v5941_v15 = vld [vmem:[%s7750_s4 + $0x8] ss:$36 sps:$4 sm:$0xff]   ;;  %1261 = vmatprep.subr.bf16.mxu1 %v5939_v13  ;;  %v5944_v17 = vld [vmem:[%s7750_s4] ss:$36 sps:$4 sm:$0xff]   ;;  %vm6513_vm3 = vmmov 0  }
 0x103   : > { %v5945_v20 = vld [vmem:[%s7750_s4 + $0x4c] ss:$36 sps:$4 sm:$0xff]   ;;  %1262 = vmatpush1.bf16.msra.mxu1 %v5944_v17  ;;  %v5949_v22 = vld [vmem:[%s7750_s4 + $0x54] ss:$36 sps:$4 sm:$0xff]   ;;  %v5955_v25 = vld [vmem:[%s7750_s4 + $0x9c] ss:$36 sps:$4 sm:$0xff]  }
 0x104   : > { %5366 = vmatprep.subr.bf16.mxu0 %v742_v7  ;;  %v5947_v21 = vld [vmem:[%s7750_s4 + $0x50] ss:$36 sps:$4 sm:$0xff]   ;;  %v5950_v23 = vld [vmem:[%s7750_s4 + $0x48] ss:$36 sps:$4 sm:$0xff]   ;;  %1263 = vmatprep.subr.bf16.mxu1 %v5945_v20  ;;  %v5953_v28 = vld [vmem:[%s7750_s4 + $0x98] ss:$36 sps:$4 sm:$0xff]  }
 0x105   : > { %5367 = vmatpush3.bf16.msra.mxu0 %v742_v7  ;;  %v5951_v24 = vld [vmem:[%s7750_s4 + $0x94] ss:$36 sps:$4 sm:$0xff]   ;;  %v5957_v29 = vld [vmem:[%s7750_s4 + $0xdc] ss:$36 sps:$4 sm:$0xff]   ;;  %v5961_v30 = vld [vmem:[%s7750_s4 + $0xe4] ss:$36 sps:$4 sm:$0xff]  }
 0x106   : > { %s691_s26 = scalar_lea.vmem %s7800_s22, %s5190_s0  ;;  %1334 = vmatprep.subr.bf16.mxu0 %v5943_v16  ;;  %v5956_v27 = vld [vmem:[%s7750_s4 + $0x90] ss:$36 sps:$4 sm:$0xff]   ;;  %v5959_v31 = vld [vmem:[%s7750_s4 + $0xe0] ss:$36 sps:$4 sm:$0xff]   ;;  %v5962_v32 = vld [vmem:[%s7750_s4 + $0xd8] ss:$36 sps:$4 sm:$0xff]  }
 0x107   : > { %v698_v4 = vld [vmem:[%s691_s26] sm:$0xff]  ;;  %v699_v5 = vld [vmem:[%s691_s26 + $0x8] sm:$0xff]  ;;  %v700_v6 = vld [vmem:[%s691_s26 + $0x10] sm:$0xff]  ;;  %1264 = vmatpush1.bf16.msra.mxu1 %v5950_v23  ;;  %vm1664_vm4 = vcmask 523264   ;;  %vm2141_vm5 = vcmask 130048   ;;  %vm3222_vm6 = vcmask 1041408  }
 0x108   : > { %v706_v8 = vpack.c.bf16 %v699_v5, %v698_v4  ;;  %v701_v9 = vld [vmem:[%s691_s26 + $0x18] sm:$0xff]  ;;  %v702_v10 = vld [vmem:[%s691_s26 + $0x20] sm:$0xff]  ;;  %v703_v11 = vld [vmem:[%s691_s26 + $0x28] sm:$0xff]  ;;  %1265 = vmatprep.subr.bf16.mxu1 %v5951_v24  ;;  %vm3218_vm7 = vcmask 31744   ;;  %s7801_s1 = sld [smem:[#allocation26_spill]]  ;;  %s7802_s29 = sld [smem:[#allocation27_spill]] }
 0x109   : > { %v707_v12 = vpack.c.bf16 %v701_v9, %v700_v6  ;;  %v708_v14 = vpack.c.bf16 %v703_v11, %v702_v10  ;;  %v704_v18 = vld [vmem:[%s691_s26 + $0x30] sm:$0xff]  ;;  %v705_v19 = vld [vmem:[%s691_s26 + $0x38] sm:$0xff]  ;;  %v5963_v33 = vld [vmem:[%s7750_s4 + $0x124] ss:$36 sps:$4 sm:$0xff]   ;;  %vm4063_vm8 = vcmask 293888   ;;  %s7803_s22 = sld [smem:[#allocation28_spill]] }
 0x10a   : > { %5368 = vmatprep.mubr.msk.bf16.mxu0 %vm724_vm2, %v706_v8  ;;  %v709_v26 = vpack.c.bf16 %v705_v19, %v704_v18  ;;  %v5967_v34 = vld [vmem:[%s7750_s4 + $0x12c] ss:$36 sps:$4 sm:$0xff]   ;;  %v5968_v36 = vld [vmem:[%s7750_s4 + $0x120] ss:$36 sps:$4 sm:$0xff]   ;;  %v5973_v38 = vld [vmem:[%s7750_s4 + $0x174] ss:$36 sps:$4 sm:$0xff]  }
 0x10b   : > { %5369 = vmatmul.mubr.msk.bf16.vlgmr.msra.gmra.mrb[0].mxu0 %vm724_vm2, %v707_v12  ;;  %1266 = vmatpush1.bf16.msra.mxu1 %v5956_v27  ;;  %v5965_v35 = vld [vmem:[%s7750_s4 + $0x128] ss:$36 sps:$4 sm:$0xff]   ;;  %v5971_v40 = vld [vmem:[%s7750_s4 + $0x170] ss:$36 sps:$4 sm:$0xff]   ;;  %v5979_v42 = vld [vmem:[%s7750_s4 + $0x1bc] ss:$36 sps:$4 sm:$0xff]  }
 0x10c   : > { %5372 = vmatprep.mubr.msk.bf16.mxu0 %vm724_vm2, %v708_v14  ;;  %1335 = vmatpush1.bf16.msra.mxu0 %v5941_v15  ;;  %v5969_v37 = vld [vmem:[%s7750_s4 + $0x16c] ss:$36 sps:$4 sm:$0xff]   ;;  %v5975_v41 = vld [vmem:[%s7750_s4 + $0x1b4] ss:$36 sps:$4 sm:$0xff]   ;;  %v5981_v45 = vld [vmem:[%s7750_s4 + $0x1fc] ss:$36 sps:$4 sm:$0xff]  }
 0x10d   : > { %1336 = vmatprep.subr.bf16.mxu0 %v5949_v22  ;;  %1267 = vmatprep.subr.bf16.mxu1 %v5957_v29  ;;  %v5974_v39 = vld [vmem:[%s7750_s4 + $0x168] ss:$36 sps:$4 sm:$0xff]   ;;  %v5977_v43 = vld [vmem:[%s7750_s4 + $0x1b8] ss:$36 sps:$4 sm:$0xff]   ;;  %v5980_v44 = vld [vmem:[%s7750_s4 + $0x1b0] ss:$36 sps:$4 sm:$0xff]  }
 0x10e   : > { %v5985_v46 = vld [vmem:[%s7750_s4 + $0x204] ss:$36 sps:$4 sm:$0xff]   ;;  %v5986_v48 = vld [vmem:[%s7750_s4 + $0x1f8] ss:$36 sps:$4 sm:$0xff]   ;;  %v5987_v62 = vld [vmem:[%s7750_s4 + $0x10] ss:$36 sps:$4 sm:$0xff]  }
 0x10f   : > { %1268 = vmatpush1.bf16.msra.mxu1 %v5962_v32  ;;  %v5983_v47 = vld [vmem:[%s7750_s4 + $0x200] ss:$36 sps:$4 sm:$0xff]   ;;  %v5989_v49 = vld [vmem:[%s7750_s4 + $0x14] ss:$36 sps:$4 sm:$0xff]   ;;  %v4875_v53 = vld [vmem:[#allocation4] ss:$0 sm:$0xff] }
 0x110   : > { %1337 = vmatpush1.bf16.msra.mxu0 %v5947_v21  ;;  %1269 = vmatprep.subr.bf16.mxu1 %v5963_v33  ;;  %v5992_v50 = vld [vmem:[%s7750_s4 + $0x1c] ss:$36 sps:$4 sm:$0xff]   ;;  %v5998_v2 = vld [vmem:[%s7750_s4 + $0x64] ss:$36 sps:$4 sm:$0xff]   ;;  %v6004_v11 = vld [vmem:[%s7750_s4 + $0xac] ss:$36 sps:$4 sm:$0xff]  }
 0x111   : > { %1338 = vmatprep.subr.bf16.mxu0 %v5955_v25  ;;  %v5990_v63 = vld [vmem:[%s7750_s4 + $0x18] ss:$36 sps:$4 sm:$0xff]   ;;  %v5996_v5 = vld [vmem:[%s7750_s4 + $0x60] ss:$36 sps:$4 sm:$0xff]   ;;  %v6002_v17 = vld [vmem:[%s7750_s4 + $0xa8] ss:$36 sps:$4 sm:$0xff]  }
 0x112   : > { %v5995_v1 = vld [vmem:[%s7750_s4 + $0x5c] ss:$36 sps:$4 sm:$0xff]   ;;  %v6001_v10 = vld [vmem:[%s7750_s4 + $0xa4] ss:$36 sps:$4 sm:$0xff]   ;;  %v6007_v19 = vld [vmem:[%s7750_s4 + $0xec] ss:$36 sps:$4 sm:$0xff]  }
 0x113   : > { %5373 = vmatmul.mubr.msk.bf16.gmra.mrb[4].mxu0 %vm724_vm2, %v709_v26  ;;  %1270 = vmatpush1.bf16.msra.mxu1 %v5968_v36  ;;  %v5993_v4 = vld [vmem:[%s7750_s4 + $0x58] ss:$36 sps:$4 sm:$0xff]   ;;  %v5999_v16 = vld [vmem:[%s7750_s4 + $0xa0] ss:$36 sps:$4 sm:$0xff]   ;;  %v6005_v21 = vld [vmem:[%s7750_s4 + $0xe8] ss:$36 sps:$4 sm:$0xff]  }
 0x114   : > { %1339 = vmatpush1.bf16.msra.mxu0 %v5953_v28  ;;  %1271 = vmatprep.subr.bf16.mxu1 %v5969_v37  ;;  %v6010_v20 = vld [vmem:[%s7750_s4 + $0xf4] ss:$36 sps:$4 sm:$0xff]   ;;  %v6016_v24 = vld [vmem:[%s7750_s4 + $0x13c] ss:$36 sps:$4 sm:$0xff]   ;;  %v6022_v28 = vld [vmem:[%s7750_s4 + $0x184] ss:$36 sps:$4 sm:$0xff]  }
 0x115   : > { %1340 = vmatprep.subr.bf16.mxu0 %v5961_v30  ;;  %1366 = vmatprep.mubr.bf16.mxu0 %v6511_v51  ;;  %v6008_v22 = vld [vmem:[%s7750_s4 + $0xf0] ss:$36 sps:$4 sm:$0xff]   ;;  %v6014_v26 = vld [vmem:[%s7750_s4 + $0x138] ss:$36 sps:$4 sm:$0xff]   ;;  %v6020_v30 = vld [vmem:[%s7750_s4 + $0x180] ss:$36 sps:$4 sm:$0xff]  }
 0x116   : > { %v6013_v23 = vld [vmem:[%s7750_s4 + $0x134] ss:$36 sps:$4 sm:$0xff]   ;;  %v6019_v27 = vld [vmem:[%s7750_s4 + $0x17c] ss:$36 sps:$4 sm:$0xff]   ;;  %v6028_v32 = vld [vmem:[%s7750_s4 + $0x1cc] ss:$36 sps:$4 sm:$0xff]  }
 0x117   : > { %1272 = vmatpush1.bf16.msra.mxu1 %v5974_v39  ;;  %v6011_v25 = vld [vmem:[%s7750_s4 + $0x130] ss:$36 sps:$4 sm:$0xff]   ;;  %v6017_v29 = vld [vmem:[%s7750_s4 + $0x178] ss:$36 sps:$4 sm:$0xff]   ;;  %v6023_v33 = vld [vmem:[%s7750_s4 + $0x1c0] ss:$36 sps:$4 sm:$0xff]  }
 0x118   : > { %1341 = vmatpush1.bf16.msra.mxu0 %v5959_v31  ;;  %1273 = vmatprep.subr.bf16.mxu1 %v5975_v41  ;;  %v6025_v31 = vld [vmem:[%s7750_s4 + $0x1c4] ss:$36 sps:$4 sm:$0xff]   ;;  %v6034_v36 = vld [vmem:[%s7750_s4 + $0x214] ss:$36 sps:$4 sm:$0xff]   ;;  %s5830_s25 = smul.u32 40, %s7807_s30  ;;  %s7804_s27 = sld [smem:[#allocation29_spill]] }
 0x119   : > { %1342 = vmatprep.subr.bf16.mxu0 %v5967_v34  ;;  %v6026_v34 = vld [vmem:[%s7750_s4 + $0x1c8] ss:$36 sps:$4 sm:$0xff]   ;;  %v6035_v39 = vld [vmem:[%s7750_s4 + $0x20] ss:$36 sps:$4 sm:$0xff]   ;;  %v6037_v41 = vld [vmem:[%s7750_s4 + $0xb0] ss:$36 sps:$4 sm:$0xff]  }
 0x11a   : > { %v6029_v37 = vld [vmem:[%s7750_s4 + $0x208] ss:$36 sps:$4 sm:$0xff]  }
 0x11b   : > { %1274 = vmatpush1.bf16.msra.mxu1 %v5980_v44  ;;  %v6040_v44 = vld [vmem:[%s7750_s4 + $0x188] ss:$36 sps:$4 sm:$0xff]  }
 0x11c   : > { %1343 = vmatpush1.bf16.msra.mxu0 %v5965_v35  ;;  %1275 = vmatprep.subr.bf16.mxu1 %v5981_v45  ;;  %v6031_v35 = vld [vmem:[%s7750_s4 + $0x20c] ss:$36 sps:$4 sm:$0xff]  }
 0x11d   : > { %1344 = vmatprep.subr.bf16.mxu0 %v5973_v38  ;;  %v6032_v38 = vld [vmem:[%s7750_s4 + $0x210] ss:$36 sps:$4 sm:$0xff]  }
 0x11e   : > { %v6041_v45 = vld [vmem:[%s7750_s4 + $0x1d0] ss:$36 sps:$4 sm:$0xff]   ;;  %s696_s2 = scalar_lea.vmem %s7804_s27, %s5830_s25 }
 0x11f   : > { %1276 = vmatpush1.bf16.msra.mxu1 %v5986_v48 }
 0x120   : > { %1345 = vmatpush1.bf16.msra.mxu0 %v5971_v40  ;;  %1407 = vmatprep.subr.bf16.mxu1 %v5989_v49  ;;  %v6036_v40 = vld [vmem:[%s7750_s4 + $0x68] ss:$36 sps:$4 sm:$0xff]  }
 0x121   : > { %1346 = vmatprep.subr.bf16.mxu0 %v5979_v42  ;;  %v6038_v42 = vld [vmem:[%s7750_s4 + $0xf8] ss:$36 sps:$4 sm:$0xff]  }
 0x124   : > { %1347 = vmatpush1.bf16.msra.mxu0 %v5977_v43  ;;  %v6039_v43 = vld [vmem:[%s7750_s4 + $0x140] ss:$36 sps:$4 sm:$0xff]  }
 0x125   : > { %1348 = vmatprep.subr.bf16.mxu0 %v5985_v46  ;;  %v6042_v46 = vld [vmem:[%s7750_s4 + $0x218] ss:$36 sps:$4 sm:$0xff]  }
 0x128   : > { %1349 = vmatpush1.bf16.msra.mxu0 %v5983_v47  ;;  %v6512_v47 = vmov 0.0  }
 0x129   : > { %1480 = vmatprep.subr.bf16.mxu0 %v5992_v50 }
 0x1de   : > { %v5370_v52 = vpop.f32.mrb[0].mxu0 }
 0x1df   : > { %v778_v54 = vpop.f32.mrb[1].mxu0  ;;  %v787_v56 = vadd.f32 %v5370_v52, %v4875_v53 }
 0x1e0   : > { %v5371_v55 = vpop.f32.mrb[2].mxu0  ;;  %v779_v59 = vadd.f32 %v4875_v53, %v778_v54 }
 0x1e1   : > { %v790_v57 = vadd.f32 %v5371_v55, %v4875_v53  ;;  %v781_v58 = vpop.f32.mrb[3].mxu0 }
 0x1e2   : > { %v782_v60 = vadd.f32 %v4875_v53, %v781_v58 }
 0x1e3   : > { %v6957_v61 = vpack.c.bf16 %v790_v57, %v787_v56 }
 0x1e4   : > { %v6965_v0 = vpack.c.bf16 %v782_v60, %v779_v59 }
 0x1e6   : > { %1294 = vmatmul.mubr.bf16.vlgmr.msra.gmra.mrb[0].mxu1 %v6965_v0  ;;  %1367 = vmatmul.mubr.bf16.vlgmr.msra.gmra.mrb[8].mxu0 %v6965_v0  ;;  %v5374_v3 = vpop.f32.mrb[4].mxu0 }
 0x1e7   : > { %1408 = vmatpush1.bf16.msra.mxu1 %v5987_v62  ;;  %1481 = vmatpush1.bf16.msra.mxu0 %v5990_v63  ;;  %v803_v6 = vadd.f32 %v5374_v3, %v4875_v53  ;;  %v794_v7 = vpop.f32.mrb[5].mxu0 }
 0x1e8   : > { %1409 = vmatprep.subr.bf16.mxu1 %v5995_v1  ;;  %1482 = vmatprep.subr.bf16.mxu0 %v5998_v2  ;;  %v795_v8 = vadd.f32 %v4875_v53, %v794_v7  ;;  %v5375_v9 = vpop.f32.mrb[6].mxu0 }
 0x1e9   : > { %v806_v12 = vadd.f32 %v5375_v9, %v4875_v53  ;;  %1303 = vmatprep.mubr.bf16.mxu1 %v6511_v51  ;;  %1376 = vmatprep.mubr.bf16.mxu0 %v6511_v51  ;;  %v797_v13 = vpop.f32.mrb[7].mxu0 }
 0x1ea   : > { %v798_v14 = vadd.f32 %v4875_v53, %v797_v13 }
 0x1eb   : > { %1410 = vmatpush1.bf16.msra.mxu1 %v5993_v4  ;;  %1483 = vmatpush1.bf16.msra.mxu0 %v5996_v5  ;;  %v6989_v15 = vpack.c.bf16 %v806_v12, %v803_v6 }
 0x1ec   : > { %v6997_v18 = vpack.c.bf16 %v798_v14, %v795_v8  ;;  %1411 = vmatprep.subr.bf16.mxu1 %v6001_v10  ;;  %1484 = vmatprep.subr.bf16.mxu0 %v6004_v11 }
 0x1ee   : > { %1304 = vmatmul.mubr.bf16.gmra.mrb[4].mxu1 %v6957_v61  ;;  %1377 = vmatmul.mubr.bf16.gmra.mrb[12].mxu0 %v6957_v61 }
 0x1ef   : > { %1412 = vmatpush1.bf16.msra.mxu1 %v5999_v16  ;;  %1485 = vmatpush1.bf16.msra.mxu0 %v6002_v17 }
 0x1f0   : > { %1413 = vmatprep.subr.bf16.mxu1 %v6007_v19  ;;  %1486 = vmatprep.subr.bf16.mxu0 %v6010_v20 }
 0x1f1   : > { %1313 = vmatprep.mubr.bf16.mxu1 %v6511_v51  ;;  %1386 = vmatprep.mubr.bf16.mxu0 %v6511_v51 }
 0x1f3   : > { %1414 = vmatpush1.bf16.msra.mxu1 %v6005_v21  ;;  %1487 = vmatpush1.bf16.msra.mxu0 %v6008_v22 }
 0x1f4   : > { %1415 = vmatprep.subr.bf16.mxu1 %v6013_v23  ;;  %1488 = vmatprep.subr.bf16.mxu0 %v6016_v24 }
 0x1f6   : > { %1314 = vmatmul.mubr.bf16.gmra.mrb[8].mxu1 %v6997_v18  ;;  %1387 = vmatmul.mubr.bf16.gmra.mrb[16].mxu0 %v6997_v18 }
 0x1f7   : > { %1416 = vmatpush1.bf16.msra.mxu1 %v6011_v25  ;;  %1489 = vmatpush1.bf16.msra.mxu0 %v6014_v26 }
 0x1f8   : > { %1417 = vmatprep.subr.bf16.mxu1 %v6019_v27  ;;  %1490 = vmatprep.subr.bf16.mxu0 %v6022_v28 }
 0x1f9   : > { %1323 = vmatprep.mubr.bf16.mxu1 %v6511_v51  ;;  %1396 = vmatprep.mubr.bf16.mxu0 %v6511_v51 }
 0x1fb   : > { %1418 = vmatpush1.bf16.msra.mxu1 %v6017_v29  ;;  %1491 = vmatpush1.bf16.msra.mxu0 %v6020_v30 }
 0x1fc   : > { %1419 = vmatprep.subr.bf16.mxu1 %v6025_v31  ;;  %1492 = vmatprep.subr.bf16.mxu0 %v6028_v32 }
 0x1fe   : > { %1324 = vmatmul.mubr.bf16.gmra.mrb[12].mxu1 %v6989_v15  ;;  %1397 = vmatmul.mubr.bf16.gmra.mrb[20].mxu0 %v6989_v15 }
 0x1ff   : > { %1420 = vmatpush1.bf16.msra.mxu1 %v6023_v33  ;;  %1493 = vmatpush1.bf16.msra.mxu0 %v6026_v34  ;;  %v6043_v33 = vld [vmem:[%s7749_s3 + $0x8] sm:$0xff]   ;;  %v6044_v34 = vld [vmem:[%s7749_s3 + $0x18] sm:$0xff]  }
 0x200   : > { %1421 = vmatprep.subr.bf16.mxu1 %v6031_v35  ;;  %1494 = vmatprep.subr.bf16.mxu0 %v6034_v36 }
 0x201   : > { %1439 = vmatprep.mubr.bf16.mxu1 %v6511_v51  ;;  %1512 = vmatprep.mubr.bf16.mxu0 %v6511_v51 }
 0x203   : > { %1422 = vmatpush1.bf16.msra.mxu1 %v6029_v37  ;;  %1495 = vmatpush1.bf16.msra.mxu0 %v6032_v38 }
 0x204   : > { %5376 = vmatprep.subr.bf16.mxu1 %v6035_v39  ;;  %5400 = vmatprep.subr.bf16.mxu0 %v6512_v47 }
 0x206   : > { %1440 = vmatmul.mubr.bf16.vlgmr.msra.gmra.mrb[16].mxu1 %v6965_v0  ;;  %1513 = vmatmul.mubr.bf16.vlgmr.msra.gmra.mrb[24].mxu0 %v6965_v0 }
 0x207   : > { %5377 = vmatpush3.bf16.msra.mxu1 %v6035_v39  ;;  %1449 = vmatprep.mubr.bf16.mxu1 %v6511_v51 }
 0x208   : > { %5378 = vmatprep.subr.bf16.mxu1 %v6036_v40  ;;  %1522 = vmatprep.mubr.bf16.mxu0 %v6511_v51 }
 0x20b   : > { %5379 = vmatpush3.bf16.msra.mxu1 %v6036_v40 }
 0x20c   : > { %5380 = vmatprep.subr.bf16.mxu1 %v6037_v41 }
 0x20e   : > { %1450 = vmatmul.mubr.bf16.gmra.mrb[20].mxu1 %v6957_v61  ;;  %1523 = vmatmul.mubr.bf16.gmra.mrb[28].mxu0 %v6957_v61 }
 0x20f   : > { %5381 = vmatpush3.bf16.msra.mxu1 %v6037_v41  ;;  %1459 = vmatprep.mubr.bf16.mxu1 %v6511_v51 }
 0x210   : > { %5382 = vmatprep.subr.bf16.mxu1 %v6038_v42  ;;  %1532 = vmatprep.mubr.bf16.mxu0 %v6511_v51 }
 0x213   : > { %5383 = vmatpush3.bf16.msra.mxu1 %v6038_v42 }
 0x214   : > { %5384 = vmatprep.subr.bf16.mxu1 %v6039_v43 }
 0x216   : > { %1460 = vmatmul.mubr.bf16.gmra.mrb[24].mxu1 %v6997_v18  ;;  %1533 = vmatmul.mubr.bf16.gmra.mrb[32].mxu0 %v6997_v18 }
 0x217   : > { %5385 = vmatpush3.bf16.msra.mxu1 %v6039_v43  ;;  %1469 = vmatprep.mubr.bf16.mxu1 %v6511_v51 }
 0x218   : > { %5386 = vmatprep.subr.bf16.mxu1 %v6040_v44  ;;  %1542 = vmatprep.mubr.bf16.mxu0 %v6511_v51 }
 0x21b   : > { %5387 = vmatpush3.bf16.msra.mxu1 %v6040_v44 }
 0x21c   : > { %5388 = vmatprep.subr.bf16.mxu1 %v6041_v45 }
 0x21e   : > { %1470 = vmatmul.mubr.bf16.gmra.mrb[28].mxu1 %v6989_v15  ;;  %1543 = vmatmul.mubr.bf16.gmra.mrb[36].mxu0 %v6989_v15 }
 0x21f   : > { %5389 = vmatpush3.bf16.msra.mxu1 %v6041_v45  ;;  %5392 = vmatprep.mubr.bf16.mxu1 %v6965_v0 }
 0x220   : > { %5390 = vmatprep.subr.bf16.mxu1 %v6042_v46  ;;  %5408 = vmatprep.mubr.msk.bf16.mxu0 %vm6513_vm3, %v6512_v47 }
 0x223   : > { %5391 = vmatpush3.bf16.msra.mxu1 %v6042_v46 }
 0x224   : > { %5412 = vmatprep.subr.bf16.mxu1 %v6512_v47 }
 0x226   : > { %5393 = vmatmul.mubr.bf16.vlgmr.msra.gmra.mrb[32].mxu1 %v6957_v61 }
 0x227   : > { %5396 = vmatprep.mubr.bf16.mxu1 %v6997_v18 }
 0x22e   : > { %5397 = vmatmul.mubr.bf16.gmra.mrb[36].mxu1 %v6989_v15 }
 0x22f   : > { %5420 = vmatprep.mubr.msk.bf16.mxu1 %vm6513_vm3, %v6512_v47 }
 0x2b9   : > { %v7119_v48 = vpop.f32.mrb[0].mxu1  ;;  %v7121_v49 = vpop.f32.mrb[8].mxu0 }
 0x2ba   : > { %v1297_v50 = vpop.f32.mrb[1].mxu1  ;;  %v1370_v52 = vpop.f32.mrb[9].mxu0 }
 0x2bb   : > { %v7123_v53 = vpop.f32.mrb[2].mxu1  ;;  %v7125_v54 = vpop.f32.mrb[10].mxu0 }
 0x2bc   : > { %v1618_v55 = vpack.c.bf16 %v7123_v53, %v7119_v48  ;;  %v1620_v56 = vpack.c.bf16 %v7125_v54, %v7121_v49  ;;  %v1301_v57 = vpop.f32.mrb[3].mxu1  ;;  %v1374_v58 = vpop.f32.mrb[11].mxu0  ;;  %v6049_v49 = vld [vmem:[%s7749_s3 + $0x20] sm:$0xff]   ;;  %v6050_v54 = vld [vmem:[%s7749_s3 + $0x10] sm:$0xff]  }
 0x2bd   : > { %v1619_v59 = vpack.c.bf16 %v1301_v57, %v1297_v50  ;;  %v1621_v60 = vpack.c.bf16 %v1374_v58, %v1370_v52 }
 0x2bf   : > { %5401 = vmatpush3.bf16.msra.mxu0 %v1619_v59  ;;  %5413 = vmatpush3.bf16.msra.mxu1 %v1621_v60 }
 0x2c0   : > { %5402 = vmatprep.subr.bf16.mxu0 %v6512_v47  ;;  %5414 = vmatprep.subr.bf16.mxu1 %v6512_v47 }
 0x2c1   : > { %v7133_v61 = vpop.f32.mrb[4].mxu1  ;;  %v7135_v62 = vpop.f32.mrb[12].mxu0 }
 0x2c2   : > { %v1307_v63 = vpop.f32.mrb[5].mxu1  ;;  %v1380_v0 = vpop.f32.mrb[13].mxu0 }
 0x2c3   : > { %v7137_v1 = vpop.f32.mrb[6].mxu1  ;;  %v7139_v2 = vpop.f32.mrb[14].mxu0 }
 0x2c4   : > { %v1627_v3 = vpack.c.bf16 %v7137_v1, %v7133_v61  ;;  %v1629_v4 = vpack.c.bf16 %v7139_v2, %v7135_v62  ;;  %v1311_v5 = vpop.f32.mrb[7].mxu1  ;;  %v1384_v6 = vpop.f32.mrb[15].mxu0  ;;  %v6047_v1 = vld [vmem:[%s7749_s3] sm:$0xff]  }
 0x2c5   : > { %v1628_v7 = vpack.c.bf16 %v1311_v5, %v1307_v63  ;;  %v1630_v8 = vpack.c.bf16 %v1384_v6, %v1380_v0 }
 0x2c7   : > { %5403 = vmatpush3.bf16.msra.mxu0 %v1628_v7  ;;  %5415 = vmatpush3.bf16.msra.mxu1 %v1630_v8 }
 0x2c8   : > { %5404 = vmatprep.subr.bf16.mxu0 %v6512_v47  ;;  %5416 = vmatprep.subr.bf16.mxu1 %v6512_v47 }
 0x2c9   : > { %v7147_v9 = vpop.f32.mrb[8].mxu1  ;;  %v7149_v10 = vpop.f32.mrb[16].mxu0 }
 0x2ca   : > { %v1317_v11 = vpop.f32.mrb[9].mxu1  ;;  %v1390_v12 = vpop.f32.mrb[17].mxu0 }
 0x2cb   : > { %v7151_v13 = vpop.f32.mrb[10].mxu1  ;;  %v7153_v14 = vpop.f32.mrb[18].mxu0 }
 0x2cc   : > { %v1636_v15 = vpack.c.bf16 %v7151_v13, %v7147_v9  ;;  %v1638_v16 = vpack.c.bf16 %v7153_v14, %v7149_v10  ;;  %v1321_v17 = vpop.f32.mrb[11].mxu1  ;;  %v1394_v18 = vpop.f32.mrb[19].mxu0 }
 0x2cd   : > { %v1637_v19 = vpack.c.bf16 %v1321_v17, %v1317_v11  ;;  %v1639_v20 = vpack.c.bf16 %v1394_v18, %v1390_v12 }
 0x2cf   : > { %5405 = vmatpush3.bf16.msra.mxu0 %v1637_v19  ;;  %5417 = vmatpush3.bf16.msra.mxu1 %v1639_v20 }
 0x2d0   : > { %5406 = vmatprep.subr.bf16.mxu0 %v6512_v47  ;;  %5418 = vmatprep.subr.bf16.mxu1 %v6512_v47 }
 0x2d1   : > { %v7161_v21 = vpop.f32.mrb[12].mxu1  ;;  %v7163_v22 = vpop.f32.mrb[20].mxu0 }
 0x2d2   : > { %v1327_v23 = vpop.f32.mrb[13].mxu1  ;;  %v1400_v24 = vpop.f32.mrb[21].mxu0 }
 0x2d3   : > { %v7165_v25 = vpop.f32.mrb[14].mxu1  ;;  %v7167_v26 = vpop.f32.mrb[22].mxu0 }
 0x2d4   : > { %v1645_v27 = vpack.c.bf16 %v7165_v25, %v7161_v21  ;;  %v1647_v28 = vpack.c.bf16 %v7167_v26, %v7163_v22  ;;  %v1331_v29 = vpop.f32.mrb[15].mxu1  ;;  %v1404_v30 = vpop.f32.mrb[23].mxu0 }
 0x2d5   : > { %v1646_v31 = vpack.c.bf16 %v1331_v29, %v1327_v23  ;;  %v1648_v32 = vpack.c.bf16 %v1404_v30, %v1400_v24 }
 0x2d7   : > { %5407 = vmatpush3.bf16.msra.mxu0 %v1646_v31  ;;  %5419 = vmatpush3.bf16.msra.mxu1 %v1648_v32 }
 0x2d8   : > { %5424 = vmatprep.subr.bf16.mxu0 %v6512_v47  ;;  %5436 = vmatprep.subr.bf16.mxu1 %v6512_v47 }
 0x2d9   : > { %v7181_v35 = vpop.f32.mrb[16].mxu1  ;;  %v7183_v36 = vpop.f32.mrb[24].mxu0 }
 0x2da   : > { %v1443_v37 = vpop.f32.mrb[17].mxu1  ;;  %v1516_v38 = vpop.f32.mrb[25].mxu0  ;;  %5409 = vmatmul.mubr.msk.bf16.vlgmr.msra.gmra.mrb[40].mxu0 %vm1664_vm4, %v6043_v33  ;;  %5421 = vmatmul.mubr.msk.bf16.vlgmr.msra.gmra.mrb[40].mxu1 %vm1664_vm4, %v6044_v34 }
 0x2db   : > { %v7187_v39 = vpop.f32.mrb[18].mxu1  ;;  %v7189_v40 = vpop.f32.mrb[26].mxu0  ;;  %5444 = vmatprep.mubr.msk.bf16.mxu1 %vm6513_vm3, %v6512_v47  ;;  %5432 = vmatprep.mubr.msk.bf16.mxu0 %vm6513_vm3, %v6512_v47 }
 0x2dc   : > { %v1622_v41 = vpack.c.bf16 %v7187_v39, %v7181_v35  ;;  %v1624_v42 = vpack.c.bf16 %v7189_v40, %v7183_v36  ;;  %v1447_v43 = vpop.f32.mrb[19].mxu1  ;;  %v1520_v44 = vpop.f32.mrb[27].mxu0 }
 0x2dd   : > { %v1623_v45 = vpack.c.bf16 %v1447_v43, %v1443_v37  ;;  %v1625_v46 = vpack.c.bf16 %v1520_v44, %v1516_v38 }
 0x2df   : > { %5425 = vmatpush3.bf16.msra.mxu0 %v1623_v45  ;;  %5437 = vmatpush3.bf16.msra.mxu1 %v1625_v46 }
 0x2e0   : > { %5426 = vmatprep.subr.bf16.mxu0 %v6512_v47  ;;  %5438 = vmatprep.subr.bf16.mxu1 %v6512_v47 }
 0x2e1   : > { %v7201_v50 = vpop.f32.mrb[20].mxu1  ;;  %v7203_v52 = vpop.f32.mrb[28].mxu0 }
 0x2e2   : > { %v1453_v57 = vpop.f32.mrb[21].mxu1  ;;  %v1526_v58 = vpop.f32.mrb[29].mxu0 }
 0x2e3   : > { %v7205_v59 = vpop.f32.mrb[22].mxu1  ;;  %v7207_v60 = vpop.f32.mrb[30].mxu0 }
 0x2e4   : > { %v1631_v63 = vpack.c.bf16 %v7205_v59, %v7201_v50  ;;  %v1633_v0 = vpack.c.bf16 %v7207_v60, %v7203_v52  ;;  %v1457_v5 = vpop.f32.mrb[23].mxu1  ;;  %v1530_v6 = vpop.f32.mrb[31].mxu0 }
 0x2e5   : > { %v1632_v7 = vpack.c.bf16 %v1457_v5, %v1453_v57  ;;  %v1634_v8 = vpack.c.bf16 %v1530_v6, %v1526_v58 }
 0x2e7   : > { %5427 = vmatpush3.bf16.msra.mxu0 %v1632_v7  ;;  %5439 = vmatpush3.bf16.msra.mxu1 %v1634_v8  ;;  %v6045_v7 = vld [vmem:[%s7749_s3 + $0x38] sm:$0xff]   ;;  %v6046_v8 = vld [vmem:[%s7749_s3 + $0x28] sm:$0xff]  }
 0x2e8   : > { %5428 = vmatprep.subr.bf16.mxu0 %v6512_v47  ;;  %5440 = vmatprep.subr.bf16.mxu1 %v6512_v47 }
 0x2e9   : > { %v7215_v11 = vpop.f32.mrb[24].mxu1  ;;  %v7217_v12 = vpop.f32.mrb[32].mxu0 }
 0x2ea   : > { %v1463_v17 = vpop.f32.mrb[25].mxu1  ;;  %v1536_v18 = vpop.f32.mrb[33].mxu0 }
 0x2eb   : > { %v7219_v19 = vpop.f32.mrb[26].mxu1  ;;  %v7221_v20 = vpop.f32.mrb[34].mxu0 }
 0x2ec   : > { %v1640_v23 = vpack.c.bf16 %v7219_v19, %v7215_v11  ;;  %v1642_v24 = vpack.c.bf16 %v7221_v20, %v7217_v12  ;;  %v1467_v29 = vpop.f32.mrb[27].mxu1  ;;  %v1540_v30 = vpop.f32.mrb[35].mxu0 }
 0x2ed   : > { %v1641_v31 = vpack.c.bf16 %v1467_v29, %v1463_v17  ;;  %v1643_v32 = vpack.c.bf16 %v1540_v30, %v1536_v18 }
 0x2ef   : > { %5429 = vmatpush3.bf16.msra.mxu0 %v1641_v31  ;;  %5441 = vmatpush3.bf16.msra.mxu1 %v1643_v32 }
 0x2f0   : > { %5430 = vmatprep.subr.bf16.mxu0 %v6512_v47  ;;  %5442 = vmatprep.subr.bf16.mxu1 %v6512_v47 }
 0x2f1   : > { %v7229_v33 = vpop.f32.mrb[28].mxu1  ;;  %v7231_v34 = vpop.f32.mrb[36].mxu0 }
 0x2f2   : > { %v1473_v37 = vpop.f32.mrb[29].mxu1  ;;  %v1546_v38 = vpop.f32.mrb[37].mxu0 }
 0x2f3   : > { %v7233_v43 = vpop.f32.mrb[30].mxu1  ;;  %v7235_v44 = vpop.f32.mrb[38].mxu0 }
 0x2f4   : > { %v1649_v45 = vpack.c.bf16 %v7233_v43, %v7229_v33  ;;  %v1651_v46 = vpack.c.bf16 %v7235_v44, %v7231_v34  ;;  %v1477_v57 = vpop.f32.mrb[31].mxu1  ;;  %v1550_v58 = vpop.f32.mrb[39].mxu0 }
 0x2f5   : > { %v1650_v5 = vpack.c.bf16 %v1477_v57, %v1473_v37  ;;  %v1652_v6 = vpack.c.bf16 %v1550_v58, %v1546_v38 }
 0x2f7   : > { %5431 = vmatpush3.bf16.msra.mxu0 %v1650_v5  ;;  %5443 = vmatpush3.bf16.msra.mxu1 %v1652_v6 }
 0x2f8   : > { %5460 = vmatprep.subr.bf16.mxu1 %v6512_v47  ;;  %5448 = vmatprep.subr.bf16.mxu0 %v6512_v47 }
 0x2f9   : > { %v5394_v17 = vpop.f32.mrb[32].mxu1 }
 0x2fa   : > { %v1587_v18 = vpop.f32.mrb[33].mxu1  ;;  %5445 = vmatmul.mubr.msk.bf16.vlgmr.msra.gmra.mrb[44].mxu1 %vm1664_vm4, %v6045_v7  ;;  %5433 = vmatmul.mubr.msk.bf16.vlgmr.msra.gmra.mrb[44].mxu0 %vm1664_vm4, %v6046_v8 }
 0x2fb   : > { %v5395_v29 = vpop.f32.mrb[34].mxu1  ;;  %5461 = vmatpush3.bf16.msra.mxu1 %v1618_v55  ;;  %5468 = vmatprep.mubr.msk.bf16.mxu1 %vm6513_vm3, %v6512_v47 }
 0x2fc   : > { %v1635_v30 = vpack.c.bf16 %v5395_v29, %v5394_v17  ;;  %v1590_v31 = vpop.f32.mrb[35].mxu1  ;;  %5462 = vmatprep.subr.bf16.mxu1 %v6512_v47  ;;  %5456 = vmatprep.mubr.msk.bf16.mxu0 %vm6513_vm3, %v6512_v47 }
 0x2fd   : > { %v1626_v32 = vpack.c.bf16 %v1590_v31, %v1587_v18 }
 0x2ff   : > { %5449 = vmatpush3.bf16.msra.mxu0 %v1626_v32  ;;  %5463 = vmatpush3.bf16.msra.mxu1 %v1627_v3  ;;  %v6048_v3 = vld [vmem:[%s7749_s3 + $0x40] sm:$0xff]  }
 0x300   : > { %5450 = vmatprep.subr.bf16.mxu0 %v6512_v47  ;;  %5464 = vmatprep.subr.bf16.mxu1 %v6512_v47 }
 0x301   : > { %v5398_v48 = vpop.f32.mrb[36].mxu1 }
 0x302   : > { %v1603_v53 = vpop.f32.mrb[37].mxu1 }
 0x303   : > { %v5399_v55 = vpop.f32.mrb[38].mxu1  ;;  %5451 = vmatpush3.bf16.msra.mxu0 %v1635_v30  ;;  %5465 = vmatpush3.bf16.msra.mxu1 %v1636_v15 }
 0x304   : > { %v1653_v33 = vpack.c.bf16 %v5399_v55, %v5398_v48  ;;  %v1606_v37 = vpop.f32.mrb[39].mxu1  ;;  %5452 = vmatprep.subr.bf16.mxu0 %v6512_v47  ;;  %5466 = vmatprep.subr.bf16.mxu1 %v6512_v47  ;;  %v4987_v48 = vld [vmem:[#allocation6] ss:$0 sm:$0xff] }
 0x305   : > { %v1644_v61 = vpack.c.bf16 %v1606_v37, %v1603_v53 }
 0x307   : > { %5453 = vmatpush3.bf16.msra.mxu0 %v1644_v61  ;;  %5467 = vmatpush3.bf16.msra.mxu1 %v1645_v27  ;;  %v2140_v61 = vld [vmem:[%s7752_s6] sm:$0x3] }
 0x308   : > { %5454 = vmatprep.subr.bf16.mxu0 %v6512_v47  ;;  %5484 = vmatprep.subr.bf16.mxu1 %v6512_v47 }
 0x30a   : > { %5469 = vmatmul.mubr.msk.bf16.vlgmr.msra.gmra.mrb[48].mxu1 %vm1664_vm4, %v6047_v1  ;;  %v4989_v1 = vld [vmem:[%s7752_s6 + $0x2] sm:$0x3] }
 0x30b   : > { %5455 = vmatpush3.bf16.msra.mxu0 %v1653_v33  ;;  %5485 = vmatpush3.bf16.msra.mxu1 %v1622_v41 }
 0x30c   : > { %5472 = vmatprep.subr.bf16.mxu0 %v6512_v47  ;;  %5486 = vmatprep.subr.bf16.mxu1 %v6512_v47 }
 0x30d   : > { %5492 = vmatprep.mubr.msk.bf16.mxu1 %vm6513_vm3, %v6512_v47 }
 0x30e   : > { %5457 = vmatmul.mubr.msk.bf16.vlgmr.msra.gmra.mrb[48].mxu0 %vm1664_vm4, %v6048_v3  ;;  %v4991_v3 = vld [vmem:[%s7752_s6 + $0x4] sm:$0x3] }
 0x30f   : > { %5473 = vmatpush3.bf16.msra.mxu0 %v1620_v56  ;;  %5487 = vmatpush3.bf16.msra.mxu1 %v1631_v63  ;;  %v6051_v56 = vld [vmem:[%s7749_s3 + $0x30] sm:$0xff]  }
 0x310   : > { %5474 = vmatprep.subr.bf16.mxu0 %v6512_v47  ;;  %5488 = vmatprep.subr.bf16.mxu1 %v6512_v47 }
 0x311   : > { %5480 = vmatprep.mubr.msk.bf16.mxu0 %vm6513_vm3, %v6512_v47 }
 0x313   : > { %5475 = vmatpush3.bf16.msra.mxu0 %v1629_v4  ;;  %5489 = vmatpush3.bf16.msra.mxu1 %v1640_v23 }
 0x314   : > { %5476 = vmatprep.subr.bf16.mxu0 %v6512_v47  ;;  %5490 = vmatprep.subr.bf16.mxu1 %v6512_v47 }
 0x317   : > { %5477 = vmatpush3.bf16.msra.mxu0 %v1638_v16  ;;  %5491 = vmatpush3.bf16.msra.mxu1 %v1649_v45 }
 0x318   : > { %5478 = vmatprep.subr.bf16.mxu0 %v6512_v47  ;;  %5508 = vmatprep.subr.bf16.mxu1 %v6512_v47 }
 0x31a   : > { %5493 = vmatmul.mubr.msk.bf16.vlgmr.msra.gmra.mrb[52].mxu1 %vm1664_vm4, %v6049_v49  ;;  %v4993_v49 = vld [vmem:[%s7752_s6 + $0x6] sm:$0x3] }
 0x31b   : > { %5479 = vmatpush3.bf16.msra.mxu0 %v1647_v28  ;;  %5510 = vmatprep.mubr.msk.bf16.mxu1 %vm6513_vm3, %v6512_v47 }
 0x31c   : > { %5496 = vmatprep.subr.bf16.mxu0 %v6512_v47 }
 0x31e   : > { %5481 = vmatmul.mubr.msk.bf16.vlgmr.msra.gmra.mrb[52].mxu0 %vm1664_vm4, %v6050_v54  ;;  %v4995_v54 = vld [vmem:[%s7752_s6 + $0x8] sm:$0x3] }
 0x31f   : > { %5497 = vmatpush3.bf16.msra.mxu0 %v1624_v42  ;;  %5504 = vmatprep.mubr.msk.bf16.mxu0 %vm6513_vm3, %v6512_v47 }
 0x320   : > { %5498 = vmatprep.subr.bf16.mxu0 %v6512_v47 }
 0x323   : > { %5499 = vmatpush3.bf16.msra.mxu0 %v1633_v0 }
 0x324   : > { %5500 = vmatprep.subr.bf16.mxu0 %v6512_v47 }
 0x327   : > { %5501 = vmatpush3.bf16.msra.mxu0 %v1642_v24 }
 0x328   : > { %5502 = vmatprep.subr.bf16.mxu0 %v6512_v47 }
 0x32b   : > { %5503 = vmatpush3.bf16.msra.mxu0 %v1651_v46 }
 0x32c   : > { %5514 = vmatprep.subr.bf16.mxu0 %v6512_v47 }
 0x32e   : > { %5505 = vmatmul.mubr.msk.bf16.vlgmr.msra.gmra.mrb[56].mxu0 %vm1664_vm4, %v6051_v56  ;;  %v4997_v56 = vld [vmem:[%s7752_s6 + $0xa] sm:$0x3] }
 0x32f   : > { %5516 = vmatprep.mubr.msk.bf16.mxu0 %vm6513_vm3, %v6512_v47 }
 0x3ad   : > { %v1702_v62 = vpop.f32.mrb[40].mxu0  ;;  %v1757_v2 = vpop.f32.mrb[40].mxu1 }
 0x3ae   : > { %v5410_v4 = vpop.f32.mrb[41].mxu0  ;;  %v5422_v9 = vpop.f32.mrb[41].mxu1 }
 0x3af   : > { %v1705_v10 = vpop.f32.mrb[42].mxu0  ;;  %v1760_v13 = vpop.f32.mrb[42].mxu1  ;;  %v5003_v4 = vld [vmem:[%s7752_s6 + $0x10] sm:$0x3] }
 0x3b0   : > { %v5411_v14 = vpop.f32.mrb[43].mxu0  ;;  %v5423_v15 = vpop.f32.mrb[43].mxu1  ;;  %v6052_v9 = vld [vmem:[#allocation7] ss:$36 sps:$4 sm:$0xff]  }
 0x3b1   : > { %v6057_v14 = vld [vmem:[#allocation7 + $0xc] ss:$36 sps:$4 sm:$0xff]  }
 0x3b2   : > { %v6060_v15 = vld [vmem:[#allocation7 + $0x4c] ss:$36 sps:$4 sm:$0xff]  }
 0x3cd   : > { %v1812_v16 = vpop.f32.mrb[44].mxu0  ;;  %v1867_v21 = vpop.f32.mrb[44].mxu1 }
 0x3ce   : > { %v5434_v22 = vpop.f32.mrb[45].mxu0  ;;  %v5446_v25 = vpop.f32.mrb[45].mxu1 }
 0x3cf   : > { %v1815_v26 = vpop.f32.mrb[46].mxu0  ;;  %v1870_v27 = vpop.f32.mrb[46].mxu1  ;;  %v6061_v22 = vld [vmem:[#allocation7 + $0x50] ss:$36 sps:$4 sm:$0xff]  }
 0x3d0   : > { %v5435_v28 = vpop.f32.mrb[47].mxu0  ;;  %v5447_v35 = vpop.f32.mrb[47].mxu1  ;;  %v6064_v25 = vld [vmem:[#allocation7 + $0x90] ss:$36 sps:$4 sm:$0xff]  }
 0x3d1   : > { %v6069_v28 = vld [vmem:[#allocation7 + $0x9c] ss:$36 sps:$4 sm:$0xff]  }
 0x3d2   : > { %v6072_v35 = vld [vmem:[#allocation7 + $0xdc] ss:$36 sps:$4 sm:$0xff]  }
 0x3dd   : > { %v1968_v36 = vpop.f32.mrb[48].mxu1 }
 0x3de   : > { %v1969_v39 = vadd.f32 %v1968_v36, %v1702_v62  ;;  %v5470_v40 = vpop.f32.mrb[49].mxu1  ;;  %v4999_v62 = vld [vmem:[%s7752_s6 + $0xc] sm:$0x3]  ;;  %v6075_v36 = vld [vmem:[#allocation7 + $0xe4] ss:$36 sps:$4 sm:$0xff]  }
 0x3df   : > { %v1971_v41 = vpop.f32.mrb[50].mxu1  ;;  %v6073_v40 = vld [vmem:[#allocation7 + $0xe0] ss:$36 sps:$4 sm:$0xff]  }
 0x3e0   : > { %v1972_v42 = vadd.f32 %v1971_v41, %v1705_v10  ;;  %v5471_v50 = vpop.f32.mrb[51].mxu1  ;;  %v6054_v10 = vld [vmem:[#allocation7 + $0x4] ss:$36 sps:$4 sm:$0xff]  }
 0x3e1   : > { %v1919_v52 = vpop.f32.mrb[48].mxu0  ;;  %v6076_v41 = vld [vmem:[#allocation7 + $0x120] ss:$36 sps:$4 sm:$0xff]   ;;  %v6079_v50 = vld [vmem:[#allocation7 + $0x128] ss:$36 sps:$4 sm:$0xff]  }
 0x3e2   : > { %v5458_v59 = vpop.f32.mrb[49].mxu0 }
 0x3e3   : > { %v1922_v60 = vpop.f32.mrb[50].mxu0  ;;  %v6084_v59 = vld [vmem:[#allocation7 + $0x16c] ss:$36 sps:$4 sm:$0xff]  }
 0x3e4   : > { %v5459_v63 = vpop.f32.mrb[51].mxu0 }
 0x3e5   : > { %v6082_v63 = vld [vmem:[#allocation7 + $0x168] ss:$36 sps:$4 sm:$0xff]  }
 0x3ed   : > { %v2066_v0 = vpop.f32.mrb[52].mxu1 }
 0x3ee   : > { %v2067_v11 = vadd.f32 %v2066_v0, %v1812_v16  ;;  %v5494_v12 = vpop.f32.mrb[53].mxu1  ;;  %v6063_v16 = vld [vmem:[#allocation7 + $0x54] ss:$36 sps:$4 sm:$0xff]  }
 0x3ef   : > { %v2069_v19 = vpop.f32.mrb[54].mxu1  ;;  %v6085_v0 = vld [vmem:[#allocation7 + $0x170] ss:$36 sps:$4 sm:$0xff]  }
 0x3f0   : > { %v2070_v20 = vadd.f32 %v2069_v19, %v1815_v26  ;;  %v5495_v23 = vpop.f32.mrb[55].mxu1  ;;  %v6066_v26 = vld [vmem:[#allocation7 + $0x94] ss:$36 sps:$4 sm:$0xff]  }
 0x3f1   : > { %v2017_v24 = vpop.f32.mrb[52].mxu0  ;;  %v6090_v12 = vld [vmem:[#allocation7 + $0x1b4] ss:$36 sps:$4 sm:$0xff]   ;;  %v6096_v23 = vld [vmem:[#allocation7 + $0x1fc] ss:$36 sps:$4 sm:$0xff]  }
 0x3f2   : > { %v2018_v34 = vadd.f32 %v2017_v24, %v1757_v2  ;;  %v5482_v38 = vpop.f32.mrb[53].mxu0  ;;  %v5001_v2 = vld [vmem:[%s7752_s6 + $0xe] sm:$0x3]  ;;  %v6091_v19 = vld [vmem:[#allocation7 + $0x1b8] ss:$36 sps:$4 sm:$0xff]  }
 0x3f3   : > { %v2020_v43 = vpop.f32.mrb[54].mxu0  ;;  %v6099_v24 = vld [vmem:[#allocation7 + $0x204] ss:$36 sps:$4 sm:$0xff]  }
 0x3f4   : > { %v2122_v44 = vadd.f32 %v2018_v34, %v1969_v39  ;;  %v2021_v45 = vadd.f32 %v2020_v43, %v1760_v13  ;;  %v5483_v46 = vpop.f32.mrb[55].mxu0  ;;  %v6055_v13 = vld [vmem:[#allocation7 + $0x8] ss:$36 sps:$4 sm:$0xff]   ;;  %v6070_v39 = vld [vmem:[#allocation7 + $0xd8] ss:$36 sps:$4 sm:$0xff]  }
 0x3f5   : > { %v6094_v34 = vld [vmem:[#allocation7 + $0x1f8] ss:$36 sps:$4 sm:$0xff]   ;;  %v6097_v38 = vld [vmem:[#allocation7 + $0x200] ss:$36 sps:$4 sm:$0xff]  }
 0x3f6   : > { %v2123_v57 = vadd.f32 %v2021_v45, %v1972_v42  ;;  %v6078_v42 = vld [vmem:[#allocation7 + $0x124] ss:$36 sps:$4 sm:$0xff]   ;;  %v6102_v43 = vld [vmem:[#allocation7 + $0x14] ss:$36 sps:$4 sm:$0xff]  }
 0x401   : > { %v2115_v58 = vpop.f32.mrb[56].mxu0 }
 0x402   : > { %v2116_v5 = vadd.f32 %v2115_v58, %v1867_v21  ;;  %v5506_v6 = vpop.f32.mrb[57].mxu0  ;;  %v6058_v21 = vld [vmem:[#allocation7 + $0x48] ss:$36 sps:$4 sm:$0xff]  }
 0x403   : > { %v2118_v7 = vpop.f32.mrb[58].mxu0 }
 0x404   : > { %v2124_v8 = vadd.f32 %v2116_v5, %v2067_v11  ;;  %v2119_v17 = vadd.f32 %v2118_v7, %v1870_v27  ;;  %v5507_v18 = vpop.f32.mrb[59].mxu0  ;;  %v6067_v27 = vld [vmem:[#allocation7 + $0x98] ss:$36 sps:$4 sm:$0xff]   ;;  %v6088_v11 = vld [vmem:[#allocation7 + $0x1b0] ss:$36 sps:$4 sm:$0xff]  }
 0x406   : > { %v2126_v29 = vadd.f32 %v2124_v8, %v2122_v44  ;;  %v2125_v30 = vadd.f32 %v2119_v17, %v2070_v20  ;;  %v6093_v20 = vld [vmem:[#allocation7 + $0x1bc] ss:$36 sps:$4 sm:$0xff]  }
 0x407   : > { %v6105_v44 = vld [vmem:[#allocation7 + $0x1c] ss:$36 sps:$4 sm:$0xff]  }
 0x408   : > { %v2128_v31 = vadd.f32 %v2126_v29, %v1919_v52  ;;  %v2127_v32 = vadd.f32 %v2125_v30, %v2123_v57  ;;  %v6081_v52 = vld [vmem:[#allocation7 + $0x12c] ss:$36 sps:$4 sm:$0xff]  }
 0x40a   : > { %v2129_v53 = vadd.f32 %v2127_v32, %v1922_v60  ;;  %v2137_v55 = vadd.f32 %v4987_v48, %v2128_v31  ;;  %v6087_v60 = vld [vmem:[#allocation7 + $0x174] ss:$36 sps:$4 sm:$0xff]  }
 0x40c   : > { %v2138_v33 = vadd.f32 %v4987_v48, %v2129_v53 }
 0x40e   : > { %v2139_v37 = vpack.c.bf16 %v2138_v33, %v2137_v55 }
 0x410   : > { %5509 = vmatpush3.bf16.msra.mxu1 %v2139_v37  ;;  %5515 = vmatpush3.bf16.msra.mxu0 %v2139_v37 }
 0x411   : > { %5520 = vmatprep.subr.bf16.mxu1 %v6512_v47  ;;  %5526 = vmatprep.subr.bf16.mxu0 %v6512_v47 }
 0x413   : > { %5511 = vmatmul.mubr.msk.bf16.vlgmr.msra.gmra.mrb[56].mxu1 %vm2141_vm5, %v2140_v61  ;;  %5517 = vmatmul.mubr.msk.bf16.vlgmr.msra.gmra.mrb[60].mxu0 %vm2141_vm5, %v4989_v1 }
 0x414   : > { %5521 = vmatpush3.bf16.msra.mxu1 %v2139_v37  ;;  %5527 = vmatpush3.bf16.msra.mxu0 %v2139_v37 }
 0x415   : > { %5522 = vmatprep.mubr.msk.bf16.mxu1 %vm6513_vm3, %v6512_v47  ;;  %5528 = vmatprep.mubr.msk.bf16.mxu0 %vm6513_vm3, %v6512_v47 }
 0x416   : > { %5532 = vmatprep.subr.bf16.mxu1 %v6512_v47  ;;  %5538 = vmatprep.subr.bf16.mxu0 %v6512_v47 }
 0x41b   : > { %5523 = vmatmul.mubr.msk.bf16.vlgmr.msra.gmra.mrb[60].mxu1 %vm2141_vm5, %v4991_v3  ;;  %5529 = vmatmul.mubr.msk.bf16.vlgmr.msra.gmra.mrb[64].mxu0 %vm2141_vm5, %v4993_v49 }
 0x41c   : > { %5533 = vmatpush3.bf16.msra.mxu1 %v2139_v37  ;;  %5539 = vmatpush3.bf16.msra.mxu0 %v2139_v37 }
 0x41d   : > { %5534 = vmatprep.mubr.msk.bf16.mxu1 %vm6513_vm3, %v6512_v47  ;;  %5540 = vmatprep.mubr.msk.bf16.mxu0 %vm6513_vm3, %v6512_v47 }
 0x41e   : > { %5544 = vmatprep.subr.bf16.mxu1 %v6512_v47  ;;  %5550 = vmatprep.subr.bf16.mxu0 %v6512_v47 }
 0x423   : > { %5535 = vmatmul.mubr.msk.bf16.vlgmr.msra.gmra.mrb[64].mxu1 %vm2141_vm5, %v4995_v54  ;;  %5541 = vmatmul.mubr.msk.bf16.vlgmr.msra.gmra.mrb[68].mxu0 %vm2141_vm5, %v4997_v56 }
 0x424   : > { %5545 = vmatpush3.bf16.msra.mxu1 %v2139_v37  ;;  %5551 = vmatpush3.bf16.msra.mxu0 %v2139_v37 }
 0x425   : > { %5546 = vmatprep.mubr.msk.bf16.mxu1 %vm6513_vm3, %v6512_v47  ;;  %5552 = vmatprep.mubr.msk.bf16.mxu0 %vm6513_vm3, %v6512_v47 }
 0x426   : > { %5556 = vmatprep.subr.bf16.mxu1 %v6512_v47  ;;  %3002 = vmatprep.subr.bf16.mxu0 %v6054_v10 }
 0x42b   : > { %5547 = vmatmul.mubr.msk.bf16.vlgmr.msra.gmra.mrb[68].mxu1 %vm2141_vm5, %v4999_v62  ;;  %5553 = vmatmul.mubr.msk.bf16.vlgmr.msra.gmra.mrb[72].mxu0 %vm2141_vm5, %v5001_v2 }
 0x42c   : > { %5557 = vmatpush3.bf16.msra.mxu1 %v2139_v37  ;;  %5558 = vmatprep.mubr.msk.bf16.mxu1 %vm6513_vm3, %v6512_v47 }
 0x42d   : > { %3034 = vmatprep.mubr.bf16.mxu0 %v6511_v51  ;;  %3043 = vmatprep.subr.bf16.mxu1 %v6057_v14 }
 0x42e   : > { %3003 = vmatpush1.bf16.msra.mxu0 %v6052_v9 }
 0x42f   : > { %3004 = vmatprep.subr.bf16.mxu0 %v6060_v15 }
 0x432   : > { %3005 = vmatpush1.bf16.msra.mxu0 %v6058_v21 }
 0x433   : > { %5559 = vmatmul.mubr.msk.bf16.vlgmr.msra.gmra.mrb[72].mxu1 %vm2141_vm5, %v5003_v4  ;;  %3006 = vmatprep.subr.bf16.mxu0 %v6066_v26 }
 0x434   : > { %3075 = vmatprep.mubr.bf16.mxu1 %v6511_v51  ;;  %3044 = vmatpush1.bf16.msra.mxu1 %v6055_v13 }
 0x435   : > { %3045 = vmatprep.subr.bf16.mxu1 %v6063_v16 }
 0x436   : > { %3007 = vmatpush1.bf16.msra.mxu0 %v6064_v25 }
 0x437   : > { %3008 = vmatprep.subr.bf16.mxu0 %v6072_v35 }
 0x438   : > { %3046 = vmatpush1.bf16.msra.mxu1 %v6061_v22 }
 0x439   : > { %3047 = vmatprep.subr.bf16.mxu1 %v6069_v28 }
 0x43a   : > { %3009 = vmatpush1.bf16.msra.mxu0 %v6070_v39 }
 0x43b   : > { %3010 = vmatprep.subr.bf16.mxu0 %v6078_v42 }
 0x43c   : > { %3048 = vmatpush1.bf16.msra.mxu1 %v6067_v27 }
 0x43d   : > { %3049 = vmatprep.subr.bf16.mxu1 %v6075_v36 }
 0x43e   : > { %3011 = vmatpush1.bf16.msra.mxu0 %v6076_v41  ;;  %v6103_v41 = vld [vmem:[#allocation7 + $0x18] ss:$36 sps:$4 sm:$0xff]  }
 0x43f   : > { %3012 = vmatprep.subr.bf16.mxu0 %v6084_v59  ;;  %v6111_v59 = vld [vmem:[#allocation7 + $0x64] ss:$36 sps:$4 sm:$0xff]  }
 0x440   : > { %3050 = vmatpush1.bf16.msra.mxu1 %v6073_v40  ;;  %v6100_v40 = vld [vmem:[#allocation7 + $0x10] ss:$36 sps:$4 sm:$0xff]  }
 0x441   : > { %3051 = vmatprep.subr.bf16.mxu1 %v6081_v52  ;;  %v6108_v52 = vld [vmem:[#allocation7 + $0x5c] ss:$36 sps:$4 sm:$0xff]  }
 0x442   : > { %3013 = vmatpush1.bf16.msra.mxu0 %v6082_v63  ;;  %v6109_v63 = vld [vmem:[#allocation7 + $0x60] ss:$36 sps:$4 sm:$0xff]  }
 0x443   : > { %3014 = vmatprep.subr.bf16.mxu0 %v6090_v12  ;;  %v6112_v12 = vld [vmem:[#allocation7 + $0xa0] ss:$36 sps:$4 sm:$0xff]  }
 0x444   : > { %3052 = vmatpush1.bf16.msra.mxu1 %v6079_v50 }
 0x445   : > { %3053 = vmatprep.subr.bf16.mxu1 %v6087_v60  ;;  %v6106_v60 = vld [vmem:[#allocation7 + $0x58] ss:$36 sps:$4 sm:$0xff]  }
 0x446   : > { %3015 = vmatpush1.bf16.msra.mxu0 %v6088_v11  ;;  %v6117_v11 = vld [vmem:[#allocation7 + $0xac] ss:$36 sps:$4 sm:$0xff]  }
 0x447   : > { %3016 = vmatprep.subr.bf16.mxu0 %v6096_v23  ;;  %v6123_v23 = vld [vmem:[#allocation7 + $0xf4] ss:$36 sps:$4 sm:$0xff]  }
 0x448   : > { %3054 = vmatpush1.bf16.msra.mxu1 %v6085_v0  ;;  %v6114_v0 = vld [vmem:[#allocation7 + $0xa4] ss:$36 sps:$4 sm:$0xff]  }
 0x449   : > { %3055 = vmatprep.subr.bf16.mxu1 %v6093_v20  ;;  %v6120_v20 = vld [vmem:[#allocation7 + $0xec] ss:$36 sps:$4 sm:$0xff]  }
 0x44a   : > { %3017 = vmatpush1.bf16.msra.mxu0 %v6094_v34  ;;  %v6121_v34 = vld [vmem:[#allocation7 + $0xf0] ss:$36 sps:$4 sm:$0xff]  }
 0x44b   : > { %3084 = vmatprep.subr.bf16.mxu0 %v6102_v43  ;;  %v6129_v43 = vld [vmem:[#allocation7 + $0x13c] ss:$36 sps:$4 sm:$0xff]  }
 0x44c   : > { %3056 = vmatpush1.bf16.msra.mxu1 %v6091_v19  ;;  %v6115_v19 = vld [vmem:[#allocation7 + $0xa8] ss:$36 sps:$4 sm:$0xff]  }
 0x44d   : > { %3057 = vmatprep.subr.bf16.mxu1 %v6099_v24  ;;  %v6118_v24 = vld [vmem:[#allocation7 + $0xe8] ss:$36 sps:$4 sm:$0xff]  }
 0x450   : > { %3058 = vmatpush1.bf16.msra.mxu1 %v6097_v38  ;;  %v6126_v38 = vld [vmem:[#allocation7 + $0x134] ss:$36 sps:$4 sm:$0xff]  }
 0x451   : > { %3125 = vmatprep.subr.bf16.mxu1 %v6105_v44  ;;  %v6124_v44 = vld [vmem:[#allocation7 + $0x130] ss:$36 sps:$4 sm:$0xff]  }
 0x4e6   : > { %v2179_v45 = vpop.f32.mrb[56].mxu1  ;;  %v2224_v46 = vpop.f32.mrb[60].mxu0 }
 0x4e7   : > { %v2545_v57 = vmax.f32 %v2179_v45, %v2224_v46  ;;  %v5512_v58 = vpop.f32.mrb[57].mxu1  ;;  %v5518_v5 = vpop.f32.mrb[61].mxu0  ;;  %v6132_v45 = vld [vmem:[#allocation7 + $0x17c] ss:$36 sps:$4 sm:$0xff]   ;;  %v6135_v46 = vld [vmem:[#allocation7 + $0x184] ss:$36 sps:$4 sm:$0xff]  }
 0x4e8   : > { %v2182_v6 = vpop.f32.mrb[58].mxu1  ;;  %v2227_v7 = vpop.f32.mrb[62].mxu0  ;;  %v6133_v58 = vld [vmem:[#allocation7 + $0x180] ss:$36 sps:$4 sm:$0xff]  }
 0x4e9   : > { %v5513_v8 = vpop.f32.mrb[59].mxu1  ;;  %v5519_v17 = vpop.f32.mrb[63].mxu0  ;;  %v6138_v5 = vld [vmem:[#allocation7 + $0x1c4] ss:$36 sps:$4 sm:$0xff]   ;;  %v6141_v6 = vld [vmem:[#allocation7 + $0x1cc] ss:$36 sps:$4 sm:$0xff]  }
 0x4ea   : > { %v6136_v7 = vld [vmem:[#allocation7 + $0x1c0] ss:$36 sps:$4 sm:$0xff]   ;;  %v6139_v8 = vld [vmem:[#allocation7 + $0x1c8] ss:$36 sps:$4 sm:$0xff]  }
 0x4eb   : > { %v6144_v17 = vld [vmem:[#allocation7 + $0x20c] ss:$36 sps:$4 sm:$0xff]  }
 0x4ee   : > { %v2269_v18 = vpop.f32.mrb[60].mxu1  ;;  %v2314_v29 = vpop.f32.mrb[64].mxu0 }
 0x4ef   : > { %v2546_v30 = vmax.f32 %v2269_v18, %v2314_v29  ;;  %v5524_v31 = vpop.f32.mrb[61].mxu1  ;;  %v5530_v32 = vpop.f32.mrb[65].mxu0  ;;  %v6147_v18 = vld [vmem:[#allocation7 + $0x214] ss:$36 sps:$4 sm:$0xff]   ;;  %v6142_v29 = vld [vmem:[#allocation7 + $0x208] ss:$36 sps:$4 sm:$0xff]  }
 0x4f0   : > { %v2272_v48 = vpop.f32.mrb[62].mxu1  ;;  %v2317_v53 = vpop.f32.mrb[66].mxu0  ;;  %v6148_v31 = vld [vmem:[#allocation7 + $0x20] ss:$36 sps:$4 sm:$0xff]   ;;  %v6149_v32 = vld [vmem:[#allocation7 + $0x68] ss:$36 sps:$4 sm:$0xff]  }
 0x4f1   : > { %v2549_v55 = vmax.f32 %v2545_v57, %v2546_v30  ;;  %v5525_v33 = vpop.f32.mrb[63].mxu1  ;;  %v5531_v37 = vpop.f32.mrb[67].mxu0  ;;  %v6130_v57 = vld [vmem:[#allocation7 + $0x178] ss:$36 sps:$4 sm:$0xff]   ;;  %v6145_v30 = vld [vmem:[#allocation7 + $0x210] ss:$36 sps:$4 sm:$0xff]  }
 0x4f2   : > { %v6150_v48 = vld [vmem:[#allocation7 + $0xb0] ss:$36 sps:$4 sm:$0xff]   ;;  %v6151_v53 = vld [vmem:[#allocation7 + $0xf8] ss:$36 sps:$4 sm:$0xff]   ;;  %v6153_v33 = vld [vmem:[#allocation7 + $0x188] ss:$36 sps:$4 sm:$0xff]  }
 0x4f3   : > { %v6154_v37 = vld [vmem:[#allocation7 + $0x1d0] ss:$36 sps:$4 sm:$0xff]  }
 0x4f6   : > { %v2359_v61 = vpop.f32.mrb[64].mxu1  ;;  %v2404_v1 = vpop.f32.mrb[68].mxu0 }
 0x4f7   : > { %v2547_v3 = vmax.f32 %v2359_v61, %v2404_v1  ;;  %v5536_v49 = vpop.f32.mrb[65].mxu1  ;;  %v5542_v54 = vpop.f32.mrb[69].mxu0  ;;  %v6155_v61 = vld [vmem:[#allocation7 + $0x218] ss:$36 sps:$4 sm:$0xff]  }
 0x4f8   : > { %v2362_v56 = vpop.f32.mrb[66].mxu1  ;;  %v2407_v62 = vpop.f32.mrb[70].mxu0 }
 0x4f9   : > { %v5537_v2 = vpop.f32.mrb[67].mxu1  ;;  %v5543_v4 = vpop.f32.mrb[71].mxu0 }
 0x4fe   : > { %v2449_v9 = vpop.f32.mrb[68].mxu1  ;;  %v2494_v10 = vpop.f32.mrb[72].mxu0 }
 0x4ff   : > { %v2548_v13 = vmax.f32 %v2449_v9, %v2494_v10  ;;  %v5548_v14 = vpop.f32.mrb[69].mxu1  ;;  %v5554_v15 = vpop.f32.mrb[73].mxu0 }
 0x500   : > { %v2452_v16 = vpop.f32.mrb[70].mxu1  ;;  %v2497_v21 = vpop.f32.mrb[74].mxu0  ;;  %v5077_v14 = vld [vmem:[%s7753_s7 + $0x2] sm:$0x3] }
 0x501   : > { %v2550_v22 = vmax.f32 %v2547_v3, %v2548_v13  ;;  %v5549_v25 = vpop.f32.mrb[71].mxu1  ;;  %v5555_v26 = vpop.f32.mrb[75].mxu0  ;;  %v5080_v16 = vld [vmem:[%s7753_s7 + $0x6] sm:$0x3] }
 0x503   : > { %v2551_v27 = vmax.f32 %v2549_v55, %v2550_v22  ;;  %v6152_v55 = vld [vmem:[#allocation7 + $0x140] ss:$36 sps:$4 sm:$0xff]  }
 0x506   : > { %v2539_v28 = vpop.f32.mrb[72].mxu1 }
 0x507   : > { %v2552_v35 = vmax.f32 %v2551_v27, %v2539_v28  ;;  %v5560_v36 = vpop.f32.mrb[73].mxu1 }
 0x508   : > { %v2542_v39 = vpop.f32.mrb[74].mxu1 }
 0x509   : > { %v7409_v42 = vpack.c.bf16 %v2552_v35, %v2552_v35  ;;  %v5561_v50 = vpop.f32.mrb[75].mxu1 }
 0x50b   : > { %3035 = vmatmul.mubr.bf16.vlgmr.msra.gmra.mrb[76].mxu0 %v7409_v42  ;;  %3076 = vmatmul.mubr.bf16.vlgmr.msra.gmra.mrb[76].mxu1 %v7409_v42 }
 0x50c   : > { %3085 = vmatpush1.bf16.msra.mxu0 %v6100_v40  ;;  %3126 = vmatpush1.bf16.msra.mxu1 %v6103_v41 }
 0x50d   : > { %3086 = vmatprep.subr.bf16.mxu0 %v6108_v52  ;;  %3127 = vmatprep.subr.bf16.mxu1 %v6111_v59  ;;  %v5086_v59 = vld [vmem:[%s7753_s7 + $0xe] sm:$0x3] }
 0x50e   : > { %3116 = vmatprep.mubr.bf16.mxu0 %v6511_v51  ;;  %3157 = vmatprep.mubr.bf16.mxu1 %v6511_v51  ;;  %v6127_v51 = vld [vmem:[#allocation7 + $0x138] ss:$36 sps:$4 sm:$0xff]  }
 0x510   : > { %3087 = vmatpush1.bf16.msra.mxu0 %v6106_v60  ;;  %3128 = vmatpush1.bf16.msra.mxu1 %v6109_v63 }
 0x511   : > { %3088 = vmatprep.subr.bf16.mxu0 %v6114_v0  ;;  %3129 = vmatprep.subr.bf16.mxu1 %v6117_v11  ;;  %v3215_v0 = vld [vmem:[%s7753_s7] sm:$0x3] }
 0x514   : > { %3089 = vmatpush1.bf16.msra.mxu0 %v6112_v12  ;;  %3130 = vmatpush1.bf16.msra.mxu1 %v6115_v19  ;;  %v5082_v12 = vld [vmem:[%s7753_s7 + $0x8] sm:$0x3] }
 0x515   : > { %3090 = vmatprep.subr.bf16.mxu0 %v6120_v20  ;;  %3131 = vmatprep.subr.bf16.mxu1 %v6123_v23 }
 0x518   : > { %3091 = vmatpush1.bf16.msra.mxu0 %v6118_v24  ;;  %3132 = vmatpush1.bf16.msra.mxu1 %v6121_v34 }
 0x519   : > { %3092 = vmatprep.subr.bf16.mxu0 %v6126_v38  ;;  %3133 = vmatprep.subr.bf16.mxu1 %v6129_v43 }
 0x51c   : > { %3093 = vmatpush1.bf16.msra.mxu0 %v6124_v44  ;;  %3134 = vmatpush1.bf16.msra.mxu1 %v6127_v51  ;;  %v5088_v44 = vld [vmem:[%s7753_s7 + $0x10] sm:$0x3] }
 0x51d   : > { %3094 = vmatprep.subr.bf16.mxu0 %v6132_v45  ;;  %3135 = vmatprep.subr.bf16.mxu1 %v6135_v46  ;;  %v5079_v46 = vld [vmem:[%s7753_s7 + $0x4] sm:$0x3] }
 0x520   : > { %3095 = vmatpush1.bf16.msra.mxu0 %v6130_v57  ;;  %3136 = vmatpush1.bf16.msra.mxu1 %v6133_v58  ;;  %v5085_v58 = vld [vmem:[%s7753_s7 + $0xc] sm:$0x3] }
 0x521   : > { %3096 = vmatprep.subr.bf16.mxu0 %v6138_v5  ;;  %3137 = vmatprep.subr.bf16.mxu1 %v6141_v6  ;;  %v6157_v5 = vld [vmem:[#allocation10] sm:$0xff]   ;;  %v6158_v6 = vld [vmem:[#allocation10 + $0x8] sm:$0xff]  }
 0x524   : > { %3097 = vmatpush1.bf16.msra.mxu0 %v6136_v7  ;;  %3138 = vmatpush1.bf16.msra.mxu1 %v6139_v8  ;;  %v6159_v7 = vld [vmem:[#allocation10 + $0x10] sm:$0xff]   ;;  %v6160_v8 = vld [vmem:[#allocation10 + $0x18] sm:$0xff]  }
 0x525   : > { %3098 = vmatprep.subr.bf16.mxu0 %v6144_v17  ;;  %3139 = vmatprep.subr.bf16.mxu1 %v6147_v18  ;;  %v6161_v17 = vld [vmem:[#allocation10 + $0x20] sm:$0xff]   ;;  %v6162_v18 = vld [vmem:[#allocation10 + $0x28] sm:$0xff]  }
 0x528   : > { %3099 = vmatpush1.bf16.msra.mxu0 %v6142_v29  ;;  %3140 = vmatpush1.bf16.msra.mxu1 %v6145_v30  ;;  %v6163_v29 = vld [vmem:[#allocation10 + $0x30] sm:$0xff]  }
 0x529   : > { %5562 = vmatprep.subr.bf16.mxu0 %v6512_v47  ;;  %5582 = vmatprep.subr.bf16.mxu1 %v6512_v47 }
 0x52b   : > { %3117 = vmatmul.mubr.bf16.vlgmr.msra.gmra.mrb[80].mxu0 %v7409_v42  ;;  %3158 = vmatmul.mubr.bf16.vlgmr.msra.gmra.mrb[80].mxu1 %v7409_v42 }
 0x52c   : > { %5563 = vmatpush3.bf16.msra.mxu0 %v6148_v31  ;;  %5578 = vmatprep.mubr.msk.bf16.mxu0 %vm6513_vm3, %v6512_v47 }
 0x52d   : > { %5564 = vmatprep.subr.bf16.mxu0 %v6512_v47  ;;  %5584 = vmatprep.mubr.msk.bf16.mxu1 %vm6513_vm3, %v6512_v47 }
 0x530   : > { %5565 = vmatpush3.bf16.msra.mxu0 %v6149_v32 }
 0x531   : > { %5566 = vmatprep.subr.bf16.mxu0 %v6512_v47 }
 0x534   : > { %5567 = vmatpush3.bf16.msra.mxu0 %v6150_v48 }
 0x535   : > { %5568 = vmatprep.subr.bf16.mxu0 %v6512_v47 }
 0x538   : > { %5569 = vmatpush3.bf16.msra.mxu0 %v6151_v53 }
 0x539   : > { %5570 = vmatprep.subr.bf16.mxu0 %v6512_v47 }
 0x53c   : > { %5571 = vmatpush3.bf16.msra.mxu0 %v6152_v55 }
 0x53d   : > { %5572 = vmatprep.subr.bf16.mxu0 %v6512_v47 }
 0x540   : > { %5573 = vmatpush3.bf16.msra.mxu0 %v6153_v33 }
 0x541   : > { %5574 = vmatprep.subr.bf16.mxu0 %v6512_v47 }
 0x544   : > { %5575 = vmatpush3.bf16.msra.mxu0 %v6154_v37 }
 0x545   : > { %5576 = vmatprep.subr.bf16.mxu0 %v6512_v47 }
 0x548   : > { %5577 = vmatpush3.bf16.msra.mxu0 %v6155_v61 }
 0x549   : > { %5606 = vmatprep.subr.bf16.mxu0 %v6512_v47 }
 0x54b   : > { %5579 = vmatmul.mubr.bf16.vlgmr.msra.gmra.mrb[84].mxu0 %v7409_v42  ;;  %v5083_v42 = vld [vmem:[%s7753_s7 + $0xa] sm:$0x3] }
 0x54c   : > { %5608 = vmatprep.mubr.msk.bf16.mxu0 %vm6513_vm3, %v6512_v47 }
 0x5de   : > { %v3036_v1 = vpop.f32.mrb[76].mxu0  ;;  %v7434_v3 = vpop.f32.mrb[76].mxu1 }
 0x5df   : > { %v3038_v49 = vpop.f32.mrb[77].mxu0  ;;  %v3079_v54 = vpop.f32.mrb[77].mxu1  ;;  %v3206_v52 = vpack.c.bf16 %v3036_v1, %v3036_v1  ;;  %v3208_v34 = vpack.c.bf16 %v7434_v3, %v7434_v3 }
 0x5e0   : > { %v3207_v56 = vpack.c.bf16 %v3038_v49, %v3038_v49  ;;  %v3040_v62 = vpop.f32.mrb[78].mxu0  ;;  %v3081_v2 = vpop.f32.mrb[78].mxu1  ;;  %v3209_v13 = vpack.c.bf16 %v3079_v54, %v3079_v54 }
 0x5e1   : > { %v3041_v4 = vpop.f32.mrb[79].mxu0  ;;  %v3082_v9 = vpop.f32.mrb[79].mxu1  ;;  %v3468_v60 = vsel %vm3222_vm6, %v3206_v52, 0  ;;  %v3514_v51 = vsel %vm3222_vm6, %v3208_v34, 0 }
 0x5e2   : > { %v3224_v10 = vsel %vm3222_vm6, %v3207_v56, 0  ;;  %v3274_v15 = vsel %vm3222_vm6, %v3209_v13, 0 }
 0x5e3   : > { %5583 = vmatpush3.bf16.msra.mxu1 %v3224_v10 }
 0x5e4   : > { %5588 = vmatprep.subr.bf16.mxu1 %v6512_v47 }
 0x5e6   : > { %5585 = vmatmul.mubr.msk.bf16.vlgmr.msra.gmra.mrb[84].mxu1 %vm3218_vm7, %v5077_v14 }
 0x5e7   : > { %5589 = vmatpush3.bf16.msra.mxu1 %v3274_v15  ;;  %5590 = vmatprep.mubr.msk.bf16.mxu1 %vm6513_vm3, %v6512_v47 }
 0x5e8   : > { %5594 = vmatprep.subr.bf16.mxu1 %v6512_v47 }
 0x5ee   : > { %5591 = vmatmul.mubr.msk.bf16.vlgmr.msra.gmra.mrb[88].mxu1 %vm3218_vm7, %v5080_v16 }
 0x5ef   : > { %5596 = vmatprep.mubr.msk.bf16.mxu1 %vm6513_vm3, %v6512_v47 }
 0x5fe   : > { %v3118_v21 = vpop.f32.mrb[80].mxu0  ;;  %v3159_v22 = vpop.f32.mrb[80].mxu1 }
 0x5ff   : > { %v3120_v25 = vpop.f32.mrb[81].mxu0  ;;  %v3161_v26 = vpop.f32.mrb[81].mxu1  ;;  %v3210_v63 = vpack.c.bf16 %v3118_v21, %v3118_v21  ;;  %v3212_v45 = vpack.c.bf16 %v3159_v22, %v3159_v22 }
 0x600   : > { %v3211_v27 = vpack.c.bf16 %v3120_v25, %v3120_v25  ;;  %v3122_v28 = vpop.f32.mrb[82].mxu0  ;;  %v3163_v35 = vpop.f32.mrb[82].mxu1  ;;  %v3213_v41 = vpack.c.bf16 %v3161_v26, %v3161_v26 }
 0x601   : > { %v3123_v36 = vpop.f32.mrb[83].mxu0  ;;  %v3164_v39 = vpop.f32.mrb[83].mxu1  ;;  %v3560_v11 = vsel %vm3222_vm6, %v3210_v63, 0  ;;  %v3606_v57 = vsel %vm3222_vm6, %v3212_v45, 0 }
 0x602   : > { %v3324_v40 = vsel %vm3222_vm6, %v3211_v27, 0  ;;  %v3374_v50 = vsel %vm3222_vm6, %v3213_v41, 0 }
 0x603   : > { %5595 = vmatpush3.bf16.msra.mxu1 %v3324_v40 }
 0x604   : > { %5600 = vmatprep.subr.bf16.mxu1 %v6512_v47 }
 0x606   : > { %5597 = vmatmul.mubr.msk.bf16.vlgmr.msra.gmra.mrb[92].mxu1 %vm3218_vm7, %v5083_v42 }
 0x607   : > { %5601 = vmatpush3.bf16.msra.mxu1 %v3374_v50  ;;  %5602 = vmatprep.mubr.msk.bf16.mxu1 %vm6513_vm3, %v6512_v47 }
 0x608   : > { %5612 = vmatprep.subr.bf16.mxu1 %v6512_v47 }
 0x60e   : > { %5603 = vmatmul.mubr.msk.bf16.vlgmr.msra.gmra.mrb[96].mxu1 %vm3218_vm7, %v5086_v59 }
 0x60f   : > { %5613 = vmatpush3.bf16.msra.mxu1 %v3468_v60  ;;  %5614 = vmatprep.mubr.msk.bf16.mxu1 %vm6513_vm3, %v6512_v47 }
 0x610   : > { %5624 = vmatprep.subr.bf16.mxu1 %v6512_v47 }
 0x616   : > { %5615 = vmatmul.mubr.msk.bf16.vlgmr.msra.gmra.mrb[100].mxu1 %vm3218_vm7, %v3215_v0 }
 0x617   : > { %5625 = vmatpush3.bf16.msra.mxu1 %v3560_v11  ;;  %5626 = vmatprep.mubr.msk.bf16.mxu1 %vm6513_vm3, %v6512_v47 }
 0x618   : > { %5636 = vmatprep.subr.bf16.mxu1 %v6512_v47 }
 0x61e   : > { %v3200_v19 = vpop.f32.mrb[84].mxu0  ;;  %5627 = vmatmul.mubr.msk.bf16.vlgmr.msra.gmra.mrb[104].mxu1 %vm3218_vm7, %v5082_v12 }
 0x61f   : > { %v3214_v20 = vpack.c.bf16 %v3200_v19, %v3200_v19  ;;  %v5580_v23 = vpop.f32.mrb[85].mxu0  ;;  %5638 = vmatprep.mubr.msk.bf16.mxu1 %vm6513_vm3, %v6512_v47  ;;  %v5094_v19 = vld [vmem:[#allocation9] ss:$0 sm:$0xff] }
 0x620   : > { %v3203_v24 = vpop.f32.mrb[86].mxu0 }
 0x621   : > { %v3422_v38 = vsel %vm3222_vm6, %v3214_v20, 0  ;;  %v5581_v43 = vpop.f32.mrb[87].mxu0 }
 0x622   : > { %5607 = vmatpush3.bf16.msra.mxu0 %v3422_v38  ;;  %v6156_v38 = vld [vmem:[%s7756_s10] sm:$0xff]  }
 0x623   : > { %5618 = vmatprep.subr.bf16.mxu0 %v6512_v47  ;;  %v6164_v43 = vld [vmem:[#allocation10 + $0x38] sm:$0xff]  }
 0x625   : > { %5609 = vmatmul.mubr.msk.bf16.vlgmr.msra.gmra.mrb[88].mxu0 %vm3218_vm7, %v5088_v44 }
 0x626   : > { %5619 = vmatpush3.bf16.msra.mxu0 %v3514_v51  ;;  %5620 = vmatprep.mubr.msk.bf16.mxu0 %vm6513_vm3, %v6512_v47 }
 0x627   : > { %5630 = vmatprep.subr.bf16.mxu0 %v6512_v47 }
 0x62d   : > { %5621 = vmatmul.mubr.msk.bf16.vlgmr.msra.gmra.mrb[92].mxu0 %vm3218_vm7, %v5079_v46 }
 0x62e   : > { %5631 = vmatpush3.bf16.msra.mxu0 %v3606_v57  ;;  %5632 = vmatprep.mubr.msk.bf16.mxu0 %vm6513_vm3, %v6512_v47 }
 0x62f   : > { %5642 = vmatprep.subr.bf16.mxu0 %v6512_v47 }
 0x635   : > { %5633 = vmatmul.mubr.msk.bf16.vlgmr.msra.gmra.mrb[96].mxu0 %vm3218_vm7, %v5085_v58  ;;  %v5097_v58 = vld [vmem:[#allocation12] ss:$0 sm:$0xff] }
 0x636   : > { %5658 = vmatprep.mubr.msk.bf16.mxu0 %vm6513_vm3, %v6512_v47  ;;  %5643 = vmatpush3.bf16.msra.mxu0 %v6157_v5 }
 0x637   : > { %5644 = vmatprep.subr.bf16.mxu0 %v6512_v47 }
 0x63a   : > { %5645 = vmatpush3.bf16.msra.mxu0 %v6158_v6 }
 0x63b   : > { %5646 = vmatprep.subr.bf16.mxu0 %v6512_v47 }
 0x63e   : > { %5647 = vmatpush3.bf16.msra.mxu0 %v6159_v7 }
 0x63f   : > { %5648 = vmatprep.subr.bf16.mxu0 %v6512_v47 }
 0x642   : > { %5649 = vmatpush3.bf16.msra.mxu0 %v6160_v8 }
 0x643   : > { %5650 = vmatprep.subr.bf16.mxu0 %v6512_v47 }
 0x646   : > { %5651 = vmatpush3.bf16.msra.mxu0 %v6161_v17 }
 0x647   : > { %5652 = vmatprep.subr.bf16.mxu0 %v6512_v47 }
 0x64a   : > { %5653 = vmatpush3.bf16.msra.mxu0 %v6162_v18 }
 0x64b   : > { %5654 = vmatprep.subr.bf16.mxu0 %v6512_v47 }
 0x64e   : > { %5655 = vmatpush3.bf16.msra.mxu0 %v6163_v29 }
 0x64f   : > { %5656 = vmatprep.subr.bf16.mxu0 %v6512_v47 }
 0x652   : > { %5657 = vmatpush3.bf16.msra.mxu0 %v6164_v43  ;;  %v6177_v43 = vld [vmem:[%s7802_s29 + $0x28] sm:$0xff]  }
 0x653   : > { %5704 = vmatprep.subr.bf16.mxu0 %v6512_v47 }
 0x6b9   : > { %v3260_v30 = vpop.f32.mrb[84].mxu1 }
 0x6ba   : > { %v5586_v31 = vpop.f32.mrb[85].mxu1 }
 0x6bb   : > { %v3263_v32 = vpop.f32.mrb[86].mxu1  ;;  %v6168_v31 = vld [vmem:[#allocation13] sm:$0xff]  }
 0x6bc   : > { %v5587_v48 = vpop.f32.mrb[87].mxu1  ;;  %v6169_v32 = vld [vmem:[#allocation13 + $0x8] sm:$0xff]  }
 0x6bd   : > { %v6166_v48 = vld [vmem:[%s7801_s1 + $0x8] sm:$0xff]  }
 0x6c1   : > { %v3310_v53 = vpop.f32.mrb[88].mxu1 }
 0x6c2   : > { %v5592_v55 = vpop.f32.mrb[89].mxu1 }
 0x6c3   : > { %v3313_v33 = vpop.f32.mrb[90].mxu1  ;;  %v6171_v55 = vld [vmem:[#allocation13 + $0x18] sm:$0xff]  }
 0x6c4   : > { %v5593_v37 = vpop.f32.mrb[91].mxu1  ;;  %v6167_v33 = vld [vmem:[%s7801_s1 + $0x10] ss:$0 sps:$4 sm:$0x33]  }
 0x6c5   : > { %v6172_v37 = vld [vmem:[#allocation13 + $0x20] sm:$0xff]  }
 0x6d9   : > { %v3360_v61 = vpop.f32.mrb[92].mxu1 }
 0x6da   : > { %v5598_v1 = vpop.f32.mrb[93].mxu1 }
 0x6db   : > { %v3363_v3 = vpop.f32.mrb[94].mxu1  ;;  %v6174_v1 = vld [vmem:[#allocation13 + $0x30] sm:$0xff]  }
 0x6dc   : > { %v5599_v49 = vpop.f32.mrb[95].mxu1  ;;  %v6175_v3 = vld [vmem:[#allocation13 + $0x38] sm:$0xff]  }
 0x6e1   : > { %v3410_v54 = vpop.f32.mrb[96].mxu1 }
 0x6e2   : > { %v5604_v56 = vpop.f32.mrb[97].mxu1 }
 0x6e3   : > { %v3413_v62 = vpop.f32.mrb[98].mxu1 }
 0x6e4   : > { %v5605_v2 = vpop.f32.mrb[99].mxu1 }
 0x6e9   : > { %v3504_v4 = vpop.f32.mrb[100].mxu1 }
 0x6ea   : > { %v3505_v9 = vadd.f32 %v3504_v4, %v3260_v30  ;;  %v5616_v10 = vpop.f32.mrb[101].mxu1  ;;  %v6165_v30 = vld [vmem:[%s7801_s1] sm:$0xff]  }
 0x6eb   : > { %v3507_v13 = vpop.f32.mrb[102].mxu1 }
 0x6ec   : > { %v5617_v14 = vpop.f32.mrb[103].mxu1 }
 0x6f1   : > { %v3596_v15 = vpop.f32.mrb[104].mxu1 }
 0x6f2   : > { %v3597_v16 = vadd.f32 %v3596_v15, %v3360_v61  ;;  %v5628_v21 = vpop.f32.mrb[105].mxu1  ;;  %v6173_v61 = vld [vmem:[#allocation13 + $0x28] sm:$0xff]  }
 0x6f3   : > { %v3599_v22 = vpop.f32.mrb[106].mxu1 }
 0x6f4   : > { %v5629_v25 = vpop.f32.mrb[107].mxu1 }
 0x6f8   : > { %v3458_v26 = vpop.f32.mrb[88].mxu0 }
 0x6f9   : > { %v5610_v27 = vpop.f32.mrb[89].mxu0 }
 0x6fa   : > { %v3461_v28 = vpop.f32.mrb[90].mxu0 }
 0x6fb   : > { %v5611_v35 = vpop.f32.mrb[91].mxu0 }
 0x700   : > { %v3550_v36 = vpop.f32.mrb[92].mxu0 }
 0x701   : > { %v3551_v39 = vadd.f32 %v3550_v36, %v3310_v53  ;;  %v5622_v40 = vpop.f32.mrb[93].mxu0  ;;  %v6170_v53 = vld [vmem:[#allocation13 + $0x10] sm:$0xff]  }
 0x702   : > { %v3553_v41 = vpop.f32.mrb[94].mxu0 }
 0x703   : > { %v3648_v42 = vadd.f32 %v3551_v39, %v3505_v9  ;;  %v5623_v50 = vpop.f32.mrb[95].mxu0 }
 0x708   : > { %v3642_v52 = vpop.f32.mrb[96].mxu0 }
 0x709   : > { %v3643_v59 = vadd.f32 %v3642_v52, %v3410_v54  ;;  %v5634_v60 = vpop.f32.mrb[97].mxu0 }
 0x70a   : > { %v3645_v63 = vpop.f32.mrb[98].mxu0 }
 0x70b   : > { %v3649_v0 = vadd.f32 %v3643_v59, %v3597_v16  ;;  %v5635_v11 = vpop.f32.mrb[99].mxu0 }
 0x70d   : > { %v3650_v12 = vadd.f32 %v3649_v0, %v3648_v42 }
 0x70f   : > { %v3651_v20 = vadd.f32 %v3650_v12, %v3458_v26  ;;  %v5112_v26 = vld [vmem:[#allocation15] ss:$0 sm:$0xff] }
 0x711   : > { %v3659_v23 = vadd.f32 %v5094_v19, %v3651_v20 }
 0x713   : > { %v3662_v24 = vpack.c.bf16 %v3659_v23, %v3659_v23 }
 0x715   : > { %v3672_v34 = vsel %vm3222_vm6, %v3662_v24, 0 }
 0x716   : > { %5637 = vmatpush3.bf16.msra.mxu1 %v3672_v34 }
 0x717   : > { %5662 = vmatprep.subr.bf16.mxu1 %v6512_v47 }
 0x719   : > { %5639 = vmatmul.mubr.msk.bf16.vlgmr.msra.gmra.mrb[108].mxu1 %vm3218_vm7, %v6156_v38  ;;  %v6176_v38 = vld [vmem:[%s7802_s29] sm:$0xff]  }
 0x71a   : > { %5664 = vmatprep.mubr.msk.bf16.mxu1 %vm6513_vm3, %v6512_v47 }
 0x7ec   : > { %v3708_v44 = vpop.f32.mrb[108].mxu1 }
 0x7ed   : > { %v5640_v51 = vpop.f32.mrb[109].mxu1 }
 0x7ee   : > { %v3711_v45 = vpop.f32.mrb[110].mxu1  ;;  %v6184_v51 = vld [vmem:[%s7802_s29 + $0x30] sm:$0xff]  }
 0x7ef   : > { %v3715_v46 = vpack.c.bf16 %v3711_v45, %v3708_v44  ;;  %v5641_v57 = vpop.f32.mrb[111].mxu1  ;;  %v6178_v44 = vld [vmem:[%s7802_s29 + $0x8] sm:$0xff]   ;;  %v6179_v45 = vld [vmem:[%s7802_s29 + $0x10] ss:$0 sps:$4 sm:$0x33]  }
 0x7f0   : > { %v6180_v57 = vld [vmem:[%s7802_s29 + $0x14] sm:$0xff]  }
 0x7f1   : > { %5659 = vmatmul.mubr.bf16.vlgmr.msra.gmra.mrb[100].mxu0 %v3715_v46  ;;  %v6186_v46 = vld [vmem:[%s7802_s29 + $0x38] ss:$0 sps:$4 sm:$0x33]  }
 0x7f2   : > { %5710 = vmatprep.mubr.msk.bf16.mxu0 %vm6513_vm3, %v6512_v47 }
 0x8c4   : > { %v3821_v5 = vpop.f32.mrb[100].mxu0 }
 0x8c5   : > { %v5660_v6 = vpop.f32.mrb[101].mxu0  ;;  %v3822_v8 = vadd.f32 %v5097_v58, %v3821_v5  ;;  %v6181_v5 = vld [vmem:[%s7802_s29 + $0x1c] sm:$0xff]  }
 0x8c6   : > { %v3824_v7 = vpop.f32.mrb[102].mxu0  ;;  %v6190_v6 = vld [vmem:[%s7802_s29 + $0x58] sm:$0xff]  }
 0x8c7   : > { %v3825_v17 = vadd.f32 %v5097_v58, %v3824_v7  ;;  %v5661_v18 = vpop.f32.mrb[103].mxu0  ;;  %v6188_v58 = vld [vmem:[%s7802_s29 + $0x50] sm:$0xff]   ;;  %v6182_v7 = vld [vmem:[%s7802_s29 + $0x24] ss:$0 sps:$4 sm:$0x33]  }
 0x8c8   : > { %v6185_v18 = vld [vmem:[%s7802_s29 + $0x44] sm:$0xff]  }
 0x8c9   : > { %v3833_v29 = vpack.c.bf16 %v3825_v17, %v3822_v8  ;;  %v6192_v8 = vld [vmem:[%s7802_s29 + $0x60] ss:$0 sps:$4 sm:$0x33]  }
 0x8ca   : > { %v6183_v17 = vld [vmem:[%s7802_s29 + $0x3c] sm:$0xff]  }
 0x8cb   : > { %5663 = vmatpush3.bf16.msra.mxu1 %v3833_v29  ;;  %v6187_v29 = vld [vmem:[%s7802_s29 + $0x4c] ss:$0 sps:$4 sm:$0x33]  }
 0x8cc   : > { %5676 = vmatprep.subr.bf16.mxu1 %v6512_v47 }
 0x8ce   : > { %5665 = vmatmul.mubr.msk.bf16.vlgmr.msra.gmra.mrb[112].mxu1 %vm2141_vm5, %v6165_v30  ;;  %v6189_v30 = vld [vmem:[%s7802_s29 + $0x64] sm:$0xff]  }
 0x8cf   : > { %5668 = vmatprep.mubr.msk.bf16.mxu1 %vm6513_vm3, %v6512_v47  ;;  %5677 = vmatpush3.bf16.msra.mxu1 %v6168_v31  ;;  %v6191_v31 = vld [vmem:[%s7802_s29 + $0x6c] sm:$0xff]  }
 0x8d0   : > { %5678 = vmatprep.subr.bf16.mxu1 %v6512_v47 }
 0x8d3   : > { %5679 = vmatpush3.bf16.msra.mxu1 %v6169_v32  ;;  %v6193_v32 = vld [vmem:[%s7802_s29 + $0x74] ss:$0 sps:$4 sm:$0x33]  }
 0x8d4   : > { %5680 = vmatprep.subr.bf16.mxu1 %v6512_v47 }
 0x8d6   : > { %5669 = vmatmul.mubr.msk.bf16.gmra.mrb[116].mxu1 %vm2141_vm5, %v6166_v48 }
 0x8d7   : > { %5672 = vmatprep.mubr.msk.bf16.mxu1 %vm6513_vm3, %v6512_v47  ;;  %5681 = vmatpush3.bf16.msra.mxu1 %v6170_v53 }
 0x8d8   : > { %5682 = vmatprep.subr.bf16.mxu1 %v6512_v47 }
 0x8db   : > { %5683 = vmatpush3.bf16.msra.mxu1 %v6171_v55 }
 0x8dc   : > { %5684 = vmatprep.subr.bf16.mxu1 %v6512_v47 }
 0x8de   : > { %5673 = vmatmul.mubr.msk.bf16.gmra.mrb[120].mxu1 %vm2141_vm5, %v6167_v33 }
 0x8df   : > { %5685 = vmatpush3.bf16.msra.mxu1 %v6172_v37  ;;  %5692 = vmatprep.mubr.msk.bf16.mxu1 %vm6513_vm3, %v6512_v47 }
 0x8e0   : > { %5686 = vmatprep.subr.bf16.mxu1 %v6512_v47 }
 0x8e3   : > { %5687 = vmatpush3.bf16.msra.mxu1 %v6173_v61 }
 0x8e4   : > { %5688 = vmatprep.subr.bf16.mxu1 %v6512_v47 }
 0x8e7   : > { %5689 = vmatpush3.bf16.msra.mxu1 %v6174_v1 }
 0x8e8   : > { %5690 = vmatprep.subr.bf16.mxu1 %v6512_v47 }
 0x8eb   : > { %5691 = vmatpush3.bf16.msra.mxu1 %v6175_v3 }
 0x8ec   : > { %5740 = vmatprep.subr.bf16.mxu1 %v6512_v47 }
 0x9a1   : > { %v3890_v49 = vpop.f32.mrb[112].mxu1 }
 0x9a2   : > { %v5666_v54 = vpop.f32.mrb[113].mxu1 }
 0x9a3   : > { %v3893_v56 = vpop.f32.mrb[114].mxu1 }
 0x9a4   : > { %v3912_v62 = vpack.c.bf16 %v3893_v56, %v3890_v49  ;;  %v5667_v2 = vpop.f32.mrb[115].mxu1 }
 0x9a6   : > { %5693 = vmatmul.mubr.bf16.vlgmr.msra.gmra.mrb[124].mxu1 %v3912_v62 }
 0x9a7   : > { %5696 = vmatprep.mubr.msk.bf16.mxu1 %vm6513_vm3, %v6512_v47 }
 0x9a9   : > { %v3898_v4 = vpop.f32.mrb[116].mxu1 }
 0x9aa   : > { %v5670_v9 = vpop.f32.mrb[117].mxu1 }
 0x9ab   : > { %v3901_v10 = vpop.f32.mrb[118].mxu1 }
 0x9ac   : > { %v3913_v13 = vpack.c.bf16 %v3901_v10, %v3898_v4  ;;  %v5671_v14 = vpop.f32.mrb[119].mxu1 }
 0x9ae   : > { %5697 = vmatmul.mubr.bf16.gmra.mrb[128].mxu1 %v3913_v13 }
 0x9af   : > { %5700 = vmatprep.mubr.msk.bf16.mxu1 %vm6513_vm3, %v6512_v47 }
 0x9b1   : > { %v3906_v15 = vpop.f32.mrb[120].mxu1 }
 0x9b2   : > { %v3914_v16 = vpack.c.bf16 %v3906_v15, %v3906_v15  ;;  %v5674_v21 = vpop.f32.mrb[121].mxu1 }
 0x9b3   : > { %v3909_v22 = vpop.f32.mrb[122].mxu1 }
 0x9b4   : > { %v5675_v25 = vpop.f32.mrb[123].mxu1 }
 0x9b6   : > { %5701 = vmatmul.mubr.bf16.gmra.mrb[132].mxu1 %v3914_v16 }
 0x9b7   : > { %5746 = vmatprep.mubr.msk.bf16.mxu1 %vm6513_vm3, %v6512_v47 }
 0xa79   : > { %v4020_v27 = vpop.f32.mrb[124].mxu1 }
 0xa7a   : > { %v5694_v28 = vpop.f32.mrb[125].mxu1  ;;  %v4021_v36 = vadd.f32 %v5112_v26, %v4020_v27 }
 0xa7b   : > { %v4023_v35 = vpop.f32.mrb[126].mxu1 }
 0xa7c   : > { %v4024_v39 = vadd.f32 %v5112_v26, %v4023_v35  ;;  %v5695_v40 = vpop.f32.mrb[127].mxu1 }
 0xa7e   : > { %v7561_v41 = vpack.c.bf16 %v4024_v39, %v4021_v36 }
 0xa80   : > { %5705 = vmatpush3.bf16.msra.mxu0 %v7561_v41  ;;  %5741 = vmatpush3.bf16.msra.mxu1 %v7561_v41 }
 0xa81   : > { %v4028_v42 = vpop.f32.mrb[128].mxu1  ;;  %5706 = vmatprep.subr.bf16.mxu0 %v6512_v47  ;;  %5742 = vmatprep.subr.bf16.mxu1 %v6512_v47 }
 0xa82   : > { %v5698_v50 = vpop.f32.mrb[129].mxu1  ;;  %v4029_v59 = vadd.f32 %v5112_v26, %v4028_v42 }
 0xa83   : > { %v4031_v52 = vpop.f32.mrb[130].mxu1 }
 0xa84   : > { %v4032_v60 = vadd.f32 %v5112_v26, %v4031_v52  ;;  %v5699_v63 = vpop.f32.mrb[131].mxu1 }
 0xa86   : > { %v7567_v0 = vpack.c.bf16 %v4032_v60, %v4029_v59 }
 0xa88   : > { %5707 = vmatpush3.bf16.msra.mxu0 %v7567_v0  ;;  %5743 = vmatpush3.bf16.msra.mxu1 %v7567_v0 }
 0xa89   : > { %v4036_v11 = vpop.f32.mrb[132].mxu1  ;;  %5708 = vmatprep.subr.bf16.mxu0 %v6512_v47  ;;  %5744 = vmatprep.subr.bf16.mxu1 %v6512_v47 }
 0xa8a   : > { %v4037_v12 = vadd.f32 %v5112_v26, %v4036_v11  ;;  %v5702_v19 = vpop.f32.mrb[133].mxu1 }
 0xa8b   : > { %v4039_v20 = vpop.f32.mrb[134].mxu1 }
 0xa8c   : > { %v7573_v23 = vpack.c.bf16 %v4037_v12, %v4037_v12  ;;  %v5703_v24 = vpop.f32.mrb[135].mxu1 }
 0xa8e   : > { %v7577_v34 = vsel %vm3222_vm6, %v7573_v23, 0 }
 0xa8f   : > { %5709 = vmatpush3.bf16.msra.mxu0 %v7577_v34  ;;  %5745 = vmatpush3.bf16.msra.mxu1 %v7577_v34 }
 0xa90   : > { %5722 = vmatprep.subr.bf16.mxu0 %v6512_v47  ;;  %5776 = vmatprep.subr.bf16.mxu1 %v6512_v47 }
 0xa92   : > { %5711 = vmatmul.mubr.msk.bf16.vlgmr.msra.gmra.mrb[104].mxu0 %vm4063_vm8, %v6176_v38  ;;  %5747 = vmatmul.mubr.msk.bf16.vlgmr.msra.gmra.mrb[136].mxu1 %vm4063_vm8, %v6177_v43 }
 0xa93   : > { %5723 = vmatpush3.bf16.msra.mxu0 %v7561_v41  ;;  %5777 = vmatpush3.bf16.msra.mxu1 %v7561_v41 }
 0xa94   : > { %5724 = vmatprep.subr.bf16.mxu0 %v6512_v47  ;;  %5778 = vmatprep.subr.bf16.mxu1 %v6512_v47 }
 0xa95   : > { %5714 = vmatprep.mubr.msk.bf16.mxu0 %vm6513_vm3, %v6512_v47  ;;  %5750 = vmatprep.mubr.msk.bf16.mxu1 %vm6513_vm3, %v6512_v47 }
 0xa97   : > { %5725 = vmatpush3.bf16.msra.mxu0 %v7567_v0  ;;  %5779 = vmatpush3.bf16.msra.mxu1 %v7567_v0 }
 0xa98   : > { %5726 = vmatprep.subr.bf16.mxu0 %v6512_v47  ;;  %5780 = vmatprep.subr.bf16.mxu1 %v6512_v47 }
 0xa9a   : > { %5715 = vmatmul.mubr.msk.bf16.gmra.mrb[108].mxu0 %vm4063_vm8, %v6178_v44  ;;  %5751 = vmatmul.mubr.msk.bf16.gmra.mrb[140].mxu1 %vm4063_vm8, %v6184_v51 }
 0xa9b   : > { %5727 = vmatpush3.bf16.msra.mxu0 %v7577_v34  ;;  %5781 = vmatpush3.bf16.msra.mxu1 %v7577_v34 }
 0xa9c   : > { %5718 = vmatprep.mubr.msk.bf16.mxu0 %vm6513_vm3, %v6512_v47  ;;  %5758 = vmatprep.subr.bf16.mxu0 %v6512_v47 }
 0xa9d   : > { %5754 = vmatprep.mubr.msk.bf16.mxu1 %vm6513_vm3, %v6512_v47  ;;  %5812 = vmatprep.subr.bf16.mxu1 %v6512_v47 }
 0xaa2   : > { %5719 = vmatmul.mubr.msk.bf16.gmra.mrb[112].mxu0 %vm4063_vm8, %v6179_v45  ;;  %5755 = vmatmul.mubr.msk.bf16.gmra.mrb[144].mxu1 %vm4063_vm8, %v6186_v46 }
 0xaa3   : > { %5728 = vmatprep.mubr.msk.bf16.mxu0 %vm6513_vm3, %v6512_v47  ;;  %5782 = vmatprep.mubr.msk.bf16.mxu1 %vm6513_vm3, %v6512_v47 }
 0xaaa   : > { %5729 = vmatmul.mubr.msk.bf16.vlgmr.msra.gmra.mrb[116].mxu0 %vm4063_vm8, %v6180_v57  ;;  %5783 = vmatmul.mubr.msk.bf16.vlgmr.msra.gmra.mrb[148].mxu1 %vm4063_vm8, %v6188_v58 }
 0xaab   : > { %5759 = vmatpush3.bf16.msra.mxu0 %v7561_v41  ;;  %5732 = vmatprep.mubr.msk.bf16.mxu0 %vm6513_vm3, %v6512_v47 }
 0xaac   : > { %5760 = vmatprep.subr.bf16.mxu0 %v6512_v47  ;;  %5786 = vmatprep.mubr.msk.bf16.mxu1 %vm6513_vm3, %v6512_v47 }
 0xaaf   : > { %5761 = vmatpush3.bf16.msra.mxu0 %v7567_v0 }
 0xab0   : > { %5762 = vmatprep.subr.bf16.mxu0 %v6512_v47 }
 0xab2   : > { %5733 = vmatmul.mubr.msk.bf16.gmra.mrb[120].mxu0 %vm4063_vm8, %v6181_v5  ;;  %5787 = vmatmul.mubr.msk.bf16.gmra.mrb[152].mxu1 %vm4063_vm8, %v6190_v6 }
 0xab3   : > { %5763 = vmatpush3.bf16.msra.mxu0 %v7577_v34  ;;  %5736 = vmatprep.mubr.msk.bf16.mxu0 %vm6513_vm3, %v6512_v47 }
 0xab4   : > { %5794 = vmatprep.subr.bf16.mxu0 %v6512_v47  ;;  %5790 = vmatprep.mubr.msk.bf16.mxu1 %vm6513_vm3, %v6512_v47 }
 0xaba   : > { %5737 = vmatmul.mubr.msk.bf16.gmra.mrb[124].mxu0 %vm4063_vm8, %v6182_v7  ;;  %5791 = vmatmul.mubr.msk.bf16.gmra.mrb[156].mxu1 %vm4063_vm8, %v6192_v8 }
 0xabb   : > { %5764 = vmatprep.mubr.msk.bf16.mxu0 %vm6513_vm3, %v6512_v47  ;;  %5818 = vmatprep.mubr.msk.bf16.mxu1 %vm6513_vm3, %v6512_v47 }
 0xac2   : > { %5765 = vmatmul.mubr.msk.bf16.vlgmr.msra.gmra.mrb[128].mxu0 %vm4063_vm8, %v6183_v17 }
 0xac3   : > { %5795 = vmatpush3.bf16.msra.mxu0 %v7561_v41  ;;  %5768 = vmatprep.mubr.msk.bf16.mxu0 %vm6513_vm3, %v6512_v47 }
 0xac4   : > { %5796 = vmatprep.subr.bf16.mxu0 %v6512_v47 }
 0xac7   : > { %5797 = vmatpush3.bf16.msra.mxu0 %v7567_v0 }
 0xac8   : > { %5798 = vmatprep.subr.bf16.mxu0 %v6512_v47 }
 0xaca   : > { %5769 = vmatmul.mubr.msk.bf16.gmra.mrb[132].mxu0 %vm4063_vm8, %v6185_v18 }
 0xacb   : > { %5799 = vmatpush3.bf16.msra.mxu0 %v7577_v34  ;;  %5772 = vmatprep.mubr.msk.bf16.mxu0 %vm6513_vm3, %v6512_v47 }
 0xad2   : > { %5773 = vmatmul.mubr.msk.bf16.gmra.mrb[136].mxu0 %vm4063_vm8, %v6187_v29 }
 0xad3   : > { %5800 = vmatprep.mubr.msk.bf16.mxu0 %vm6513_vm3, %v6512_v47 }
 0xada   : > { %5801 = vmatmul.mubr.msk.bf16.vlgmr.msra.gmra.mrb[140].mxu0 %vm4063_vm8, %v6189_v30 }
 0xadb   : > { %5804 = vmatprep.mubr.msk.bf16.mxu0 %vm6513_vm3, %v6512_v47 }
 0xae2   : > { %5805 = vmatmul.mubr.msk.bf16.gmra.mrb[144].mxu0 %vm4063_vm8, %v6191_v31 }
 0xae3   : > { %5808 = vmatprep.mubr.msk.bf16.mxu0 %vm6513_vm3, %v6512_v47 }
 0xaea   : > { %5809 = vmatmul.mubr.msk.bf16.gmra.mrb[148].mxu0 %vm4063_vm8, %v6193_v32 }
 0xb65   : > { %v4110_v48 = vpop.f32.mrb[104].mxu0  ;;  %v4278_v53 = vpop.f32.mrb[136].mxu1 }
 0xb66   : > { %v5712_v55 = vpop.f32.mrb[105].mxu0  ;;  %v5748_v33 = vpop.f32.mrb[137].mxu1 }
 0xb67   : > { %v4113_v37 = vpop.f32.mrb[106].mxu0  ;;  %v4281_v61 = vpop.f32.mrb[138].mxu1 }
 0xb68   : > { %v5713_v1 = vpop.f32.mrb[107].mxu0  ;;  %v5749_v3 = vpop.f32.mrb[139].mxu1 }
 0xb6d   : > { %v4118_v49 = vpop.f32.mrb[108].mxu0  ;;  %v4286_v54 = vpop.f32.mrb[140].mxu1 }
 0xb6e   : > { %v5716_v56 = vpop.f32.mrb[109].mxu0  ;;  %v5752_v62 = vpop.f32.mrb[141].mxu1 }
 0xb6f   : > { %v4121_v2 = vpop.f32.mrb[110].mxu0  ;;  %v4289_v4 = vpop.f32.mrb[142].mxu1 }
 0xb70   : > { %v5717_v9 = vpop.f32.mrb[111].mxu0  ;;  %v5753_v10 = vpop.f32.mrb[143].mxu1 }
 0xb75   : > { %v4126_v13 = vpop.f32.mrb[112].mxu0  ;;  %v4294_v14 = vpop.f32.mrb[144].mxu1 }
 0xb76   : > { %v5720_v15 = vpop.f32.mrb[113].mxu0  ;;  %v5756_v16 = vpop.f32.mrb[145].mxu1 }
 0xb77   : > { %v4129_v21 = vpop.f32.mrb[114].mxu0  ;;  %v4297_v22 = vpop.f32.mrb[146].mxu1 }
 0xb78   : > { %v5721_v25 = vpop.f32.mrb[115].mxu0  ;;  %v5757_v26 = vpop.f32.mrb[147].mxu1 }
 0xb79   : > { %v4577_v26 = vunpack.c.l.bf16 %v7561_v41 }
 0xb7d   : > { %v4194_v27 = vpop.f32.mrb[116].mxu0  ;;  %v4446_v28 = vpop.f32.mrb[148].mxu1 }
 0xb7e   : > { %v4552_v35 = vmax.f32 %v4110_v48, %v4194_v27  ;;  %v5730_v36 = vpop.f32.mrb[117].mxu0  ;;  %v5784_v39 = vpop.f32.mrb[149].mxu1 }
 0xb7f   : > { %v4197_v40 = vpop.f32.mrb[118].mxu0  ;;  %v4449_v42 = vpop.f32.mrb[150].mxu1 }
 0xb80   : > { %v4553_v50 = vmax.f32 %v4113_v37, %v4197_v40  ;;  %v5731_v52 = vpop.f32.mrb[119].mxu0  ;;  %v5785_v59 = vpop.f32.mrb[151].mxu1 }
 0xb85   : > { %v4202_v60 = vpop.f32.mrb[120].mxu0  ;;  %v4454_v63 = vpop.f32.mrb[152].mxu1 }
 0xb86   : > { %v4554_v11 = vmax.f32 %v4118_v49, %v4202_v60  ;;  %v5734_v12 = vpop.f32.mrb[121].mxu0  ;;  %v5788_v19 = vpop.f32.mrb[153].mxu1 }
 0xb87   : > { %v4205_v20 = vpop.f32.mrb[122].mxu0  ;;  %v4457_v24 = vpop.f32.mrb[154].mxu1 }
 0xb88   : > { %v4555_v34 = vmax.f32 %v4121_v2, %v4205_v20  ;;  %v5735_v38 = vpop.f32.mrb[123].mxu0  ;;  %v5789_v43 = vpop.f32.mrb[155].mxu1 }
 0xb8d   : > { %v4210_v44 = vpop.f32.mrb[124].mxu0  ;;  %v7712_v51 = vpop.f32.mrb[156].mxu1 }
 0xb8e   : > { %v4556_v45 = vmax.f32 %v4126_v13, %v4210_v44  ;;  %v5738_v46 = vpop.f32.mrb[125].mxu0  ;;  %v5792_v57 = vpop.f32.mrb[157].mxu1 }
 0xb8f   : > { %v4213_v58 = vpop.f32.mrb[126].mxu0  ;;  %v4465_v5 = vpop.f32.mrb[158].mxu1  ;;  %v4581_v57 = vunpack.c.l.bf16 %v7573_v23 }
 0xb90   : > { %v5739_v6 = vpop.f32.mrb[127].mxu0  ;;  %v5793_v7 = vpop.f32.mrb[159].mxu1 }
 0xb95   : > { %v4362_v8 = vpop.f32.mrb[128].mxu0 }
 0xb96   : > { %v4557_v17 = vmax.f32 %v4278_v53, %v4362_v8  ;;  %v5766_v18 = vpop.f32.mrb[129].mxu0 }
 0xb97   : > { %v4365_v29 = vpop.f32.mrb[130].mxu0 }
 0xb98   : > { %v4567_v30 = vmax.f32 %v4552_v35, %v4557_v17  ;;  %v4558_v31 = vmax.f32 %v4281_v61, %v4365_v29  ;;  %v5767_v32 = vpop.f32.mrb[131].mxu0 }
 0xb99   : > { %v6195_v32 = vld [vmem:[%s7803_s22 + $0x8] sm:$0xff]  }
 0xb9a   : > { %v4568_v48 = vmax.f32 %v4553_v50, %v4558_v31  ;;  %v6194_v31 = vld [vmem:[%s7803_s22] sm:$0xff]  }
 0xb9d   : > { %v4370_v55 = vpop.f32.mrb[132].mxu0 }
 0xb9e   : > { %v4559_v33 = vmax.f32 %v4286_v54, %v4370_v55  ;;  %v5770_v37 = vpop.f32.mrb[133].mxu0 }
 0xb9f   : > { %v4373_v1 = vpop.f32.mrb[134].mxu0 }
 0xba0   : > { %v4569_v3 = vmax.f32 %v4554_v11, %v4559_v33  ;;  %v4560_v49 = vmax.f32 %v4289_v4, %v4373_v1  ;;  %v5771_v56 = vpop.f32.mrb[135].mxu0  ;;  %v4578_v4 = vunpack.c.h.bf16 %v7561_v41  ;;  %v4579_v11 = vunpack.c.l.bf16 %v7567_v0 }
 0xba2   : > { %v4570_v62 = vmax.f32 %v4555_v34, %v4560_v49  ;;  %v4580_v34 = vunpack.c.h.bf16 %v7567_v0 }
 0xba5   : > { %v4378_v2 = vpop.f32.mrb[136].mxu0 }
 0xba6   : > { %v4561_v9 = vmax.f32 %v4294_v14, %v4378_v2  ;;  %v5774_v10 = vpop.f32.mrb[137].mxu0 }
 0xba7   : > { %v4381_v13 = vpop.f32.mrb[138].mxu0 }
 0xba8   : > { %v4571_v15 = vmax.f32 %v4556_v45, %v4561_v9  ;;  %v5775_v53 = vpop.f32.mrb[139].mxu0 }
 0xbad   : > { %v4530_v16 = vpop.f32.mrb[140].mxu0 }
 0xbae   : > { %v4562_v21 = vmax.f32 %v4446_v28, %v4530_v16  ;;  %v5802_v22 = vpop.f32.mrb[141].mxu0 }
 0xbaf   : > { %v4533_v61 = vpop.f32.mrb[142].mxu0 }
 0xbb0   : > { %v4572_v25 = vmax.f32 %v4567_v30, %v4562_v21  ;;  %v4563_v54 = vmax.f32 %v4449_v42, %v4533_v61  ;;  %v5803_v27 = vpop.f32.mrb[143].mxu0 }
 0xbb2   : > { %v4582_v35 = vsub.f32 %v4577_v26, %v4572_v25  ;;  %v4573_v36 = vmax.f32 %v4568_v48, %v4563_v54  ;;  %v6196_v48 = vld [vmem:[%s7803_s22 + $0x10] ss:$0 sps:$4 sm:$0x33]  }
 0xbb4   : > { %v4587_v39 = vmul.f32 1.442695, %v4582_v35  ;;  %v4583_v40 = vsub.f32 %v4578_v4, %v4573_v36 }
 0xbb5   : > { %v4538_v14 = vpop.f32.mrb[144].mxu0 }
 0xbb6   : > { %v4589_v50 = vmul.f32 1.442695, %v4583_v40  ;;  %v4564_v52 = vmax.f32 %v4454_v63, %v4538_v14  ;;  %v5806_v59 = vpop.f32.mrb[145].mxu0  ;;  %6197 = vpow2.f32 %v4587_v39 }
 0xbb7   : > { %v4541_v60 = vpop.f32.mrb[146].mxu0 }
 0xbb8   : > { %6199 = vpow2.f32 %v4589_v50  ;;  %v4574_v28 = vmax.f32 %v4569_v3, %v4564_v52  ;;  %v4565_v12 = vmax.f32 %v4457_v24, %v4541_v60  ;;  %v5807_v19 = vpop.f32.mrb[147].mxu0 }
 0xbba   : > { %v4584_v42 = vsub.f32 %v4579_v11, %v4574_v28  ;;  %v4575_v20 = vmax.f32 %v4570_v62, %v4565_v12 }
 0xbbc   : > { %v4591_v38 = vmul.f32 1.442695, %v4584_v42  ;;  %v4585_v41 = vsub.f32 %v4580_v34, %v4575_v20 }
 0xbbd   : > { %v4546_v43 = vpop.f32.mrb[148].mxu0 }
 0xbbe   : > { %v4593_v44 = vmul.f32 1.442695, %v4585_v41  ;;  %v4566_v45 = vmax.f32 %v7712_v51, %v4546_v43  ;;  %v5810_v63 = vpop.f32.mrb[149].mxu0  ;;  %6201 = vpow2.f32 %v4591_v38 }
 0xbbf   : > { %v4549_v46 = vpop.f32.mrb[150].mxu0 }
 0xbc0   : > { %6203 = vpow2.f32 %v4593_v44  ;;  %v4576_v58 = vmax.f32 %v4571_v15, %v4566_v45  ;;  %v5811_v5 = vpop.f32.mrb[151].mxu0  ;;  %v6198_v24 = vpop.eup %6197 }
 0xbc2   : > { %v6200_v6 = vpop.eup %6199  ;;  %v4586_v7 = vsub.f32 %v4581_v57, %v4576_v58 }
 0xbc3   : > { %v4597_v8 = vpack.c.bf16 %v6200_v6, %v6198_v24 }
 0xbc4   : > { %v4595_v17 = vmul.f32 1.442695, %v4586_v7 }
 0xbc5   : > { %5813 = vmatpush3.bf16.msra.mxu1 %v4597_v8  ;;  %v4686_v56 = vunpack.c.l.bf16 %v4597_v8  ;;  %v4687_v9 = vunpack.c.h.bf16 %v4597_v8 }
 0xbc6   : > { %6205 = vpow2.f32 %v4595_v17  ;;  %5814 = vmatprep.subr.bf16.mxu1 %v6512_v47 }
 0xbc8   : > { %v6202_v0 = vpop.eup %6201 }
 0xbca   : > { %v6204_v18 = vpop.eup %6203 }
 0xbcb   : > { %v4598_v51 = vpack.c.bf16 %v6204_v18, %v6202_v0 }
 0xbcd   : > { %5815 = vmatpush3.bf16.msra.mxu1 %v4598_v51  ;;  %v4688_v21 = vunpack.c.l.bf16 %v4598_v51  ;;  %v4689_v26 = vunpack.c.h.bf16 %v4598_v51 }
 0xbce   : > { %5816 = vmatprep.subr.bf16.mxu1 %v6512_v47 }
 0xbd0   : > { %v6206_v29 = vpop.eup %6205 }
 0xbd1   : > { %v4599_v23 = vpack.c.bf16 %v6206_v29, %v6206_v29 }
 0xbd3   : > { %v4628_v30 = vsel %vm3222_vm6, %v4599_v23, 0  ;;  %v4690_v36 = vunpack.c.l.bf16 %v4599_v23 }
 0xbd4   : > { %5817 = vmatpush3.bf16.msra.mxu1 %v4628_v30 }
 0xbd7   : > { %5819 = vmatmul.mubr.msk.bf16.vlgmr.msra.gmra.mrb[160].mxu1 %vm4063_vm8, %v6194_v31 }
 0xbd8   : > { %5822 = vmatprep.mubr.msk.bf16.mxu1 %vm6513_vm3, %v6512_v47 }
 0xbdf   : > { %5823 = vmatmul.mubr.msk.bf16.gmra.mrb[164].mxu1 %vm4063_vm8, %v6195_v32 }
 0xbe0   : > { %5826 = vmatprep.mubr.msk.bf16.mxu1 %vm6513_vm3, %v6512_v47 }
 0xbe7   : > { %5827 = vmatmul.mubr.msk.bf16.gmra.mrb[168].mxu1 %vm4063_vm8, %v6196_v48 }
 0xcaa   : > { %v4664_v55 = vpop.f32.mrb[160].mxu1 }
 0xcab   : > { %6207 = vrcp.f32 %v4664_v55  ;;  %v5820_v33 = vpop.f32.mrb[161].mxu1 }
 0xcac   : > { %v4667_v37 = vpop.f32.mrb[162].mxu1 }
 0xcad   : > { %6209 = vrcp.f32 %v4667_v37  ;;  %v5821_v1 = vpop.f32.mrb[163].mxu1 }
 0xcb2   : > { %v4672_v3 = vpop.f32.mrb[164].mxu1 }
 0xcb3   : > { %6211 = vrcp.f32 %v4672_v3  ;;  %v5824_v49 = vpop.f32.mrb[165].mxu1 }
 0xcb4   : > { %v4675_v62 = vpop.f32.mrb[166].mxu1 }
 0xcb5   : > { %v6208_v2 = vpop.eup %6207  ;;  %6213 = vrcp.f32 %v4675_v62  ;;  %v5825_v47 = vpop.f32.mrb[167].mxu1 }
 0xcb6   : > { %v4692_v10 = vmul.f32 %v6208_v2, %v4686_v56 }
 0xcb7   : > { %v6210_v13 = vpop.eup %6209 }
 0xcb8   : > { %4701 = vst [vmem:[%s696_s2] sm:$0xff] %v4692_v10  ;;  %v4694_v15 = vmul.f32 %v6210_v13, %v4687_v9 }
 0xcba   : > { %4702 = vst [vmem:[%s696_s2 + $0x8] sm:$0xff] %v4694_v15  ;;  %v4680_v53 = vpop.f32.mrb[168].mxu1 }
 0xcbb   : > { %6215 = vrcp.f32 %v4680_v53  ;;  %v5828_v16 = vpop.f32.mrb[169].mxu1 }
 0xcbc   : > { %v4683_v22 = vpop.f32.mrb[170].mxu1 }
 0xcbd   : > { %v6212_v61 = vpop.eup %6211  ;;  %v5829_v25 = vpop.f32.mrb[171].mxu1 }
 0xcbe   : > { %v4696_v54 = vmul.f32 %v6212_v61, %v4688_v21 }
 0xcbf   : > { %v6214_v27 = vpop.eup %6213 }
 0xcc0   : > { %4703 = vst [vmem:[%s696_s2 + $0x10] sm:$0xff] %v4696_v54  ;;  %v4698_v35 = vmul.f32 %v6214_v27, %v4689_v26 }
 0xcc2   : > { %4704 = vst [vmem:[%s696_s2 + $0x18] sm:$0xff] %v4698_v35 }
 0xcc5   : > { %v6216_v4 = vpop.eup %6215 }
 0xcc6   : > { %v4700_v39 = vmul.f32 %v6216_v4, %v4690_v36 }
 0xcc8   : > { %4705 = vst [vmem:[%s696_s2 + $0x20] sm:$0xf] %v4700_v39 }
 0xcc9 PF: > { %s7805_s30 = sld [smem:[#allocation21_spill]] }
 0xccf   : > { %s33_s27 = sadd.s32 1, %s7805_s30  }
 0xcd0   : > { %p30_p1 = scmp.ge.s32.totalorder %s33_s27, 4  }
 0xcd2   :  { %32 = sbr.rel (!%p30_p1) target bundleno = 14 (0xe), region = 188 }
 0xcd9   :  { %4727 = vsyncpa [#allocation3], 1 }
 0xcda   :  { %4729 = vsyncpa [#allocation3 + $0x1], 1 }
 0xcdb   :  { %4730 = vsyncpa [#allocation5], 1 }
 0xcdc   :  { %4731 = vsyncpa [#allocation8], 1 }
 0xcdd   :  { %4732 = vsyncpa [#allocation11], 1 }
 0xcde   :  { %4733 = vsyncpa [#allocation14], 1 }

</bundles_post_ra>
